<compile_context>
chip_gen: v6e
topology: v6e:2x2x1
jax: 0.10.0
libtpu: 0.0.40
codegen_flags: <defaults>
</compile_context>

<pallas_src>
import functools
import math

import numpy as np
import jax
import jax.numpy as jnp
from jax.experimental import pallas as pl


# ----------------------------------------------------------------------------
# Fused kernel
# ----------------------------------------------------------------------------
def _fused_bilstm_kernel(*refs, T, B, H, L):
    out_ref = refs[-1]
    it = iter(refs[:-1])
    nxt = lambda: next(it)[...]

    x_cat = nxt()                                        # (T*B, Ds+Dp)  bf16
    lstm = [(nxt(), nxt(), nxt()) for _ in range(L)]     # (w_ih, b, w_hh)
    w1, b1, w2, b2, w3, b3, drop1, drop2 = [nxt() for _ in range(8)]

    f32, bf16 = jnp.float32, jnp.bfloat16
    G = 4 * H                                            # one gate block / h width

    def fw_lane_mask(width):
        # lanes where (lane mod 2H) < H, i.e. the forward chains' lanes in the
        # [s_fw|s_bw|p_fw|p_bw] packing.  Interval compares only; built ONCE
        # and reused by every unrolled step (review: hoist iota/cmp).
        lane = jax.lax.broadcasted_iota(jnp.int32, (B, width), 1)
        m = None
        for start in range(0, width, 2 * H):
            seg = (lane >= start) & (lane < start + H)
            m = seg if m is None else (m | seg)
        return m

    gate_fw_mask = fw_lane_mask(4 * G)                   # (B, 16H)
    h_fw_mask = fw_lane_mask(G)                          # (B, 4H)

    def mm(a, w):
        return jnp.dot(a, w, preferred_element_type=f32)

    def run_layer(xg, w_hh, collect):
        """Packed 4-chain recurrence over T steps.

        xg: (T*B, 16H) time-ordered gate pre-activations (f32), gate-major
        columns.  Returns (per-step h list, final h, h after step 0)."""
        h = jnp.zeros((B, G), f32)
        c = jnp.zeros((B, G), f32)
        outs = []
        h_first = None
        for s in range(T):
            # fw chains consume time s, bw chains time T-1-s (VPU select).
            g_in = jnp.where(gate_fw_mask,
                             xg[s * B:(s + 1) * B],
                             xg[(T - 1 - s) * B:(T - s) * B])
            # ONE (B,4H)@(4H,16H) bf16 MXU dot per step (block-diag W_hh).
            pre = g_in + mm(h.astype(bf16), w_hh)        # (B, 16H) f32
            sg = jax.nn.sigmoid(pre)                     # single EUP pass
            i_a = sg[:, 0:G]
            f_a = sg[:, G:2 * G]
            g_a = 2.0 * sg[:, 2 * G:3 * G] - 1.0         # tanh (x2 folded into W)
            o_a = sg[:, 3 * G:4 * G]
            c = f_a * c + i_a * g_a
            h = o_a * jnp.tanh(c)
            if collect:
                outs.append(h)
            if s == 0:
                h_first = h
        return outs, h, h_first

    y = x_cat                                            # current layer input (bf16)
    h_last = h_first = None
    for l in range(L):
        w_ih, b, w_hh = lstm[l]
        # Input projection for ALL timesteps: one fused matmul per layer.
        xg = mm(y, w_ih) + b                             # (T*B, 16H) f32
        last = (l == L - 1)
        outs, h_last, h_first = run_layer(xg, w_hh, collect=not last)
        if not last:
            # Bidirectional output at original time t: fw lanes from step t,
            # bw lanes from step T-1-t.  Lane layout [s_fw|s_bw|p_fw|p_bw]
            # matches the next layer's packed W_ih rows (no lane concats).
            rows = [jnp.where(h_fw_mask, outs[t], outs[T - 1 - t])
                    for t in range(T)]
            y = jnp.concatenate(rows, axis=0).astype(bf16)   # (T*B, 4H)

    # out[:, -1, :]: fw chains' final state, bw chains' state after ONE step.
    feats = jnp.where(h_fw_mask, h_last, h_first)        # (B,4H)=[s_fw|s_bw|p_fw|p_bw]

    # ---- head (BatchNorm pre-folded into w1/b1, w2/b2 on the host) --------
    h1 = mm(feats, w1) + b1
    h1 = jnp.maximum(h1 * drop1, 0.0)                    # dropout then relu
    h2 = mm(h1, w2) + b2
    h2 = jnp.maximum(h2 * drop2, 0.0)
    # fc3 (Fc -> 1): VPU multiply + lane reduction instead of an N=1 MXU pass.
    out_ref[...] = jnp.sum(h2 * w3, axis=-1, keepdims=True) + b3


# ----------------------------------------------------------------------------
# Host-side parameter packing
# ----------------------------------------------------------------------------
def _pack_lstm_layer(sent_layer, price_layer, d_s, d_p, H, is_first):
    """Pack the four chains (s_fw, s_bw, p_fw, p_bw) of one LSTM layer into
    block matrices with gate-major output columns [i|f|g|o]; each gate block
    is [s_fw|s_bw|p_fw|p_bw] x H lanes.  tanh(x)=2*sigmoid(2x)-1 is
    pre-folded: g-gate columns and bias are doubled."""
    G = 4 * H
    chains = [
        (np.asarray(sent_layer["w_ih_fw"], np.float32),
         np.asarray(sent_layer["w_hh_fw"], np.float32),
         np.asarray(sent_layer["b_fw"], np.float32)),
        (np.asarray(sent_layer["w_ih_bw"], np.float32),
         np.asarray(sent_layer["w_hh_bw"], np.float32),
         np.asarray(sent_layer["b_bw"], np.float32)),
        (np.asarray(price_layer["w_ih_fw"], np.float32),
         np.asarray(price_layer["w_hh_fw"], np.float32),
         np.asarray(price_layer["b_fw"], np.float32)),
        (np.asarray(price_layer["w_ih_bw"], np.float32),
         np.asarray(price_layer["w_hh_bw"], np.float32),
         np.asarray(price_layer["b_bw"], np.float32)),
    ]
    if is_first:
        d_in = d_s + d_p
        row_off = (0, 0, d_s, d_s)            # x_cat = [x_sent | x_price]
    else:
        d_in = 4 * H
        row_off = (0, 0, 2 * H, 2 * H)        # y = [s_fw|s_bw|p_fw|p_bw]

    w_ih_p = np.zeros((d_in, 4 * G), np.float32)
    w_hh_p = np.zeros((4 * H, 4 * G), np.float32)
    b_p = np.zeros((1, 4 * G), np.float32)
    for k, (w_ih, w_hh, b) in enumerate(chains):
        d_k = w_ih.shape[0]
        for g in range(4):                    # torch gate order i,f,g,o
            col = g * G + k * H
            w_ih_p[row_off[k]:row_off[k] + d_k, col:col + H] = w_ih[:, g * H:(g + 1) * H]
            w_hh_p[k * H:(k + 1) * H, col:col + H] = w_hh[:, g * H:(g + 1) * H]
            b_p[0, col:col + H] = b[0, g * H:(g + 1) * H]
    # tanh-as-sigmoid: double the g-gate (block 2) pre-activations.
    w_ih_p[:, 2 * G:3 * G] *= 2.0
    w_hh_p[:, 2 * G:3 * G] *= 2.0
    b_p[:, 2 * G:3 * G] *= 2.0
    return w_ih_p, b_p, w_hh_p


def pack_params(params, cfg, input_size):
    """Pack LSTM layers (block matrices, gate-major, bf16) and fold the
    eval-mode BatchNorm affines into fc1/fc2."""
    H, L = cfg["hidden_size"], cfg["hidden_layers"]
    ls, lp = params["lstm_sentiment"], params["lstm_price"]
    layers = []
    for l in range(L):
        w_ih_p, b_p, w_hh_p = _pack_lstm_layer(
            ls[l], lp[l], input_size[0], input_size[1], H, is_first=(l == 0))
        layers.append((jnp.asarray(w_ih_p, jnp.bfloat16),
                       jnp.asarray(b_p, jnp.float32),
                       jnp.asarray(w_hh_p, jnp.bfloat16)))

    hp = params["head"]
    w1, b1 = np.asarray(hp["w1"], np.float32), np.asarray(hp["b1"], np.float32)
    w2, b2 = np.asarray(hp["w2"], np.float32), np.asarray(hp["b2"], np.float32)
    s1, t1 = np.asarray(hp["bn1_scale"], np.float32), np.asarray(hp["bn1_shift"], np.float32)
    s2, t2 = np.asarray(hp["bn2_scale"], np.float32), np.asarray(hp["bn2_shift"], np.float32)
    head = tuple(jnp.asarray(a, jnp.float32) for a in (
        w1 * s1, b1 * s1 + t1,                # fc1 + bn1 folded
        w2 * s2, b2 * s2 + t2,                # fc2 + bn2 folded
        np.asarray(hp["w3"], np.float32), np.asarray(hp["b3"], np.float32)))
    return dict(lstm=layers, head=head)


# ----------------------------------------------------------------------------
# Wrapper (mirrors BiLSTM_Regression.forward, eval-mode inference)
# ----------------------------------------------------------------------------
def bilstm_regression_forward(sentiment_seq, price_seq, packed, cfg,
                              input_size, dropout_key):
    H, L, Fc = cfg["hidden_size"], cfg["hidden_layers"], cfg["fc_size"]
    if input_size[0] == 1:
        sentiment_seq = sentiment_seq[..., None]          # unsqueeze(-1)
    B, T = sentiment_seq.shape[0], sentiment_seq.shape[1]

    def to_time_major_flat(x):                            # (B,T,D)->(T*B,D)
        x = jnp.transpose(x.astype(jnp.float32), (1, 0, 2))
        return x.reshape(T * B, x.shape[-1])

    # One lane-concatenated input slab [x_sent | x_price] feeding the fused
    # block-structured layer-0 W_ih.  bf16 for the MXU input projection.
    x_cat = jnp.concatenate(
        [to_time_major_flat(sentiment_seq), to_time_major_flat(price_seq)],
        axis=1).astype(jnp.bfloat16)

    # F.dropout(p=0.2) runs with training=True in the torch code -> applied.
    # TODO(synk): torch's dropout RNG cannot be bit-matched; jax.random used.
    p = 0.2
    k1, k2 = jax.random.split(dropout_key)
    m1 = jax.random.bernoulli(k1, 1.0 - p, (B, Fc)).astype(jnp.float32) / (1.0 - p)
    m2 = jax.random.bernoulli(k2, 1.0 - p, (B, Fc)).astype(jnp.float32) / (1.0 - p)

    inputs = [x_cat]
    for (w_ih, b, w_hh) in packed["lstm"]:
        inputs += [w_ih, b, w_hh]
    inputs += list(packed["head"]) + [m1, m2]

    kernel = functools.partial(_fused_bilstm_kernel, T=T, B=B, H=H, L=L)
    # Single grid-less pallas_call; all operands (a few hundred KB) live as
    # whole-array VMEM blocks, so no BlockSpec tiling / grid is needed on any
    # TPU generation (well under default scoped-VMEM limits).
    return pl.pallas_call(
        kernel,
        out_shape=jax.ShapeDtypeStruct((B, 1), jnp.float32),
    )(*inputs)


# ----------------------------------------------------------------------------
# Deterministic parameter construction (freshly initialised module)
# ----------------------------------------------------------------------------
def _uniform(key, shape, k):
    return jax.random.uniform(key, shape, jnp.float32, minval=-k, maxval=k)


def init_lstm_params(key, in_features, hidden, num_layers):
    layers = []
    k = 1.0 / math.sqrt(hidden)
    for l in range(num_layers):
        d_in = in_features if l == 0 else 2 * hidden
        key, *ks = jax.random.split(key, 9)
        layers.append(dict(
            w_ih_fw=_uniform(ks[0], (d_in, 4 * hidden), k),
            w_hh_fw=_uniform(ks[1], (hidden, 4 * hidden), k),
            # b = b_ih + b_hh, drawn separately (matches torch init variance).
            b_fw=_uniform(ks[2], (1, 4 * hidden), k)
            + _uniform(ks[3], (1, 4 * hidden), k),
            w_ih_bw=_uniform(ks[4], (d_in, 4 * hidden), k),
            w_hh_bw=_uniform(ks[5], (hidden, 4 * hidden), k),
            b_bw=_uniform(ks[6], (1, 4 * hidden), k)
            + _uniform(ks[7], (1, 4 * hidden), k),
        ))
    return layers


def init_params(key, cfg, input_size):
    H, L, Fc = cfg["hidden_size"], cfg["hidden_layers"], cfg["fc_size"]
    keys = jax.random.split(key, 8)
    bn_eps = 1e-5
    # BatchNorm1d default init in eval mode: gamma=1, beta=0, mean=0, var=1
    #   -> scale = 1/sqrt(1+eps), shift = 0.
    bn_scale = jnp.full((1, Fc), 1.0 / math.sqrt(1.0 + bn_eps), jnp.float32)
    bn_shift = jnp.zeros((1, Fc), jnp.float32)
    k1 = 1.0 / math.sqrt(4 * H)
    k2 = 1.0 / math.sqrt(Fc)
    head = dict(
        w1=_uniform(keys[0], (4 * H, Fc), k1),
        b1=_uniform(keys[1], (1, Fc), k1),
        bn1_scale=bn_scale, bn1_shift=bn_shift,
        w2=_uniform(keys[2], (Fc, Fc), k2),
        b2=_uniform(keys[3], (1, Fc), k2),
        bn2_scale=bn_scale, bn2_shift=bn_shift,
        # fc3 weight kept as a (1, Fc) row (torch fc3.weight is (1, Fc)).
        w3=_uniform(keys[4], (1, Fc), k2),
        b3=_uniform(keys[5], (1, 1), k2),
    )
    return dict(
        lstm_sentiment=init_lstm_params(keys[6], input_size[0], H, L),
        lstm_price=init_lstm_params(keys[7], input_size[1], H, L),
        head=head,
    )


if __name__ == "__main__":
    cfg = dict(hidden_size=32, hidden_layers=2, dropout=0.0, fc_size=64)
    input_size = (1, 4)          # (sentiment features, price features)
    B, T = 2, 8

    key = jax.random.PRNGKey(0)
    k_sent, k_price, k_par, k_drop = jax.random.split(key, 4)
    sentiment_seq = jax.random.normal(k_sent, (B, T), dtype=jnp.float32)
    price_seq = jax.random.normal(k_price, (B, T, input_size[1]),
                                  dtype=jnp.float32)
    params = init_params(k_par, cfg, input_size)
    packed = pack_params(params, cfg, input_size)

    out = bilstm_regression_forward(sentiment_seq, price_seq, packed, cfg,
                                    input_size, k_drop)
    out = jax.block_until_ready(out)
    assert out.shape == (B, 1) and out.dtype == jnp.float32
    print("KERNEL_OK")
</pallas_src>

<mosaic_0001>
module attributes {stable_mosaic.version = 11 : i64} {
  func.func @_fused_bilstm_kernel(%arg0: memref<16x5xbf16, #tpu.memory_space<vmem>>, %arg1: memref<5x512xbf16, #tpu.memory_space<vmem>>, %arg2: memref<1x512xf32, #tpu.memory_space<vmem>>, %arg3: memref<128x512xbf16, #tpu.memory_space<vmem>>, %arg4: memref<128x512xbf16, #tpu.memory_space<vmem>>, %arg5: memref<1x512xf32, #tpu.memory_space<vmem>>, %arg6: memref<128x512xbf16, #tpu.memory_space<vmem>>, %arg7: memref<128x64xf32, #tpu.memory_space<vmem>>, %arg8: memref<1x64xf32, #tpu.memory_space<vmem>>, %arg9: memref<64x64xf32, #tpu.memory_space<vmem>>, %arg10: memref<1x64xf32, #tpu.memory_space<vmem>>, %arg11: memref<1x64xf32, #tpu.memory_space<vmem>>, %arg12: memref<1x1xf32, #tpu.memory_space<vmem>>, %arg13: memref<2x64xf32, #tpu.memory_space<vmem>>, %arg14: memref<2x64xf32, #tpu.memory_space<vmem>>, %arg15: memref<2x1xf32, #tpu.memory_space<vmem>>) attributes {dimension_semantics = [], scalar_prefetch = 0 : i64, scratch_operands = 0 : i64, tpu.core_type = #tpu.core_type<tc>} {
    %c0 = arith.constant 0 : index
    %c0_0 = arith.constant 0 : index
    %0 = vector.load %arg0[%c0, %c0_0] : memref<16x5xbf16, #tpu.memory_space<vmem>>, vector<16x5xbf16>
    %c0_1 = arith.constant 0 : index
    %c0_2 = arith.constant 0 : index
    %1 = vector.load %arg1[%c0_1, %c0_2] : memref<5x512xbf16, #tpu.memory_space<vmem>>, vector<5x512xbf16>
    %c0_3 = arith.constant 0 : index
    %c0_4 = arith.constant 0 : index
    %2 = vector.load %arg2[%c0_3, %c0_4] : memref<1x512xf32, #tpu.memory_space<vmem>>, vector<1x512xf32>
    %c0_5 = arith.constant 0 : index
    %c0_6 = arith.constant 0 : index
    %3 = vector.load %arg3[%c0_5, %c0_6] : memref<128x512xbf16, #tpu.memory_space<vmem>>, vector<128x512xbf16>
    %c0_7 = arith.constant 0 : index
    %c0_8 = arith.constant 0 : index
    %4 = vector.load %arg4[%c0_7, %c0_8] : memref<128x512xbf16, #tpu.memory_space<vmem>>, vector<128x512xbf16>
    %c0_9 = arith.constant 0 : index
    %c0_10 = arith.constant 0 : index
    %5 = vector.load %arg5[%c0_9, %c0_10] : memref<1x512xf32, #tpu.memory_space<vmem>>, vector<1x512xf32>
    %c0_11 = arith.constant 0 : index
    %c0_12 = arith.constant 0 : index
    %6 = vector.load %arg6[%c0_11, %c0_12] : memref<128x512xbf16, #tpu.memory_space<vmem>>, vector<128x512xbf16>
    %c0_13 = arith.constant 0 : index
    %c0_14 = arith.constant 0 : index
    %7 = vector.load %arg7[%c0_13, %c0_14] : memref<128x64xf32, #tpu.memory_space<vmem>>, vector<128x64xf32>
    %c0_15 = arith.constant 0 : index
    %c0_16 = arith.constant 0 : index
    %8 = vector.load %arg8[%c0_15, %c0_16] : memref<1x64xf32, #tpu.memory_space<vmem>>, vector<1x64xf32>
    %c0_17 = arith.constant 0 : index
    %c0_18 = arith.constant 0 : index
    %9 = vector.load %arg9[%c0_17, %c0_18] : memref<64x64xf32, #tpu.memory_space<vmem>>, vector<64x64xf32>
    %c0_19 = arith.constant 0 : index
    %c0_20 = arith.constant 0 : index
    %10 = vector.load %arg10[%c0_19, %c0_20] : memref<1x64xf32, #tpu.memory_space<vmem>>, vector<1x64xf32>
    %c0_21 = arith.constant 0 : index
    %c0_22 = arith.constant 0 : index
    %11 = vector.load %arg11[%c0_21, %c0_22] : memref<1x64xf32, #tpu.memory_space<vmem>>, vector<1x64xf32>
    %c0_23 = arith.constant 0 : index
    %c0_24 = arith.constant 0 : index
    %12 = vector.load %arg12[%c0_23, %c0_24] : memref<1x1xf32, #tpu.memory_space<vmem>>, vector<1x1xf32>
    %c0_25 = arith.constant 0 : index
    %c0_26 = arith.constant 0 : index
    %13 = vector.load %arg13[%c0_25, %c0_26] : memref<2x64xf32, #tpu.memory_space<vmem>>, vector<2x64xf32>
    %c0_27 = arith.constant 0 : index
    %c0_28 = arith.constant 0 : index
    %14 = vector.load %arg14[%c0_27, %c0_28] : memref<2x64xf32, #tpu.memory_space<vmem>>, vector<2x64xf32>
    %15 = tpu.iota {dimensions = array<i32: 1>} : vector<2x512xi32>
    %c0_i32 = arith.constant 0 : i32
    %16 = vector.broadcast %c0_i32 : i32 to vector<2x512xi32>
    %17 = arith.cmpi sge, %15, %16 : vector<2x512xi32>
    %c32_i32 = arith.constant 32 : i32
    %18 = vector.broadcast %c32_i32 : i32 to vector<2x512xi32>
    %19 = arith.cmpi slt, %15, %18 : vector<2x512xi32>
    %20 = arith.andi %17, %19 : vector<2x512xi1>
    %c64_i32 = arith.constant 64 : i32
    %21 = vector.broadcast %c64_i32 : i32 to vector<2x512xi32>
    %22 = arith.cmpi sge, %15, %21 : vector<2x512xi32>
    %c96_i32 = arith.constant 96 : i32
    %23 = vector.broadcast %c96_i32 : i32 to vector<2x512xi32>
    %24 = arith.cmpi slt, %15, %23 : vector<2x512xi32>
    %25 = arith.andi %22, %24 : vector<2x512xi1>
    %26 = arith.ori %20, %25 : vector<2x512xi1>
    %c128_i32 = arith.constant 128 : i32
    %27 = vector.broadcast %c128_i32 : i32 to vector<2x512xi32>
    %28 = arith.cmpi sge, %15, %27 : vector<2x512xi32>
    %c160_i32 = arith.constant 160 : i32
    %29 = vector.broadcast %c160_i32 : i32 to vector<2x512xi32>
    %30 = arith.cmpi slt, %15, %29 : vector<2x512xi32>
    %31 = arith.andi %28, %30 : vector<2x512xi1>
    %32 = arith.ori %26, %31 : vector<2x512xi1>
    %c192_i32 = arith.constant 192 : i32
    %33 = vector.broadcast %c192_i32 : i32 to vector<2x512xi32>
    %34 = arith.cmpi sge, %15, %33 : vector<2x512xi32>
    %c224_i32 = arith.constant 224 : i32
    %35 = vector.broadcast %c224_i32 : i32 to vector<2x512xi32>
    %36 = arith.cmpi slt, %15, %35 : vector<2x512xi32>
    %37 = arith.andi %34, %36 : vector<2x512xi1>
    %38 = arith.ori %32, %37 : vector<2x512xi1>
    %c256_i32 = arith.constant 256 : i32
    %39 = vector.broadcast %c256_i32 : i32 to vector<2x512xi32>
    %40 = arith.cmpi sge, %15, %39 : vector<2x512xi32>
    %c288_i32 = arith.constant 288 : i32
    %41 = vector.broadcast %c288_i32 : i32 to vector<2x512xi32>
    %42 = arith.cmpi slt, %15, %41 : vector<2x512xi32>
    %43 = arith.andi %40, %42 : vector<2x512xi1>
    %44 = arith.ori %38, %43 : vector<2x512xi1>
    %c320_i32 = arith.constant 320 : i32
    %45 = vector.broadcast %c320_i32 : i32 to vector<2x512xi32>
    %46 = arith.cmpi sge, %15, %45 : vector<2x512xi32>
    %c352_i32 = arith.constant 352 : i32
    %47 = vector.broadcast %c352_i32 : i32 to vector<2x512xi32>
    %48 = arith.cmpi slt, %15, %47 : vector<2x512xi32>
    %49 = arith.andi %46, %48 : vector<2x512xi1>
    %50 = arith.ori %44, %49 : vector<2x512xi1>
    %c384_i32 = arith.constant 384 : i32
    %51 = vector.broadcast %c384_i32 : i32 to vector<2x512xi32>
    %52 = arith.cmpi sge, %15, %51 : vector<2x512xi32>
    %c416_i32 = arith.constant 416 : i32
    %53 = vector.broadcast %c416_i32 : i32 to vector<2x512xi32>
    %54 = arith.cmpi slt, %15, %53 : vector<2x512xi32>
    %55 = arith.andi %52, %54 : vector<2x512xi1>
    %56 = arith.ori %50, %55 : vector<2x512xi1>
    %c448_i32 = arith.constant 448 : i32
    %57 = vector.broadcast %c448_i32 : i32 to vector<2x512xi32>
    %58 = arith.cmpi sge, %15, %57 : vector<2x512xi32>
    %c480_i32 = arith.constant 480 : i32
    %59 = vector.broadcast %c480_i32 : i32 to vector<2x512xi32>
    %60 = arith.cmpi slt, %15, %59 : vector<2x512xi32>
    %61 = arith.andi %58, %60 : vector<2x512xi1>
    %62 = arith.ori %56, %61 : vector<2x512xi1>
    %63 = tpu.iota {dimensions = array<i32: 1>} : vector<2x128xi32>
    %c0_i32_29 = arith.constant 0 : i32
    %64 = vector.broadcast %c0_i32_29 : i32 to vector<2x128xi32>
    %65 = arith.cmpi sge, %63, %64 : vector<2x128xi32>
    %c32_i32_30 = arith.constant 32 : i32
    %66 = vector.broadcast %c32_i32_30 : i32 to vector<2x128xi32>
    %67 = arith.cmpi slt, %63, %66 : vector<2x128xi32>
    %68 = arith.andi %65, %67 : vector<2x128xi1>
    %c64_i32_31 = arith.constant 64 : i32
    %69 = vector.broadcast %c64_i32_31 : i32 to vector<2x128xi32>
    %70 = arith.cmpi sge, %63, %69 : vector<2x128xi32>
    %c96_i32_32 = arith.constant 96 : i32
    %71 = vector.broadcast %c96_i32_32 : i32 to vector<2x128xi32>
    %72 = arith.cmpi slt, %63, %71 : vector<2x128xi32>
    %73 = arith.andi %70, %72 : vector<2x128xi1>
    %74 = arith.ori %68, %73 : vector<2x128xi1>
    %cst = arith.constant dense<0.000000e+00> : vector<16x512xf32>
    %75 = tpu.matmul %0, %1, %cst {dimension_numbers = #tpu.dot_dimension_numbers<[1], [0], [0], [1], [0, 0, 1, 1], [], []>} : vector<16x5xbf16>, vector<5x512xbf16>, vector<16x512xf32> -> vector<16x512xf32>
    %76 = vector.broadcast %2 : vector<1x512xf32> to vector<16x512xf32>
    %77 = arith.addf %75, %76 : vector<16x512xf32>
    %cst_33 = arith.constant 0.000000e+00 : f32
    %78 = vector.broadcast %cst_33 : f32 to vector<2x128xf32>
    %cst_34 = arith.constant 0.000000e+00 : f32
    %79 = vector.broadcast %cst_34 : f32 to vector<2x128xf32>
    %80 = vector.extract_strided_slice %77 {offsets = [0, 0], sizes = [2, 512], strides = [1, 1]} : vector<16x512xf32> to vector<2x512xf32>
    %81 = vector.extract_strided_slice %77 {offsets = [14, 0], sizes = [2, 512], strides = [1, 1]} : vector<16x512xf32> to vector<2x512xf32>
    %82 = arith.select %62, %80, %81 : vector<2x512xi1>, vector<2x512xf32>
    %83 = arith.truncf %78 : vector<2x128xf32> to vector<2x128xbf16>
    %cst_35 = arith.constant dense<0.000000e+00> : vector<2x512xf32>
    %84 = tpu.matmul %83, %3, %cst_35 {dimension_numbers = #tpu.dot_dimension_numbers<[1], [0], [0], [1], [0, 0, 1, 1], [], []>} : vector<2x128xbf16>, vector<128x512xbf16>, vector<2x512xf32> -> vector<2x512xf32>
    %85 = arith.addf %82, %84 : vector<2x512xf32>
    %86 = arith.negf %85 : vector<2x512xf32>
    %87 = math.exp %86 : vector<2x512xf32>
    %cst_36 = arith.constant 1.000000e+00 : f32
    %88 = vector.broadcast %cst_36 : f32 to vector<2x512xf32>
    %89 = arith.addf %88, %87 : vector<2x512xf32>
    %90 = arith.divf %88, %89 : vector<2x512xf32>
    %91 = vector.extract_strided_slice %90 {offsets = [0, 0], sizes = [2, 128], strides = [1, 1]} : vector<2x512xf32> to vector<2x128xf32>
    %92 = vector.extract_strided_slice %90 {offsets = [0, 128], sizes = [2, 128], strides = [1, 1]} : vector<2x512xf32> to vector<2x128xf32>
    %93 = vector.extract_strided_slice %90 {offsets = [0, 256], sizes = [2, 128], strides = [1, 1]} : vector<2x512xf32> to vector<2x128xf32>
    %cst_37 = arith.constant 2.000000e+00 : f32
    %94 = vector.broadcast %cst_37 : f32 to vector<2x128xf32>
    %95 = arith.mulf %94, %93 : vector<2x128xf32>
    %cst_38 = arith.constant 1.000000e+00 : f32
    %96 = vector.broadcast %cst_38 : f32 to vector<2x128xf32>
    %97 = arith.subf %95, %96 : vector<2x128xf32>
    %98 = vector.extract_strided_slice %90 {offsets = [0, 384], sizes = [2, 128], strides = [1, 1]} : vector<2x512xf32> to vector<2x128xf32>
    %99 = arith.mulf %92, %79 : vector<2x128xf32>
    %100 = arith.mulf %91, %97 : vector<2x128xf32>
    %101 = arith.addf %99, %100 : vector<2x128xf32>
    %102 = math.tanh %101 : vector<2x128xf32>
    %103 = arith.mulf %98, %102 : vector<2x128xf32>
    %104 = vector.extract_strided_slice %77 {offsets = [2, 0], sizes = [2, 512], strides = [1, 1]} : vector<16x512xf32> to vector<2x512xf32>
    %105 = vector.extract_strided_slice %77 {offsets = [12, 0], sizes = [2, 512], strides = [1, 1]} : vector<16x512xf32> to vector<2x512xf32>
    %106 = arith.select %62, %104, %105 : vector<2x512xi1>, vector<2x512xf32>
    %107 = arith.truncf %103 : vector<2x128xf32> to vector<2x128xbf16>
    %cst_39 = arith.constant dense<0.000000e+00> : vector<2x512xf32>
    %108 = tpu.matmul %107, %3, %cst_39 {dimension_numbers = #tpu.dot_dimension_numbers<[1], [0], [0], [1], [0, 0, 1, 1], [], []>} : vector<2x128xbf16>, vector<128x512xbf16>, vector<2x512xf32> -> vector<2x512xf32>
    %109 = arith.addf %106, %108 : vector<2x512xf32>
    %110 = arith.negf %109 : vector<2x512xf32>
    %111 = math.exp %110 : vector<2x512xf32>
    %cst_40 = arith.constant 1.000000e+00 : f32
    %112 = vector.broadcast %cst_40 : f32 to vector<2x512xf32>
    %113 = arith.addf %112, %111 : vector<2x512xf32>
    %114 = arith.divf %112, %113 : vector<2x512xf32>
    %115 = vector.extract_strided_slice %114 {offsets = [0, 0], sizes = [2, 128], strides = [1, 1]} : vector<2x512xf32> to vector<2x128xf32>
    %116 = vector.extract_strided_slice %114 {offsets = [0, 128], sizes = [2, 128], strides = [1, 1]} : vector<2x512xf32> to vector<2x128xf32>
    %117 = vector.extract_strided_slice %114 {offsets = [0, 256], sizes = [2, 128], strides = [1, 1]} : vector<2x512xf32> to vector<2x128xf32>
    %cst_41 = arith.constant 2.000000e+00 : f32
    %118 = vector.broadcast %cst_41 : f32 to vector<2x128xf32>
    %119 = arith.mulf %118, %117 : vector<2x128xf32>
    %cst_42 = arith.constant 1.000000e+00 : f32
    %120 = vector.broadcast %cst_42 : f32 to vector<2x128xf32>
    %121 = arith.subf %119, %120 : vector<2x128xf32>
    %122 = vector.extract_strided_slice %114 {offsets = [0, 384], sizes = [2, 128], strides = [1, 1]} : vector<2x512xf32> to vector<2x128xf32>
    %123 = arith.mulf %116, %101 : vector<2x128xf32>
    %124 = arith.mulf %115, %121 : vector<2x128xf32>
    %125 = arith.addf %123, %124 : vector<2x128xf32>
    %126 = math.tanh %125 : vector<2x128xf32>
    %127 = arith.mulf %122, %126 : vector<2x128xf32>
    %128 = vector.extract_strided_slice %77 {offsets = [4, 0], sizes = [2, 512], strides = [1, 1]} : vector<16x512xf32> to vector<2x512xf32>
    %129 = vector.extract_strided_slice %77 {offsets = [10, 0], sizes = [2, 512], strides = [1, 1]} : vector<16x512xf32> to vector<2x512xf32>
    %130 = arith.select %62, %128, %129 : vector<2x512xi1>, vector<2x512xf32>
    %131 = arith.truncf %127 : vector<2x128xf32> to vector<2x128xbf16>
    %cst_43 = arith.constant dense<0.000000e+00> : vector<2x512xf32>
    %132 = tpu.matmul %131, %3, %cst_43 {dimension_numbers = #tpu.dot_dimension_numbers<[1], [0], [0], [1], [0, 0, 1, 1], [], []>} : vector<2x128xbf16>, vector<128x512xbf16>, vector<2x512xf32> -> vector<2x512xf32>
    %133 = arith.addf %130, %132 : vector<2x512xf32>
    %134 = arith.negf %133 : vector<2x512xf32>
    %135 = math.exp %134 : vector<2x512xf32>
    %cst_44 = arith.constant 1.000000e+00 : f32
    %136 = vector.broadcast %cst_44 : f32 to vector<2x512xf32>
    %137 = arith.addf %136, %135 : vector<2x512xf32>
    %138 = arith.divf %136, %137 : vector<2x512xf32>
    %139 = vector.extract_strided_slice %138 {offsets = [0, 0], sizes = [2, 128], strides = [1, 1]} : vector<2x512xf32> to vector<2x128xf32>
    %140 = vector.extract_strided_slice %138 {offsets = [0, 128], sizes = [2, 128], strides = [1, 1]} : vector<2x512xf32> to vector<2x128xf32>
    %141 = vector.extract_strided_slice %138 {offsets = [0, 256], sizes = [2, 128], strides = [1, 1]} : vector<2x512xf32> to vector<2x128xf32>
    %cst_45 = arith.constant 2.000000e+00 : f32
    %142 = vector.broadcast %cst_45 : f32 to vector<2x128xf32>
    %143 = arith.mulf %142, %141 : vector<2x128xf32>
    %cst_46 = arith.constant 1.000000e+00 : f32
    %144 = vector.broadcast %cst_46 : f32 to vector<2x128xf32>
    %145 = arith.subf %143, %144 : vector<2x128xf32>
    %146 = vector.extract_strided_slice %138 {offsets = [0, 384], sizes = [2, 128], strides = [1, 1]} : vector<2x512xf32> to vector<2x128xf32>
    %147 = arith.mulf %140, %125 : vector<2x128xf32>
    %148 = arith.mulf %139, %145 : vector<2x128xf32>
    %149 = arith.addf %147, %148 : vector<2x128xf32>
    %150 = math.tanh %149 : vector<2x128xf32>
    %151 = arith.mulf %146, %150 : vector<2x128xf32>
    %152 = vector.extract_strided_slice %77 {offsets = [6, 0], sizes = [2, 512], strides = [1, 1]} : vector<16x512xf32> to vector<2x512xf32>
    %153 = vector.extract_strided_slice %77 {offsets = [8, 0], sizes = [2, 512], strides = [1, 1]} : vector<16x512xf32> to vector<2x512xf32>
    %154 = arith.select %62, %152, %153 : vector<2x512xi1>, vector<2x512xf32>
    %155 = arith.truncf %151 : vector<2x128xf32> to vector<2x128xbf16>
    %cst_47 = arith.constant dense<0.000000e+00> : vector<2x512xf32>
    %156 = tpu.matmul %155, %3, %cst_47 {dimension_numbers = #tpu.dot_dimension_numbers<[1], [0], [0], [1], [0, 0, 1, 1], [], []>} : vector<2x128xbf16>, vector<128x512xbf16>, vector<2x512xf32> -> vector<2x512xf32>
    %157 = arith.addf %154, %156 : vector<2x512xf32>
    %158 = arith.negf %157 : vector<2x512xf32>
    %159 = math.exp %158 : vector<2x512xf32>
    %cst_48 = arith.constant 1.000000e+00 : f32
    %160 = vector.broadcast %cst_48 : f32 to vector<2x512xf32>
    %161 = arith.addf %160, %159 : vector<2x512xf32>
    %162 = arith.divf %160, %161 : vector<2x512xf32>
    %163 = vector.extract_strided_slice %162 {offsets = [0, 0], sizes = [2, 128], strides = [1, 1]} : vector<2x512xf32> to vector<2x128xf32>
    %164 = vector.extract_strided_slice %162 {offsets = [0, 128], sizes = [2, 128], strides = [1, 1]} : vector<2x512xf32> to vector<2x128xf32>
    %165 = vector.extract_strided_slice %162 {offsets = [0, 256], sizes = [2, 128], strides = [1, 1]} : vector<2x512xf32> to vector<2x128xf32>
    %cst_49 = arith.constant 2.000000e+00 : f32
    %166 = vector.broadcast %cst_49 : f32 to vector<2x128xf32>
    %167 = arith.mulf %166, %165 : vector<2x128xf32>
    %cst_50 = arith.constant 1.000000e+00 : f32
    %168 = vector.broadcast %cst_50 : f32 to vector<2x128xf32>
    %169 = arith.subf %167, %168 : vector<2x128xf32>
    %170 = vector.extract_strided_slice %162 {offsets = [0, 384], sizes = [2, 128], strides = [1, 1]} : vector<2x512xf32> to vector<2x128xf32>
    %171 = arith.mulf %164, %149 : vector<2x128xf32>
    %172 = arith.mulf %163, %169 : vector<2x128xf32>
    %173 = arith.addf %171, %172 : vector<2x128xf32>
    %174 = math.tanh %173 : vector<2x128xf32>
    %175 = arith.mulf %170, %174 : vector<2x128xf32>
    %176 = vector.extract_strided_slice %77 {offsets = [8, 0], sizes = [2, 512], strides = [1, 1]} : vector<16x512xf32> to vector<2x512xf32>
    %177 = vector.extract_strided_slice %77 {offsets = [6, 0], sizes = [2, 512], strides = [1, 1]} : vector<16x512xf32> to vector<2x512xf32>
    %178 = arith.select %62, %176, %177 : vector<2x512xi1>, vector<2x512xf32>
    %179 = arith.truncf %175 : vector<2x128xf32> to vector<2x128xbf16>
    %cst_51 = arith.constant dense<0.000000e+00> : vector<2x512xf32>
    %180 = tpu.matmul %179, %3, %cst_51 {dimension_numbers = #tpu.dot_dimension_numbers<[1], [0], [0], [1], [0, 0, 1, 1], [], []>} : vector<2x128xbf16>, vector<128x512xbf16>, vector<2x512xf32> -> vector<2x512xf32>
    %181 = arith.addf %178, %180 : vector<2x512xf32>
    %182 = arith.negf %181 : vector<2x512xf32>
    %183 = math.exp %182 : vector<2x512xf32>
    %cst_52 = arith.constant 1.000000e+00 : f32
    %184 = vector.broadcast %cst_52 : f32 to vector<2x512xf32>
    %185 = arith.addf %184, %183 : vector<2x512xf32>
    %186 = arith.divf %184, %185 : vector<2x512xf32>
    %187 = vector.extract_strided_slice %186 {offsets = [0, 0], sizes = [2, 128], strides = [1, 1]} : vector<2x512xf32> to vector<2x128xf32>
    %188 = vector.extract_strided_slice %186 {offsets = [0, 128], sizes = [2, 128], strides = [1, 1]} : vector<2x512xf32> to vector<2x128xf32>
    %189 = vector.extract_strided_slice %186 {offsets = [0, 256], sizes = [2, 128], strides = [1, 1]} : vector<2x512xf32> to vector<2x128xf32>
    %cst_53 = arith.constant 2.000000e+00 : f32
    %190 = vector.broadcast %cst_53 : f32 to vector<2x128xf32>
    %191 = arith.mulf %190, %189 : vector<2x128xf32>
    %cst_54 = arith.constant 1.000000e+00 : f32
    %192 = vector.broadcast %cst_54 : f32 to vector<2x128xf32>
    %193 = arith.subf %191, %192 : vector<2x128xf32>
    %194 = vector.extract_strided_slice %186 {offsets = [0, 384], sizes = [2, 128], strides = [1, 1]} : vector<2x512xf32> to vector<2x128xf32>
    %195 = arith.mulf %188, %173 : vector<2x128xf32>
    %196 = arith.mulf %187, %193 : vector<2x128xf32>
    %197 = arith.addf %195, %196 : vector<2x128xf32>
    %198 = math.tanh %197 : vector<2x128xf32>
    %199 = arith.mulf %194, %198 : vector<2x128xf32>
    %200 = vector.extract_strided_slice %77 {offsets = [10, 0], sizes = [2, 512], strides = [1, 1]} : vector<16x512xf32> to vector<2x512xf32>
    %201 = vector.extract_strided_slice %77 {offsets = [4, 0], sizes = [2, 512], strides = [1, 1]} : vector<16x512xf32> to vector<2x512xf32>
    %202 = arith.select %62, %200, %201 : vector<2x512xi1>, vector<2x512xf32>
    %203 = arith.truncf %199 : vector<2x128xf32> to vector<2x128xbf16>
    %cst_55 = arith.constant dense<0.000000e+00> : vector<2x512xf32>
    %204 = tpu.matmul %203, %3, %cst_55 {dimension_numbers = #tpu.dot_dimension_numbers<[1], [0], [0], [1], [0, 0, 1, 1], [], []>} : vector<2x128xbf16>, vector<128x512xbf16>, vector<2x512xf32> -> vector<2x512xf32>
    %205 = arith.addf %202, %204 : vector<2x512xf32>
    %206 = arith.negf %205 : vector<2x512xf32>
    %207 = math.exp %206 : vector<2x512xf32>
    %cst_56 = arith.constant 1.000000e+00 : f32
    %208 = vector.broadcast %cst_56 : f32 to vector<2x512xf32>
    %209 = arith.addf %208, %207 : vector<2x512xf32>
    %210 = arith.divf %208, %209 : vector<2x512xf32>
    %211 = vector.extract_strided_slice %210 {offsets = [0, 0], sizes = [2, 128], strides = [1, 1]} : vector<2x512xf32> to vector<2x128xf32>
    %212 = vector.extract_strided_slice %210 {offsets = [0, 128], sizes = [2, 128], strides = [1, 1]} : vector<2x512xf32> to vector<2x128xf32>
    %213 = vector.extract_strided_slice %210 {offsets = [0, 256], sizes = [2, 128], strides = [1, 1]} : vector<2x512xf32> to vector<2x128xf32>
    %cst_57 = arith.constant 2.000000e+00 : f32
    %214 = vector.broadcast %cst_57 : f32 to vector<2x128xf32>
    %215 = arith.mulf %214, %213 : vector<2x128xf32>
    %cst_58 = arith.constant 1.000000e+00 : f32
    %216 = vector.broadcast %cst_58 : f32 to vector<2x128xf32>
    %217 = arith.subf %215, %216 : vector<2x128xf32>
    %218 = vector.extract_strided_slice %210 {offsets = [0, 384], sizes = [2, 128], strides = [1, 1]} : vector<2x512xf32> to vector<2x128xf32>
    %219 = arith.mulf %212, %197 : vector<2x128xf32>
    %220 = arith.mulf %211, %217 : vector<2x128xf32>
    %221 = arith.addf %219, %220 : vector<2x128xf32>
    %222 = math.tanh %221 : vector<2x128xf32>
    %223 = arith.mulf %218, %222 : vector<2x128xf32>
    %224 = vector.extract_strided_slice %77 {offsets = [12, 0], sizes = [2, 512], strides = [1, 1]} : vector<16x512xf32> to vector<2x512xf32>
    %225 = vector.extract_strided_slice %77 {offsets = [2, 0], sizes = [2, 512], strides = [1, 1]} : vector<16x512xf32> to vector<2x512xf32>
    %226 = arith.select %62, %224, %225 : vector<2x512xi1>, vector<2x512xf32>
    %227 = arith.truncf %223 : vector<2x128xf32> to vector<2x128xbf16>
    %cst_59 = arith.constant dense<0.000000e+00> : vector<2x512xf32>
    %228 = tpu.matmul %227, %3, %cst_59 {dimension_numbers = #tpu.dot_dimension_numbers<[1], [0], [0], [1], [0, 0, 1, 1], [], []>} : vector<2x128xbf16>, vector<128x512xbf16>, vector<2x512xf32> -> vector<2x512xf32>
    %229 = arith.addf %226, %228 : vector<2x512xf32>
    %230 = arith.negf %229 : vector<2x512xf32>
    %231 = math.exp %230 : vector<2x512xf32>
    %cst_60 = arith.constant 1.000000e+00 : f32
    %232 = vector.broadcast %cst_60 : f32 to vector<2x512xf32>
    %233 = arith.addf %232, %231 : vector<2x512xf32>
    %234 = arith.divf %232, %233 : vector<2x512xf32>
    %235 = vector.extract_strided_slice %234 {offsets = [0, 0], sizes = [2, 128], strides = [1, 1]} : vector<2x512xf32> to vector<2x128xf32>
    %236 = vector.extract_strided_slice %234 {offsets = [0, 128], sizes = [2, 128], strides = [1, 1]} : vector<2x512xf32> to vector<2x128xf32>
    %237 = vector.extract_strided_slice %234 {offsets = [0, 256], sizes = [2, 128], strides = [1, 1]} : vector<2x512xf32> to vector<2x128xf32>
    %cst_61 = arith.constant 2.000000e+00 : f32
    %238 = vector.broadcast %cst_61 : f32 to vector<2x128xf32>
    %239 = arith.mulf %238, %237 : vector<2x128xf32>
    %cst_62 = arith.constant 1.000000e+00 : f32
    %240 = vector.broadcast %cst_62 : f32 to vector<2x128xf32>
    %241 = arith.subf %239, %240 : vector<2x128xf32>
    %242 = vector.extract_strided_slice %234 {offsets = [0, 384], sizes = [2, 128], strides = [1, 1]} : vector<2x512xf32> to vector<2x128xf32>
    %243 = arith.mulf %236, %221 : vector<2x128xf32>
    %244 = arith.mulf %235, %241 : vector<2x128xf32>
    %245 = arith.addf %243, %244 : vector<2x128xf32>
    %246 = math.tanh %245 : vector<2x128xf32>
    %247 = arith.mulf %242, %246 : vector<2x128xf32>
    %248 = vector.extract_strided_slice %77 {offsets = [14, 0], sizes = [2, 512], strides = [1, 1]} : vector<16x512xf32> to vector<2x512xf32>
    %249 = vector.extract_strided_slice %77 {offsets = [0, 0], sizes = [2, 512], strides = [1, 1]} : vector<16x512xf32> to vector<2x512xf32>
    %250 = arith.select %62, %248, %249 : vector<2x512xi1>, vector<2x512xf32>
    %251 = arith.truncf %247 : vector<2x128xf32> to vector<2x128xbf16>
    %cst_63 = arith.constant dense<0.000000e+00> : vector<2x512xf32>
    %252 = tpu.matmul %251, %3, %cst_63 {dimension_numbers = #tpu.dot_dimension_numbers<[1], [0], [0], [1], [0, 0, 1, 1], [], []>} : vector<2x128xbf16>, vector<128x512xbf16>, vector<2x512xf32> -> vector<2x512xf32>
    %253 = arith.addf %250, %252 : vector<2x512xf32>
    %254 = arith.negf %253 : vector<2x512xf32>
    %255 = math.exp %254 : vector<2x512xf32>
    %cst_64 = arith.constant 1.000000e+00 : f32
    %256 = vector.broadcast %cst_64 : f32 to vector<2x512xf32>
    %257 = arith.addf %256, %255 : vector<2x512xf32>
    %258 = arith.divf %256, %257 : vector<2x512xf32>
    %259 = vector.extract_strided_slice %258 {offsets = [0, 0], sizes = [2, 128], strides = [1, 1]} : vector<2x512xf32> to vector<2x128xf32>
    %260 = vector.extract_strided_slice %258 {offsets = [0, 128], sizes = [2, 128], strides = [1, 1]} : vector<2x512xf32> to vector<2x128xf32>
    %261 = vector.extract_strided_slice %258 {offsets = [0, 256], sizes = [2, 128], strides = [1, 1]} : vector<2x512xf32> to vector<2x128xf32>
    %cst_65 = arith.constant 2.000000e+00 : f32
    %262 = vector.broadcast %cst_65 : f32 to vector<2x128xf32>
    %263 = arith.mulf %262, %261 : vector<2x128xf32>
    %cst_66 = arith.constant 1.000000e+00 : f32
    %264 = vector.broadcast %cst_66 : f32 to vector<2x128xf32>
    %265 = arith.subf %263, %264 : vector<2x128xf32>
    %266 = vector.extract_strided_slice %258 {offsets = [0, 384], sizes = [2, 128], strides = [1, 1]} : vector<2x512xf32> to vector<2x128xf32>
    %267 = arith.mulf %260, %245 : vector<2x128xf32>
    %268 = arith.mulf %259, %265 : vector<2x128xf32>
    %269 = arith.addf %267, %268 : vector<2x128xf32>
    %270 = math.tanh %269 : vector<2x128xf32>
    %271 = arith.mulf %266, %270 : vector<2x128xf32>
    %272 = arith.select %74, %103, %271 : vector<2x128xi1>, vector<2x128xf32>
    %273 = arith.select %74, %127, %247 : vector<2x128xi1>, vector<2x128xf32>
    %274 = arith.select %74, %151, %223 : vector<2x128xi1>, vector<2x128xf32>
    %275 = arith.select %74, %175, %199 : vector<2x128xi1>, vector<2x128xf32>
    %276 = arith.select %74, %199, %175 : vector<2x128xi1>, vector<2x128xf32>
    %277 = arith.select %74, %223, %151 : vector<2x128xi1>, vector<2x128xf32>
    %278 = arith.select %74, %247, %127 : vector<2x128xi1>, vector<2x128xf32>
    %279 = arith.select %74, %271, %103 : vector<2x128xi1>, vector<2x128xf32>
    %280 = tpu.concatenate %272, %273, %274, %275, %276, %277, %278, %279 in 0 : vector<2x128xf32>, vector<2x128xf32>, vector<2x128xf32>, vector<2x128xf32>, vector<2x128xf32>, vector<2x128xf32>, vector<2x128xf32>, vector<2x128xf32> -> vector<16x128xf32>
    %281 = arith.truncf %280 : vector<16x128xf32> to vector<16x128xbf16>
    %cst_67 = arith.constant dense<0.000000e+00> : vector<16x512xf32>
    %282 = tpu.matmul %281, %4, %cst_67 {dimension_numbers = #tpu.dot_dimension_numbers<[1], [0], [0], [1], [0, 0, 1, 1], [], []>} : vector<16x128xbf16>, vector<128x512xbf16>, vector<16x512xf32> -> vector<16x512xf32>
    %283 = vector.broadcast %5 : vector<1x512xf32> to vector<16x512xf32>
    %284 = arith.addf %282, %283 : vector<16x512xf32>
    %cst_68 = arith.constant 0.000000e+00 : f32
    %285 = vector.broadcast %cst_68 : f32 to vector<2x128xf32>
    %cst_69 = arith.constant 0.000000e+00 : f32
    %286 = vector.broadcast %cst_69 : f32 to vector<2x128xf32>
    %287 = vector.extract_strided_slice %284 {offsets = [0, 0], sizes = [2, 512], strides = [1, 1]} : vector<16x512xf32> to vector<2x512xf32>
    %288 = vector.extract_strided_slice %284 {offsets = [14, 0], sizes = [2, 512], strides = [1, 1]} : vector<16x512xf32> to vector<2x512xf32>
    %289 = arith.select %62, %287, %288 : vector<2x512xi1>, vector<2x512xf32>
    %290 = arith.truncf %285 : vector<2x128xf32> to vector<2x128xbf16>
    %cst_70 = arith.constant dense<0.000000e+00> : vector<2x512xf32>
    %291 = tpu.matmul %290, %6, %cst_70 {dimension_numbers = #tpu.dot_dimension_numbers<[1], [0], [0], [1], [0, 0, 1, 1], [], []>} : vector<2x128xbf16>, vector<128x512xbf16>, vector<2x512xf32> -> vector<2x512xf32>
    %292 = arith.addf %289, %291 : vector<2x512xf32>
    %293 = arith.negf %292 : vector<2x512xf32>
    %294 = math.exp %293 : vector<2x512xf32>
    %cst_71 = arith.constant 1.000000e+00 : f32
    %295 = vector.broadcast %cst_71 : f32 to vector<2x512xf32>
    %296 = arith.addf %295, %294 : vector<2x512xf32>
    %297 = arith.divf %295, %296 : vector<2x512xf32>
    %298 = vector.extract_strided_slice %297 {offsets = [0, 0], sizes = [2, 128], strides = [1, 1]} : vector<2x512xf32> to vector<2x128xf32>
    %299 = vector.extract_strided_slice %297 {offsets = [0, 128], sizes = [2, 128], strides = [1, 1]} : vector<2x512xf32> to vector<2x128xf32>
    %300 = vector.extract_strided_slice %297 {offsets = [0, 256], sizes = [2, 128], strides = [1, 1]} : vector<2x512xf32> to vector<2x128xf32>
    %cst_72 = arith.constant 2.000000e+00 : f32
    %301 = vector.broadcast %cst_72 : f32 to vector<2x128xf32>
    %302 = arith.mulf %301, %300 : vector<2x128xf32>
    %cst_73 = arith.constant 1.000000e+00 : f32
    %303 = vector.broadcast %cst_73 : f32 to vector<2x128xf32>
    %304 = arith.subf %302, %303 : vector<2x128xf32>
    %305 = vector.extract_strided_slice %297 {offsets = [0, 384], sizes = [2, 128], strides = [1, 1]} : vector<2x512xf32> to vector<2x128xf32>
    %306 = arith.mulf %299, %286 : vector<2x128xf32>
    %307 = arith.mulf %298, %304 : vector<2x128xf32>
    %308 = arith.addf %306, %307 : vector<2x128xf32>
    %309 = math.tanh %308 : vector<2x128xf32>
    %310 = arith.mulf %305, %309 : vector<2x128xf32>
    %311 = vector.extract_strided_slice %284 {offsets = [2, 0], sizes = [2, 512], strides = [1, 1]} : vector<16x512xf32> to vector<2x512xf32>
    %312 = vector.extract_strided_slice %284 {offsets = [12, 0], sizes = [2, 512], strides = [1, 1]} : vector<16x512xf32> to vector<2x512xf32>
    %313 = arith.select %62, %311, %312 : vector<2x512xi1>, vector<2x512xf32>
    %314 = arith.truncf %310 : vector<2x128xf32> to vector<2x128xbf16>
    %cst_74 = arith.constant dense<0.000000e+00> : vector<2x512xf32>
    %315 = tpu.matmul %314, %6, %cst_74 {dimension_numbers = #tpu.dot_dimension_numbers<[1], [0], [0], [1], [0, 0, 1, 1], [], []>} : vector<2x128xbf16>, vector<128x512xbf16>, vector<2x512xf32> -> vector<2x512xf32>
    %316 = arith.addf %313, %315 : vector<2x512xf32>
    %317 = arith.negf %316 : vector<2x512xf32>
    %318 = math.exp %317 : vector<2x512xf32>
    %cst_75 = arith.constant 1.000000e+00 : f32
    %319 = vector.broadcast %cst_75 : f32 to vector<2x512xf32>
    %320 = arith.addf %319, %318 : vector<2x512xf32>
    %321 = arith.divf %319, %320 : vector<2x512xf32>
    %322 = vector.extract_strided_slice %321 {offsets = [0, 0], sizes = [2, 128], strides = [1, 1]} : vector<2x512xf32> to vector<2x128xf32>
    %323 = vector.extract_strided_slice %321 {offsets = [0, 128], sizes = [2, 128], strides = [1, 1]} : vector<2x512xf32> to vector<2x128xf32>
    %324 = vector.extract_strided_slice %321 {offsets = [0, 256], sizes = [2, 128], strides = [1, 1]} : vector<2x512xf32> to vector<2x128xf32>
    %cst_76 = arith.constant 2.000000e+00 : f32
    %325 = vector.broadcast %cst_76 : f32 to vector<2x128xf32>
    %326 = arith.mulf %325, %324 : vector<2x128xf32>
    %cst_77 = arith.constant 1.000000e+00 : f32
    %327 = vector.broadcast %cst_77 : f32 to vector<2x128xf32>
    %328 = arith.subf %326, %327 : vector<2x128xf32>
    %329 = vector.extract_strided_slice %321 {offsets = [0, 384], sizes = [2, 128], strides = [1, 1]} : vector<2x512xf32> to vector<2x128xf32>
    %330 = arith.mulf %323, %308 : vector<2x128xf32>
    %331 = arith.mulf %322, %328 : vector<2x128xf32>
    %332 = arith.addf %330, %331 : vector<2x128xf32>
    %333 = math.tanh %332 : vector<2x128xf32>
    %334 = arith.mulf %329, %333 : vector<2x128xf32>
    %335 = vector.extract_strided_slice %284 {offsets = [4, 0], sizes = [2, 512], strides = [1, 1]} : vector<16x512xf32> to vector<2x512xf32>
    %336 = vector.extract_strided_slice %284 {offsets = [10, 0], sizes = [2, 512], strides = [1, 1]} : vector<16x512xf32> to vector<2x512xf32>
    %337 = arith.select %62, %335, %336 : vector<2x512xi1>, vector<2x512xf32>
    %338 = arith.truncf %334 : vector<2x128xf32> to vector<2x128xbf16>
    %cst_78 = arith.constant dense<0.000000e+00> : vector<2x512xf32>
    %339 = tpu.matmul %338, %6, %cst_78 {dimension_numbers = #tpu.dot_dimension_numbers<[1], [0], [0], [1], [0, 0, 1, 1], [], []>} : vector<2x128xbf16>, vector<128x512xbf16>, vector<2x512xf32> -> vector<2x512xf32>
    %340 = arith.addf %337, %339 : vector<2x512xf32>
    %341 = arith.negf %340 : vector<2x512xf32>
    %342 = math.exp %341 : vector<2x512xf32>
    %cst_79 = arith.constant 1.000000e+00 : f32
    %343 = vector.broadcast %cst_79 : f32 to vector<2x512xf32>
    %344 = arith.addf %343, %342 : vector<2x512xf32>
    %345 = arith.divf %343, %344 : vector<2x512xf32>
    %346 = vector.extract_strided_slice %345 {offsets = [0, 0], sizes = [2, 128], strides = [1, 1]} : vector<2x512xf32> to vector<2x128xf32>
    %347 = vector.extract_strided_slice %345 {offsets = [0, 128], sizes = [2, 128], strides = [1, 1]} : vector<2x512xf32> to vector<2x128xf32>
    %348 = vector.extract_strided_slice %345 {offsets = [0, 256], sizes = [2, 128], strides = [1, 1]} : vector<2x512xf32> to vector<2x128xf32>
    %cst_80 = arith.constant 2.000000e+00 : f32
    %349 = vector.broadcast %cst_80 : f32 to vector<2x128xf32>
    %350 = arith.mulf %349, %348 : vector<2x128xf32>
    %cst_81 = arith.constant 1.000000e+00 : f32
    %351 = vector.broadcast %cst_81 : f32 to vector<2x128xf32>
    %352 = arith.subf %350, %351 : vector<2x128xf32>
    %353 = vector.extract_strided_slice %345 {offsets = [0, 384], sizes = [2, 128], strides = [1, 1]} : vector<2x512xf32> to vector<2x128xf32>
    %354 = arith.mulf %347, %332 : vector<2x128xf32>
    %355 = arith.mulf %346, %352 : vector<2x128xf32>
    %356 = arith.addf %354, %355 : vector<2x128xf32>
    %357 = math.tanh %356 : vector<2x128xf32>
    %358 = arith.mulf %353, %357 : vector<2x128xf32>
    %359 = vector.extract_strided_slice %284 {offsets = [6, 0], sizes = [2, 512], strides = [1, 1]} : vector<16x512xf32> to vector<2x512xf32>
    %360 = vector.extract_strided_slice %284 {offsets = [8, 0], sizes = [2, 512], strides = [1, 1]} : vector<16x512xf32> to vector<2x512xf32>
    %361 = arith.select %62, %359, %360 : vector<2x512xi1>, vector<2x512xf32>
    %362 = arith.truncf %358 : vector<2x128xf32> to vector<2x128xbf16>
    %cst_82 = arith.constant dense<0.000000e+00> : vector<2x512xf32>
    %363 = tpu.matmul %362, %6, %cst_82 {dimension_numbers = #tpu.dot_dimension_numbers<[1], [0], [0], [1], [0, 0, 1, 1], [], []>} : vector<2x128xbf16>, vector<128x512xbf16>, vector<2x512xf32> -> vector<2x512xf32>
    %364 = arith.addf %361, %363 : vector<2x512xf32>
    %365 = arith.negf %364 : vector<2x512xf32>
    %366 = math.exp %365 : vector<2x512xf32>
    %cst_83 = arith.constant 1.000000e+00 : f32
    %367 = vector.broadcast %cst_83 : f32 to vector<2x512xf32>
    %368 = arith.addf %367, %366 : vector<2x512xf32>
    %369 = arith.divf %367, %368 : vector<2x512xf32>
    %370 = vector.extract_strided_slice %369 {offsets = [0, 0], sizes = [2, 128], strides = [1, 1]} : vector<2x512xf32> to vector<2x128xf32>
    %371 = vector.extract_strided_slice %369 {offsets = [0, 128], sizes = [2, 128], strides = [1, 1]} : vector<2x512xf32> to vector<2x128xf32>
    %372 = vector.extract_strided_slice %369 {offsets = [0, 256], sizes = [2, 128], strides = [1, 1]} : vector<2x512xf32> to vector<2x128xf32>
    %cst_84 = arith.constant 2.000000e+00 : f32
    %373 = vector.broadcast %cst_84 : f32 to vector<2x128xf32>
    %374 = arith.mulf %373, %372 : vector<2x128xf32>
    %cst_85 = arith.constant 1.000000e+00 : f32
    %375 = vector.broadcast %cst_85 : f32 to vector<2x128xf32>
    %376 = arith.subf %374, %375 : vector<2x128xf32>
    %377 = vector.extract_strided_slice %369 {offsets = [0, 384], sizes = [2, 128], strides = [1, 1]} : vector<2x512xf32> to vector<2x128xf32>
    %378 = arith.mulf %371, %356 : vector<2x128xf32>
    %379 = arith.mulf %370, %376 : vector<2x128xf32>
    %380 = arith.addf %378, %379 : vector<2x128xf32>
    %381 = math.tanh %380 : vector<2x128xf32>
    %382 = arith.mulf %377, %381 : vector<2x128xf32>
    %383 = vector.extract_strided_slice %284 {offsets = [8, 0], sizes = [2, 512], strides = [1, 1]} : vector<16x512xf32> to vector<2x512xf32>
    %384 = vector.extract_strided_slice %284 {offsets = [6, 0], sizes = [2, 512], strides = [1, 1]} : vector<16x512xf32> to vector<2x512xf32>
    %385 = arith.select %62, %383, %384 : vector<2x512xi1>, vector<2x512xf32>
    %386 = arith.truncf %382 : vector<2x128xf32> to vector<2x128xbf16>
    %cst_86 = arith.constant dense<0.000000e+00> : vector<2x512xf32>
    %387 = tpu.matmul %386, %6, %cst_86 {dimension_numbers = #tpu.dot_dimension_numbers<[1], [0], [0], [1], [0, 0, 1, 1], [], []>} : vector<2x128xbf16>, vector<128x512xbf16>, vector<2x512xf32> -> vector<2x512xf32>
    %388 = arith.addf %385, %387 : vector<2x512xf32>
    %389 = arith.negf %388 : vector<2x512xf32>
    %390 = math.exp %389 : vector<2x512xf32>
    %cst_87 = arith.constant 1.000000e+00 : f32
    %391 = vector.broadcast %cst_87 : f32 to vector<2x512xf32>
    %392 = arith.addf %391, %390 : vector<2x512xf32>
    %393 = arith.divf %391, %392 : vector<2x512xf32>
    %394 = vector.extract_strided_slice %393 {offsets = [0, 0], sizes = [2, 128], strides = [1, 1]} : vector<2x512xf32> to vector<2x128xf32>
    %395 = vector.extract_strided_slice %393 {offsets = [0, 128], sizes = [2, 128], strides = [1, 1]} : vector<2x512xf32> to vector<2x128xf32>
    %396 = vector.extract_strided_slice %393 {offsets = [0, 256], sizes = [2, 128], strides = [1, 1]} : vector<2x512xf32> to vector<2x128xf32>
    %cst_88 = arith.constant 2.000000e+00 : f32
    %397 = vector.broadcast %cst_88 : f32 to vector<2x128xf32>
    %398 = arith.mulf %397, %396 : vector<2x128xf32>
    %cst_89 = arith.constant 1.000000e+00 : f32
    %399 = vector.broadcast %cst_89 : f32 to vector<2x128xf32>
    %400 = arith.subf %398, %399 : vector<2x128xf32>
    %401 = vector.extract_strided_slice %393 {offsets = [0, 384], sizes = [2, 128], strides = [1, 1]} : vector<2x512xf32> to vector<2x128xf32>
    %402 = arith.mulf %395, %380 : vector<2x128xf32>
    %403 = arith.mulf %394, %400 : vector<2x128xf32>
    %404 = arith.addf %402, %403 : vector<2x128xf32>
    %405 = math.tanh %404 : vector<2x128xf32>
    %406 = arith.mulf %401, %405 : vector<2x128xf32>
    %407 = vector.extract_strided_slice %284 {offsets = [10, 0], sizes = [2, 512], strides = [1, 1]} : vector<16x512xf32> to vector<2x512xf32>
    %408 = vector.extract_strided_slice %284 {offsets = [4, 0], sizes = [2, 512], strides = [1, 1]} : vector<16x512xf32> to vector<2x512xf32>
    %409 = arith.select %62, %407, %408 : vector<2x512xi1>, vector<2x512xf32>
    %410 = arith.truncf %406 : vector<2x128xf32> to vector<2x128xbf16>
    %cst_90 = arith.constant dense<0.000000e+00> : vector<2x512xf32>
    %411 = tpu.matmul %410, %6, %cst_90 {dimension_numbers = #tpu.dot_dimension_numbers<[1], [0], [0], [1], [0, 0, 1, 1], [], []>} : vector<2x128xbf16>, vector<128x512xbf16>, vector<2x512xf32> -> vector<2x512xf32>
    %412 = arith.addf %409, %411 : vector<2x512xf32>
    %413 = arith.negf %412 : vector<2x512xf32>
    %414 = math.exp %413 : vector<2x512xf32>
    %cst_91 = arith.constant 1.000000e+00 : f32
    %415 = vector.broadcast %cst_91 : f32 to vector<2x512xf32>
    %416 = arith.addf %415, %414 : vector<2x512xf32>
    %417 = arith.divf %415, %416 : vector<2x512xf32>
    %418 = vector.extract_strided_slice %417 {offsets = [0, 0], sizes = [2, 128], strides = [1, 1]} : vector<2x512xf32> to vector<2x128xf32>
    %419 = vector.extract_strided_slice %417 {offsets = [0, 128], sizes = [2, 128], strides = [1, 1]} : vector<2x512xf32> to vector<2x128xf32>
    %420 = vector.extract_strided_slice %417 {offsets = [0, 256], sizes = [2, 128], strides = [1, 1]} : vector<2x512xf32> to vector<2x128xf32>
    %cst_92 = arith.constant 2.000000e+00 : f32
    %421 = vector.broadcast %cst_92 : f32 to vector<2x128xf32>
    %422 = arith.mulf %421, %420 : vector<2x128xf32>
    %cst_93 = arith.constant 1.000000e+00 : f32
    %423 = vector.broadcast %cst_93 : f32 to vector<2x128xf32>
    %424 = arith.subf %422, %423 : vector<2x128xf32>
    %425 = vector.extract_strided_slice %417 {offsets = [0, 384], sizes = [2, 128], strides = [1, 1]} : vector<2x512xf32> to vector<2x128xf32>
    %426 = arith.mulf %419, %404 : vector<2x128xf32>
    %427 = arith.mulf %418, %424 : vector<2x128xf32>
    %428 = arith.addf %426, %427 : vector<2x128xf32>
    %429 = math.tanh %428 : vector<2x128xf32>
    %430 = arith.mulf %425, %429 : vector<2x128xf32>
    %431 = vector.extract_strided_slice %284 {offsets = [12, 0], sizes = [2, 512], strides = [1, 1]} : vector<16x512xf32> to vector<2x512xf32>
    %432 = vector.extract_strided_slice %284 {offsets = [2, 0], sizes = [2, 512], strides = [1, 1]} : vector<16x512xf32> to vector<2x512xf32>
    %433 = arith.select %62, %431, %432 : vector<2x512xi1>, vector<2x512xf32>
    %434 = arith.truncf %430 : vector<2x128xf32> to vector<2x128xbf16>
    %cst_94 = arith.constant dense<0.000000e+00> : vector<2x512xf32>
    %435 = tpu.matmul %434, %6, %cst_94 {dimension_numbers = #tpu.dot_dimension_numbers<[1], [0], [0], [1], [0, 0, 1, 1], [], []>} : vector<2x128xbf16>, vector<128x512xbf16>, vector<2x512xf32> -> vector<2x512xf32>
    %436 = arith.addf %433, %435 : vector<2x512xf32>
    %437 = arith.negf %436 : vector<2x512xf32>
    %438 = math.exp %437 : vector<2x512xf32>
    %cst_95 = arith.constant 1.000000e+00 : f32
    %439 = vector.broadcast %cst_95 : f32 to vector<2x512xf32>
    %440 = arith.addf %439, %438 : vector<2x512xf32>
    %441 = arith.divf %439, %440 : vector<2x512xf32>
    %442 = vector.extract_strided_slice %441 {offsets = [0, 0], sizes = [2, 128], strides = [1, 1]} : vector<2x512xf32> to vector<2x128xf32>
    %443 = vector.extract_strided_slice %441 {offsets = [0, 128], sizes = [2, 128], strides = [1, 1]} : vector<2x512xf32> to vector<2x128xf32>
    %444 = vector.extract_strided_slice %441 {offsets = [0, 256], sizes = [2, 128], strides = [1, 1]} : vector<2x512xf32> to vector<2x128xf32>
    %cst_96 = arith.constant 2.000000e+00 : f32
    %445 = vector.broadcast %cst_96 : f32 to vector<2x128xf32>
    %446 = arith.mulf %445, %444 : vector<2x128xf32>
    %cst_97 = arith.constant 1.000000e+00 : f32
    %447 = vector.broadcast %cst_97 : f32 to vector<2x128xf32>
    %448 = arith.subf %446, %447 : vector<2x128xf32>
    %449 = vector.extract_strided_slice %441 {offsets = [0, 384], sizes = [2, 128], strides = [1, 1]} : vector<2x512xf32> to vector<2x128xf32>
    %450 = arith.mulf %443, %428 : vector<2x128xf32>
    %451 = arith.mulf %442, %448 : vector<2x128xf32>
    %452 = arith.addf %450, %451 : vector<2x128xf32>
    %453 = math.tanh %452 : vector<2x128xf32>
    %454 = arith.mulf %449, %453 : vector<2x128xf32>
    %455 = vector.extract_strided_slice %284 {offsets = [14, 0], sizes = [2, 512], strides = [1, 1]} : vector<16x512xf32> to vector<2x512xf32>
    %456 = vector.extract_strided_slice %284 {offsets = [0, 0], sizes = [2, 512], strides = [1, 1]} : vector<16x512xf32> to vector<2x512xf32>
    %457 = arith.select %62, %455, %456 : vector<2x512xi1>, vector<2x512xf32>
    %458 = arith.truncf %454 : vector<2x128xf32> to vector<2x128xbf16>
    %cst_98 = arith.constant dense<0.000000e+00> : vector<2x512xf32>
    %459 = tpu.matmul %458, %6, %cst_98 {dimension_numbers = #tpu.dot_dimension_numbers<[1], [0], [0], [1], [0, 0, 1, 1], [], []>} : vector<2x128xbf16>, vector<128x512xbf16>, vector<2x512xf32> -> vector<2x512xf32>
    %460 = arith.addf %457, %459 : vector<2x512xf32>
    %461 = arith.negf %460 : vector<2x512xf32>
    %462 = math.exp %461 : vector<2x512xf32>
    %cst_99 = arith.constant 1.000000e+00 : f32
    %463 = vector.broadcast %cst_99 : f32 to vector<2x512xf32>
    %464 = arith.addf %463, %462 : vector<2x512xf32>
    %465 = arith.divf %463, %464 : vector<2x512xf32>
    %466 = vector.extract_strided_slice %465 {offsets = [0, 0], sizes = [2, 128], strides = [1, 1]} : vector<2x512xf32> to vector<2x128xf32>
    %467 = vector.extract_strided_slice %465 {offsets = [0, 128], sizes = [2, 128], strides = [1, 1]} : vector<2x512xf32> to vector<2x128xf32>
    %468 = vector.extract_strided_slice %465 {offsets = [0, 256], sizes = [2, 128], strides = [1, 1]} : vector<2x512xf32> to vector<2x128xf32>
    %cst_100 = arith.constant 2.000000e+00 : f32
    %469 = vector.broadcast %cst_100 : f32 to vector<2x128xf32>
    %470 = arith.mulf %469, %468 : vector<2x128xf32>
    %cst_101 = arith.constant 1.000000e+00 : f32
    %471 = vector.broadcast %cst_101 : f32 to vector<2x128xf32>
    %472 = arith.subf %470, %471 : vector<2x128xf32>
    %473 = vector.extract_strided_slice %465 {offsets = [0, 384], sizes = [2, 128], strides = [1, 1]} : vector<2x512xf32> to vector<2x128xf32>
    %474 = arith.mulf %467, %452 : vector<2x128xf32>
    %475 = arith.mulf %466, %472 : vector<2x128xf32>
    %476 = arith.addf %474, %475 : vector<2x128xf32>
    %477 = math.tanh %476 : vector<2x128xf32>
    %478 = arith.mulf %473, %477 : vector<2x128xf32>
    %479 = arith.select %74, %478, %310 : vector<2x128xi1>, vector<2x128xf32>
    %cst_102 = arith.constant dense<0.000000e+00> : vector<2x64xf32>
    %480 = tpu.matmul %479, %7, %cst_102 {dimension_numbers = #tpu.dot_dimension_numbers<[1], [0], [0], [1], [0, 0, 1, 1], [], []>} : vector<2x128xf32>, vector<128x64xf32>, vector<2x64xf32> -> vector<2x64xf32>
    %481 = vector.broadcast %8 : vector<1x64xf32> to vector<2x64xf32>
    %482 = arith.addf %480, %481 : vector<2x64xf32>
    %483 = arith.mulf %482, %13 : vector<2x64xf32>
    %cst_103 = arith.constant 0.000000e+00 : f32
    %484 = vector.broadcast %cst_103 : f32 to vector<2x64xf32>
    %485 = arith.maximumf %483, %484 : vector<2x64xf32>
    %cst_104 = arith.constant dense<0.000000e+00> : vector<2x64xf32>
    %486 = tpu.matmul %485, %9, %cst_104 {dimension_numbers = #tpu.dot_dimension_numbers<[1], [0], [0], [1], [0, 0, 1, 1], [], []>} : vector<2x64xf32>, vector<64x64xf32>, vector<2x64xf32> -> vector<2x64xf32>
    %487 = vector.broadcast %10 : vector<1x64xf32> to vector<2x64xf32>
    %488 = arith.addf %486, %487 : vector<2x64xf32>
    %489 = arith.mulf %488, %14 : vector<2x64xf32>
    %cst_105 = arith.constant 0.000000e+00 : f32
    %490 = vector.broadcast %cst_105 : f32 to vector<2x64xf32>
    %491 = arith.maximumf %489, %490 : vector<2x64xf32>
    %492 = vector.broadcast %11 : vector<1x64xf32> to vector<2x64xf32>
    %493 = arith.mulf %491, %492 : vector<2x64xf32>
    %cst_106 = arith.constant dense<0.000000e+00> : vector<2xf32>
    %494 = vector.multi_reduction <add>, %493, %cst_106 [1] : vector<2x64xf32> to vector<2xf32>
    %495 = vector.shape_cast %494 : vector<2xf32> to vector<2x1xf32>
    %496 = vector.broadcast %12 : vector<1x1xf32> to vector<2x1xf32>
    %497 = arith.addf %495, %496 : vector<2x1xf32>
    %c0_107 = arith.constant 0 : index
    %c0_108 = arith.constant 0 : index
    %498 = vector.load %arg15[%c0_107, %c0_108] : memref<2x1xf32, #tpu.memory_space<vmem>>, vector<2x1xf32>
    tpu.vector_store %arg15[%c0_107, %c0_108], %497 {strides = array<i32>} : memref<2x1xf32, #tpu.memory_space<vmem>>, vector<2x1xf32>,
    return
  }
}

</mosaic_0001>

<bundles_post_ra>
// kernel: tpu_custom_call.1
= control target key start
LH: loop header
LB: loop body
LE: loop exit
PB: predicated region body
PF: predicated region fallthrough
CT: control target
= control target key end

     0   :  { %s5784_s0 = inlined_call_operand.vmem [shape: bf16[16,5], index: 0, kind: input, shape index: {}]   ;;  %s5785_s1 = inlined_call_operand.vmem [shape: bf16[5,512], index: 1, kind: input, shape index: {}]   ;;  %s5786_s2 = inlined_call_operand.vmem [shape: f32[1,512], index: 2, kind: input, shape index: {}]   ;;  %s5787_s3 = inlined_call_operand.hbm [shape: bf16[128,512], index: 3, kind: input, shape index: {}]   ;;  %s5788_s4 = inlined_call_operand.hbm [shape: bf16[128,512], index: 4, kind: input, shape index: {}]   ;;  %s5789_s5 = inlined_call_operand.vmem [shape: f32[1,512], index: 5, kind: input, shape index: {}]   ;;  %s5790_s6 = inlined_call_operand.hbm [shape: bf16[128,512], index: 6, kind: input, shape index: {}]   ;;  %s5791_s7 = inlined_call_operand.vmem [shape: f32[128,64], index: 7, kind: input, shape index: {}]   ;;  %s5792_s8 = inlined_call_operand.vmem [shape: f32[1,64], index: 8, kind: input, shape index: {}]   ;;  %s5793_s9 = inlined_call_operand.vmem [shape: f32[64,64], index: 9, kind: input, shape index: {}]   ;;  %s5794_s10 = inlined_call_operand.vmem [shape: f32[1,64], index: 10, kind: input, shape index: {}]   ;;  %s5795_s11 = inlined_call_operand.vmem [shape: f32[1,64], index: 11, kind: input, shape index: {}]   ;;  %s5796_s12 = inlined_call_operand.<no memory space> [shape: f32[1,1], index: 12, kind: input, shape index: {}]   ;;  %s5797_s13 = inlined_call_operand.vmem [shape: f32[2,64], index: 13, kind: input, shape index: {}]   ;;  %s5798_s14 = inlined_call_operand.vmem [shape: f32[2,64], index: 14, kind: input, shape index: {}]   ;;  %s5799_s15 = inlined_call_operand.vmem [shape: f32[2,1], index: 15, kind: output, shape index: {}]  }
   0x1   :  { %v20_v0 = vstv %s5796_s12 }
   0x2   :  { %21 = vst [vmem:[#allocation2] sm:$0x1] %v20_v0 }
   0x3   :  { %22 = vsyncpa [#allocation4], 0 }
   0x4   :  { %23 = vsyncpa [#allocation6], 0  ;;  %s4374_s20 = smov [#allocation5]   ;;  %s4375_s22 = smov [#allocation3]  }
   0x5   :  { %s47_s21 = sshll.u32 %s4374_s20, 4  ;;  %s35_s23 = sshll.u32 %s4375_s22, 4  ;;  %s48_s21 = int_to_ptr.vmem [resolvable:$true] %s47_s21  ;;  %s36_s23 = int_to_ptr.vmem [resolvable:$true] %s35_s23 }
   0x6   :  { %s4318_s24 = scalar_lea.vmem %s48_s21, 4096  ;;  %p4323_p1 = scmp.lt.s32.totalorder %s48_s21, %s48_s21 }
   0x7   :  { %p4319_p0 = scmp.ne.s32.totalorder %s48_s21, %s4318_s24  ;;  %p4324_p2 = scmp.lt.s32.totalorder %s4318_s24, %s4318_s24 }
   0x9   :  { %p4325_p3 = por %p4324_p2, %p4323_p1 }
   0xb   :  { %p4326_p4 = pnand %p4325_p3, %p4319_p0 }
   0xd   :  { %4329 = shalt.err (!%p4326_p4)
}
   0xe   :  { %s4376_s25 = smov 256   ;;  %s4377_s26 = smov 16  }
   0xf   :  { %53 = dma.hbm_to_vmem [thread:$0]  %s5788_s4, 4096, %s48_s21, [#allocation6], %s4376_s25, %s4376_s25, %s4377_s26  }
  0x10   :  { %s4338_s28 = scalar_lea.vmem %s36_s23, 4096  ;;  %p4343_p6 = scmp.lt.s32.totalorder %s36_s23, %s36_s23 }
  0x11   :  { %p4339_p5 = scmp.ne.s32.totalorder %s36_s23, %s4338_s28  ;;  %p4344_p7 = scmp.lt.s32.totalorder %s4338_s28, %s4338_s28 }
  0x13   :  { %p4345_p8 = por %p4344_p7, %p4343_p6 }
  0x15   :  { %p4346_p9 = pnand %p4345_p8, %p4339_p5 }
  0x17   :  { %4349 = shalt.err (!%p4346_p9)
}
  0x18   :  { %41 = dma.hbm_to_vmem [thread:$0]  %s5787_s3, 4096, %s36_s23, [#allocation4], %s4376_s25, %s4376_s25, %s4377_s26  }
  0x19   :  { %s4378_s16 = smov [#allocation7]  }
  0x1a   :  { %s61_s17 = sshll.u32 %s4378_s16, 4  ;;  %s62_s17 = int_to_ptr.vmem [resolvable:$true] %s61_s17 }
  0x1b   :  { %s4358_s18 = scalar_lea.vmem %s62_s17, 4096  ;;  %p4363_p11 = scmp.lt.s32.totalorder %s62_s17, %s62_s17 }
  0x1c   :  { %p4359_p10 = scmp.ne.s32.totalorder %s62_s17, %s4358_s18  ;;  %p4364_p12 = scmp.lt.s32.totalorder %s4358_s18, %s4358_s18 }
  0x1e   :  { %p4365_p13 = por %p4364_p12, %p4363_p11 }
  0x20   :  { %p4366_p0 = pnand %p4365_p13, %p4359_p10 }
  0x22   :  { %4369 = shalt.err (!%p4366_p0)
}
  0x23   :  { %67 = dma.hbm_to_vmem [thread:$0]  %s5790_s6, 4096, %s62_s17, [#allocation6], %s4376_s25, %s4376_s25, %s4377_s26  }
  0x24   :  { %4370 = dma.done.wait [#allocation4], 4096  }
  0x25   :  { %4371 = vsyncadd [#allocation4], 4294963200 }
  0x26   :  { %4372 = dma.done.wait [#allocation6], 8192  }
  0x27   :  { %4373 = vsyncadd [#allocation6], 4294959104  ;;  %v5804_v1 = vmov 0   ;;  %vm395_vm0 = vcmask 1041408   ;;  %vm396_vm1 = vcmask 1042432   ;;  %v4380_v2 = vmov 65535  }
  0x28   :  { %443 = vmatprep.mubr.bf16.mxu1 %v5804_v1  ;;  %705 = vmatprep.mubr.bf16.mxu0 %v5804_v1  ;;  %v397_v3 = vsel %vm395_vm0, 4294967295, %v4380_v2  ;;  %v4478_v4 = vld [vmem:[#allocation3 + $0xe4] ss:$16 sps:$4 sm:$0xff]   ;;  %v4480_v5 = vld [vmem:[#allocation3 + $0xe0] ss:$16 sps:$4 sm:$0xff]   ;;  %vm391_vm2 = vcmask 39936   ;;  %v226_v48 = vlaneseq }
  0x29   :  { %v96_v6 = vld [vmem:[%s5785_s1] sm:$0x77]  ;;  %v398_v7 = vsel %vm396_vm1, %v397_v3, 0  ;;  %673 = vmatprep.subr.bf16.mxu0 %v4478_v4  ;;  %v97_v14 = vld [vmem:[%s5785_s1 + $0x8] sm:$0x77]  ;;  %v5831_v62 = vmov 0 }
  0x2a   :  { %v3534_v8 = vcombine.high %v96_v6, %v96_v6  ;;  %v3533_v9 = vcombine.low %v96_v6, %v96_v6  ;;  %v4486_v10 = vld [vmem:[#allocation3 + $0xc4] ss:$16 sps:$4 sm:$0xff]   ;;  %674 = vmatpush1.bf16.msra.mxu0 %v4480_v5  ;;  %v4489_v11 = vld [vmem:[#allocation3 + $0xc0] ss:$16 sps:$4 sm:$0xff]   ;;  %v3535_v15 = vcombine.low %v97_v14, %v97_v14  ;;  %v3536_v16 = vcombine.high %v97_v14, %v97_v14  ;;  %v4506_v23 = vld [vmem:[#allocation3 + $0xec] ss:$16 sps:$4 sm:$0xff]  }
  0x2b   :  { %675 = vmatprep.subr.bf16.mxu0 %v4486_v10  ;;  %v4495_v17 = vld [vmem:[#allocation3 + $0xa4] ss:$16 sps:$4 sm:$0xff]   ;;  %v4501_v21 = vld [vmem:[#allocation3 + $0xa0] ss:$16 sps:$4 sm:$0xff]   ;;  %v4517_v26 = vld [vmem:[#allocation3 + $0xe8] ss:$16 sps:$4 sm:$0xff]  }
  0x2c   :  { %v403_v12 = vand.u32 %v3534_v8, %v398_v7  ;;  %v400_v13 = vand.u32 %v3533_v9, %v398_v7  ;;  %v3817_v18 = vld [vmem:[%s5784_s0] sm:$0xff]   ;;  %v409_v19 = vand.u32 %v3536_v16, %v398_v7  ;;  %v406_v20 = vand.u32 %v3535_v15, %v398_v7  ;;  %v4528_v30 = vld [vmem:[#allocation3 + $0xc8] ss:$16 sps:$4 sm:$0xff]  }
  0x2d   :  { %v4504_v22 = vld [vmem:[#allocation3 + $0x84] ss:$16 sps:$4 sm:$0xff]   ;;  %v4510_v24 = vld [vmem:[#allocation3 + $0x80] ss:$16 sps:$4 sm:$0xff]   ;;  %v4522_v28 = vld [vmem:[#allocation3 + $0xcc] ss:$16 sps:$4 sm:$0xff]  }
  0x2e   :  { %425 = vmatprep.subr.bf16.mxu1 %v403_v12  ;;  %676 = vmatpush1.bf16.msra.mxu0 %v4489_v11  ;;  %v4514_v25 = vld [vmem:[#allocation3 + $0x64] ss:$16 sps:$4 sm:$0xff]   ;;  %v4519_v27 = vld [vmem:[#allocation3 + $0x60] ss:$16 sps:$4 sm:$0xff]   ;;  %v4534_v32 = vld [vmem:[#allocation3 + $0xac] ss:$16 sps:$4 sm:$0xff]  }
  0x2f   :  { %426 = vmatpush1.bf16.msra.mxu1 %v400_v13  ;;  %677 = vmatprep.subr.bf16.mxu0 %v4495_v17  ;;  %v4525_v29 = vld [vmem:[#allocation3 + $0x44] ss:$16 sps:$4 sm:$0xff]   ;;  %v4530_v31 = vld [vmem:[#allocation3 + $0x40] ss:$16 sps:$4 sm:$0xff]   ;;  %v4541_v34 = vld [vmem:[#allocation3 + $0xa8] ss:$16 sps:$4 sm:$0xff]  }
  0x30   :  { %468 = vmatprep.subr.bf16.mxu1 %v409_v19  ;;  %v4538_v33 = vld [vmem:[#allocation3 + $0x24] ss:$16 sps:$4 sm:$0xff]   ;;  %v4543_v35 = vld [vmem:[#allocation3 + $0x20] ss:$16 sps:$4 sm:$0xff]   ;;  %v4547_v36 = vld [vmem:[#allocation3 + $0x8c] ss:$16 sps:$4 sm:$0xff]  }
  0x31   :  { %v4549_v37 = vld [vmem:[#allocation3 + $0x4] ss:$16 sps:$4 sm:$0xff]   ;;  %v4553_v38 = vld [vmem:[#allocation3 + $0x88] ss:$16 sps:$4 sm:$0xff]   ;;  %v4555_v39 = vld [vmem:[#allocation3] ss:$16 sps:$4 sm:$0xff]  }
  0x32   :  { %3537 = vmatmul.mubr.msk.bf16.vlgmr.msra.gmra.mxu1 %vm391_vm2, %v3817_v18  ;;  %678 = vmatpush1.bf16.msra.mxu0 %v4501_v21  ;;  %v4557_v40 = vld [vmem:[#allocation3 + $0x6c] ss:$16 sps:$4 sm:$0xff]   ;;  %v4563_v41 = vld [vmem:[#allocation3 + $0x68] ss:$16 sps:$4 sm:$0xff]   ;;  %v4625_v49 = vshrl.u32 %v226_v48, 7  ;;  %v227_v50 = vand.u32 127, %v226_v48 }
  0x33   :  { %469 = vmatpush1.bf16.msra.mxu1 %v406_v20  ;;  %679 = vmatprep.subr.bf16.mxu0 %v4504_v22  ;;  %v4565_v42 = vld [vmem:[#allocation3 + $0x4c] ss:$16 sps:$4 sm:$0xff]   ;;  %v4571_v43 = vld [vmem:[#allocation3 + $0x48] ss:$16 sps:$4 sm:$0xff]   ;;  %v5834_v15 = vmov 0 }
  0x34   :  { %486 = vmatprep.mubr.bf16.mxu1 %v5804_v1  ;;  %714 = vmatprep.subr.bf16.mxu1 %v4506_v23  ;;  %v4574_v44 = vld [vmem:[#allocation3 + $0x2c] ss:$16 sps:$4 sm:$0xff]   ;;  %v4580_v45 = vld [vmem:[#allocation3 + $0x28] ss:$16 sps:$4 sm:$0xff]   ;;  %5830 = vst [vmem:[#allocation10_spill] sm:$0xff] %v4625_v49  ;;  %v5803_v51 = vsub.s32 0, %v4625_v49 }
  0x35   :  { %v4583_v46 = vld [vmem:[#allocation3 + $0xc] ss:$16 sps:$4 sm:$0xff]   ;;  %v4589_v47 = vld [vmem:[#allocation3 + $0x8] ss:$16 sps:$4 sm:$0xff]   ;;  %v5801_v53 = vsub.s32 1, %v4625_v49  ;;  %vm243_vm3 = vcmp.ge.s32.totalorder %v227_v50, 64 }
  0x36   :  { %680 = vmatpush1.bf16.msra.mxu0 %v4510_v24  ;;  %v98_v52 = vld [vmem:[%s5786_s2] sm:$0xf]  ;;  %vm247_vm4 = vcmp.lt.s32.totalorder %v227_v50, 96  ;;  %v228_v55 = vadd.s32 128, %v227_v50  ;;  %vm235_vm5 = vcmp.lt.s32.totalorder %v227_v50, 32  ;;  %v5802_v58 = vsub.s32 2, %v4625_v49 }
  0x37   :  { %681 = vmatprep.subr.bf16.mxu0 %v4514_v25  ;;  %v359_v54 = vrot.slane %v98_v52, %v5803_v51  ;;  %vm251_vm6 = vmand %vm243_vm3, %vm247_vm4  ;;  %v363_v57 = vrot.slane %v98_v52, %v5801_v53  ;;  %v229_v59 = vadd.s32 256, %v227_v50  ;;  %v5800_v63 = vsub.s32 3, %v4625_v49 }
  0x38   :  { %vm276_vm7 = vcmp.ge.s32.totalorder %v228_v55, 192  ;;  %vm280_vm8 = vcmp.lt.s32.totalorder %v228_v55, 224  ;;  %vm4639_vm9 = vmor %vm235_vm5, %vm251_vm6  ;;  %v367_v3 = vrot.slane %v98_v52, %v5802_v58  ;;  %vm264_vm10 = vcmp.lt.s32.totalorder %v228_v55, 160 }
  0x39   :  { %v5832_v62 = vsel %vm4639_vm9, 4294967295, %v5831_v62  ;;  %vm284_vm11 = vmand %vm276_vm7, %vm280_vm8  ;;  %vm309_vm12 = vcmp.ge.s32.totalorder %v229_v59, 320  ;;  %vm313_vm13 = vcmp.lt.s32.totalorder %v229_v59, 352  ;;  %v230_v7 = vadd.s32 384, %v227_v50 }
  0x3a   :  { %3538 = vmatmul.mubr.msk.bf16.vlgmr.msra.gmra.mxu1 %vm391_vm2, %v3817_v18  ;;  %682 = vmatpush1.bf16.msra.mxu0 %v4519_v27  ;;  %5833 = vst [vmem:[#allocation11_spill] sm:$0xff] %v5832_v62  ;;  %v371_v14 = vrot.slane %v98_v52, %v5800_v63  ;;  %vm4650_vm14 = vmor %vm264_vm10, %vm284_vm11  ;;  %vm297_vm15 = vcmp.lt.s32.totalorder %v229_v59, 288  ;;  %vm1797_vm8 = vcmask 1043456   ;;  %vm1799_vm10 = vcmask 1045504  }
  0x3b   :  { %715 = vmatpush1.bf16.msra.mxu1 %v4517_v26  ;;  %683 = vmatprep.subr.bf16.mxu0 %v4525_v29  ;;  %v5835_v15 = vsel %vm4650_vm14, 4294967295, %v5834_v15  ;;  %vm317_vm1 = vmand %vm309_vm12, %vm313_vm13  ;;  %vm342_vm2 = vcmp.ge.s32.totalorder %v230_v7, 448  ;;  %vm346_vm3 = vcmp.lt.s32.totalorder %v230_v7, 480  ;;  %vm330_vm5 = vcmp.lt.s32.totalorder %v230_v7, 416 }
  0x3c   :  { %716 = vmatprep.subr.bf16.mxu1 %v4522_v28  ;;  %746 = vmatprep.mubr.bf16.mxu1 %v5804_v1  ;;  %5836 = vst [vmem:[#allocation12_spill] sm:$0xff] %v5835_v15  ;;  %vm4675_vm4 = vmor %vm297_vm15, %vm317_vm1  ;;  %vm3513_vm11 = vcmask 517120   ;;  %vm3524_vm12 = vcmask 1024  }
  0x3d   :  { %vm350_vm6 = vmand %vm342_vm2, %vm346_vm3 }
  0x3e   :  { %684 = vmatpush1.bf16.msra.mxu0 %v4530_v31  ;;  %vm4683_vm7 = vmor %vm330_vm5, %vm350_vm6 }
  0x3f   :  { %717 = vmatpush1.bf16.msra.mxu1 %v4528_v30  ;;  %685 = vmatprep.subr.bf16.mxu0 %v4538_v33 }
  0x40   :  { %718 = vmatprep.subr.bf16.mxu1 %v4534_v32 }
  0x42   :  { %686 = vmatpush1.bf16.msra.mxu0 %v4543_v35 }
  0x43   :  { %719 = vmatpush1.bf16.msra.mxu1 %v4541_v34  ;;  %687 = vmatprep.subr.bf16.mxu0 %v4549_v37 }
  0x44   :  { %720 = vmatprep.subr.bf16.mxu1 %v4547_v36 }
  0x46   :  { %688 = vmatpush1.bf16.msra.mxu0 %v4555_v39 }
  0x47   :  { %721 = vmatpush1.bf16.msra.mxu1 %v4553_v38  ;;  %803 = vmatprep.subr.bf16.mxu0 %v4478_v4 }
  0x48   :  { %722 = vmatprep.subr.bf16.mxu1 %v4557_v40 }
  0x49   :  { %706 = vmatmul.mubr.bf16.vlgmr.msra.gmra.mxu0 %v5804_v1 }
  0x4a   :  { %804 = vmatpush1.bf16.msra.mxu0 %v4480_v5  ;;  %835 = vmatprep.mubr.bf16.mxu0 %v5804_v1 }
  0x4b   :  { %723 = vmatpush1.bf16.msra.mxu1 %v4563_v41  ;;  %805 = vmatprep.subr.bf16.mxu0 %v4486_v10 }
  0x4c   :  { %724 = vmatprep.subr.bf16.mxu1 %v4565_v42 }
  0x4e   :  { %806 = vmatpush1.bf16.msra.mxu0 %v4489_v11 }
  0x4f   :  { %725 = vmatpush1.bf16.msra.mxu1 %v4571_v43  ;;  %807 = vmatprep.subr.bf16.mxu0 %v4495_v17 }
  0x50   :  { %726 = vmatprep.subr.bf16.mxu1 %v4574_v44 }
  0x52   :  { %808 = vmatpush1.bf16.msra.mxu0 %v4501_v21 }
  0x53   :  { %727 = vmatpush1.bf16.msra.mxu1 %v4580_v45  ;;  %809 = vmatprep.subr.bf16.mxu0 %v4504_v22 }
  0x54   :  { %728 = vmatprep.subr.bf16.mxu1 %v4583_v46 }
  0x56   :  { %810 = vmatpush1.bf16.msra.mxu0 %v4510_v24 }
  0x57   :  { %729 = vmatpush1.bf16.msra.mxu1 %v4589_v47  ;;  %811 = vmatprep.subr.bf16.mxu0 %v4514_v25 }
  0x58   :  { %844 = vmatprep.subr.bf16.mxu1 %v4506_v23 }
  0x5a   :  { %747 = vmatmul.mubr.bf16.vlgmr.msra.gmra.mxu1 %v5804_v1  ;;  %812 = vmatpush1.bf16.msra.mxu0 %v4519_v27 }
  0x5b   :  { %845 = vmatpush1.bf16.msra.mxu1 %v4517_v26  ;;  %813 = vmatprep.subr.bf16.mxu0 %v4525_v29 }
  0x5c   :  { %846 = vmatprep.subr.bf16.mxu1 %v4522_v28  ;;  %876 = vmatprep.mubr.bf16.mxu1 %v5804_v1 }
  0x5e   :  { %814 = vmatpush1.bf16.msra.mxu0 %v4530_v31 }
  0x5f   :  { %847 = vmatpush1.bf16.msra.mxu1 %v4528_v30  ;;  %815 = vmatprep.subr.bf16.mxu0 %v4538_v33 }
  0x60   :  { %848 = vmatprep.subr.bf16.mxu1 %v4534_v32 }
  0x62   :  { %816 = vmatpush1.bf16.msra.mxu0 %v4543_v35 }
  0x63   :  { %849 = vmatpush1.bf16.msra.mxu1 %v4541_v34  ;;  %817 = vmatprep.subr.bf16.mxu0 %v4549_v37 }
  0x64   :  { %850 = vmatprep.subr.bf16.mxu1 %v4547_v36 }
  0x66   :  { %818 = vmatpush1.bf16.msra.mxu0 %v4555_v39 }
  0x67   :  { %851 = vmatpush1.bf16.msra.mxu1 %v4553_v38  ;;  %939 = vmatprep.subr.bf16.mxu0 %v4478_v4 }
  0x68   :  { %852 = vmatprep.subr.bf16.mxu1 %v4557_v40 }
  0x6b   :  { %853 = vmatpush1.bf16.msra.mxu1 %v4563_v41 }
  0x6c   :  { %854 = vmatprep.subr.bf16.mxu1 %v4565_v42 }
  0x6f   :  { %855 = vmatpush1.bf16.msra.mxu1 %v4571_v43 }
  0x70   :  { %856 = vmatprep.subr.bf16.mxu1 %v4574_v44 }
  0x73   :  { %857 = vmatpush1.bf16.msra.mxu1 %v4580_v45 }
  0x74   :  { %858 = vmatprep.subr.bf16.mxu1 %v4583_v46 }
  0x77   :  { %859 = vmatpush1.bf16.msra.mxu1 %v4589_v47 }
  0x78   :  { %980 = vmatprep.subr.bf16.mxu1 %v4506_v23 }
  0xf2   :  { %v445_v56 = vpop.f32.mrf.mxu1 }
  0xf3   :  { %v4637_v60 = vadd.f32 %v445_v56, %v359_v54 }
  0xf4   :  { %v447_v61 = vpop.f32.mrf.mxu1 }
  0xf5   :  { %v448_v0 = vadd.f32 %v447_v61, %v363_v57  ;;  %v1211_v8 = vrot.slane %v4637_v60, 6  ;;  %v1347_v12 = vrot.slane %v4637_v60, 2  ;;  %v5839_v61 = vmov 0 }
  0xf6   :  { %v449_v2 = vpop.f32.mrf.mxu1  ;;  %v5840_v61 = vsel %vm4675_vm4, 4294967295, %v5839_v61 }
  0xf7   :  { %v450_v6 = vadd.f32 %v449_v2, %v359_v54  ;;  %v1212_v20 = vrot.slane %v448_v0, 6  ;;  %v1348_v50 = vrot.slane %v448_v0, 2  ;;  %5841 = vst [vmem:[#allocation15_spill] sm:$0xff] %v5840_v61 }
  0xf8   :  { %v451_v9 = vpop.f32.mrf.mxu1 }
  0xf9   :  { %v452_v13 = vadd.f32 %v451_v9, %v363_v57  ;;  %v790_v16 = vrot.slane %v450_v6, 2  ;;  %v4656_v18 = vsel %vm4639_vm9, %v450_v6, %v1211_v8  ;;  %v4660_v48 = vsel %vm4639_vm9, %v450_v6, %v1347_v12 }
  0xfa   :  { %v488_v19 = vpop.f32.mrf.mxu1  ;;  %5837 = vst [vmem:[#allocation13_spill] sm:$0xff] %v4660_v48 }
  0xfb   :  { %v489_v54 = vadd.f32 %v488_v19, %v367_v3  ;;  %v4665_v52 = vsel %vm4639_vm9, %v4637_v60, %v790_v16  ;;  %v791_v56 = vrot.slane %v452_v13, 2  ;;  %v4669_v57 = vsel %vm4650_vm14, %v452_v13, %v1212_v20 }
  0xfc   :  { %v490_v55 = vpop.f32.mrf.mxu1  ;;  %v4673_v59 = vsel %vm4650_vm14, %v452_v13, %v1348_v50  ;;  %v5842_v50 = vmov 0 }
  0xfd   :  { %5838 = vst [vmem:[#allocation14_spill] sm:$0xff] %v4673_v59  ;;  %v491_v2 = vadd.f32 %v490_v55, %v371_v14  ;;  %v4681_v9 = vsel %vm4650_vm14, %v448_v0, %v791_v56  ;;  %v1213_v16 = vrot.slane %v489_v54, 6  ;;  %v1349_v20 = vrot.slane %v489_v54, 2 }
  0xfe   :  { %v492_v8 = vpop.f32.mrf.mxu1  ;;  %v5843_v50 = vsel %vm4683_vm7, 4294967295, %v5842_v50  ;;  %v502_v59 = vrot.slane %v452_v13, 6 }
  0xff   :  { %v493_v12 = vadd.f32 %v492_v8, %v367_v3  ;;  %5844 = vst [vmem:[#allocation16_spill] sm:$0xff] %v5843_v50  ;;  %v1214_v7 = vrot.slane %v491_v2, 6  ;;  %v1350_v56 = vrot.slane %v491_v2, 2 }
 0x100   :  { %v494_v19 = vpop.f32.mrf.mxu1 }
 0x101   :  { %v495_v63 = vadd.f32 %v494_v19, %v371_v14  ;;  %v792_v53 = vrot.slane %v493_v12, 2  ;;  %v4689_v55 = vsel %vm4675_vm4, %v493_v12, %v1213_v16  ;;  %v4693_v58 = vsel %vm4675_vm4, %v493_v12, %v1349_v20 }
 0x102   :  { %5845 = vst [vmem:[#allocation17_spill] sm:$0xff] %v4693_v58  ;;  %v4713_v58 = vsel %vm4650_vm14, %v448_v0, %v502_v59 }
 0x103   :  { %v4697_v3 = vsel %vm4675_vm4, %v489_v54, %v792_v53  ;;  %v793_v14 = vrot.slane %v495_v63, 2  ;;  %v4701_v8 = vsel %vm4683_vm7, %v495_v63, %v1214_v7  ;;  %v4705_v19 = vsel %vm4683_vm7, %v495_v63, %v1350_v56 }
 0x104   :  { %5846 = vst [vmem:[#allocation18_spill] sm:$0xff] %v4701_v8  ;;  %5847 = vst [vmem:[#allocation19_spill] sm:$0xff] %v4705_v19  ;;  %v501_v53 = vrot.slane %v450_v6, 6  ;;  %v503_v19 = vrot.slane %v493_v12, 6 }
 0x105   :  { %v4709_v16 = vsel %vm4683_vm7, %v491_v2, %v793_v14 }
 0x106   :  { %v4718_v7 = vsel %vm4639_vm9, %v4637_v60, %v501_v53 }
 0x109   :  { %v707_v20 = vpop.f32.mrf.mxu0 }
 0x10a   :  { %v755_v14 = vadd.f32 %v707_v20, %v4718_v7 }
 0x10b   :  { %v709_v51 = vpop.f32.mrf.mxu0 }
 0x10c   :  { %v756_v56 = vadd.f32 %v709_v51, %v4713_v58  ;;  %v3571_v6 = vmul.f32 -1.442695, %v755_v14  ;;  %v504_v51 = vrot.slane %v495_v63, 6 }
 0x10d   :  { %v711_v1 = vpop.f32.mrf.mxu0 }
 0x10e   :  { %v3572_v48 = vmul.f32 -1.442695, %v756_v56  ;;  %v4724_v1 = vsel %vm4675_vm4, %v489_v54, %v503_v19  ;;  %v4729_v12 = vsel %vm4683_vm7, %v491_v2, %v504_v51 }
 0x10f   :  { %v712_v49 = vpop.f32.mrf.mxu0 }
 0x110   :  { %3958 = vpow2.f32 %v3572_v48 }
 0x111   :  { %3960 = vpow2.f32 %v3571_v6 }
 0x11a   :  { %v748_v49 = vpop.f32.mrf.mxu1 }
 0x11b   :  { %v757_v0 = vadd.f32 %v748_v49, %v4724_v1 }
 0x11c   :  { %v750_v13 = vpop.f32.mrf.mxu1 }
 0x11d   :  { %v3573_v59 = vmul.f32 -1.442695, %v757_v0  ;;  %v758_v20 = vadd.f32 %v750_v13, %v4729_v12  ;;  %v3959_v54 = vpop.eup %3958 }
 0x11e   :  { %v752_v15 = vpop.f32.mrf.mxu1  ;;  %v3961_v19 = vpop.eup %3960  ;;  %v772_v14 = vadd.f32 1.0, %v3959_v54 }
 0x11f   :  { %3962 = vpow2.f32 %v3573_v59  ;;  %v3574_v56 = vmul.f32 -1.442695, %v758_v20  ;;  %v771_v61 = vadd.f32 1.0, %v3961_v19 }
 0x120   :  { %v753_v60 = vpop.f32.mrf.mxu1 }
 0x12c   :  { %v3963_v53 = vpop.eup %3962 }
 0x12d   :  { %v773_v49 = vadd.f32 1.0, %v3963_v53  ;;  %v5849_v53 = vmov 0  }
 0x12f   :  { %3964 = vrcp.f32 %v773_v49 }
 0x130   :  { %3966 = vpow2.f32 %v3574_v56 }
 0x131   :  { %3968 = vrcp.f32 %v772_v14 }
 0x132   :  { %3970 = vrcp.f32 %v771_v61 }
 0x13c   :  { %v3965_v15 = vpop.eup %3964 }
 0x13d   :  { %v3967_v48 = vpop.eup %3966  ;;  %v783_v63 = vmul.f32 2.0, %v3965_v15 }
 0x13e   :  { %v3969_v6 = vpop.eup %3968  ;;  %v774_v59 = vadd.f32 1.0, %v3967_v48 }
 0x13f   :  { %v3575_v0 = vadd.f32 -1.0, %v783_v63  ;;  %v3971_v2 = vpop.eup %3970  ;;  %v785_v60 = vmul.f32 0.0, %v3969_v6 }
 0x140   :  { %3972 = vrcp.f32 %v774_v59 }
 0x141   :  { %v786_v13 = vmul.f32 %v3971_v2, %v3575_v0 }
 0x143   :  { %v4732_v51 = vadd.f32 %v786_v13, %v785_v60 }
 0x145   :  { %3974 = vtanh.f32 %v4732_v51 }
 0x14d   :  { %v3973_v20 = vpop.eup %3972 }
 0x152   :  { %v3975_v54 = vpop.eup %3974 }
 0x153   :  { %v4735_v19 = vmul.f32 %v3975_v54, %v3973_v20 }
 0x155   :  { %5848 = vst [vmem:[#allocation20_spill] sm:$0xff] %v4735_v19  ;;  %v802_v61 = vpack.c.bf16 %v4735_v19, %v4735_v19 }
 0x157   :  { %836 = vmatmul.mubr.bf16.vlgmr.msra.gmra.mxu0 %v802_v61  ;;  %877 = vmatmul.mubr.bf16.vlgmr.msra.gmra.mxu1 %v802_v61 }
 0x158   :  { %940 = vmatpush1.bf16.msra.mxu0 %v4480_v5  ;;  %981 = vmatpush1.bf16.msra.mxu1 %v4517_v26 }
 0x159   :  { %941 = vmatprep.subr.bf16.mxu0 %v4486_v10  ;;  %982 = vmatprep.subr.bf16.mxu1 %v4522_v28 }
 0x15a   :  { %971 = vmatprep.mubr.bf16.mxu0 %v5849_v53  ;;  %1012 = vmatprep.mubr.bf16.mxu1 %v5849_v53 }
 0x15c   :  { %942 = vmatpush1.bf16.msra.mxu0 %v4489_v11  ;;  %983 = vmatpush1.bf16.msra.mxu1 %v4528_v30 }
 0x15d   :  { %943 = vmatprep.subr.bf16.mxu0 %v4495_v17  ;;  %984 = vmatprep.subr.bf16.mxu1 %v4534_v32 }
 0x160   :  { %944 = vmatpush1.bf16.msra.mxu0 %v4501_v21  ;;  %985 = vmatpush1.bf16.msra.mxu1 %v4541_v34 }
 0x161   :  { %945 = vmatprep.subr.bf16.mxu0 %v4504_v22  ;;  %986 = vmatprep.subr.bf16.mxu1 %v4547_v36 }
 0x164   :  { %946 = vmatpush1.bf16.msra.mxu0 %v4510_v24  ;;  %987 = vmatpush1.bf16.msra.mxu1 %v4553_v38 }
 0x165   :  { %947 = vmatprep.subr.bf16.mxu0 %v4514_v25  ;;  %988 = vmatprep.subr.bf16.mxu1 %v4557_v40 }
 0x168   :  { %948 = vmatpush1.bf16.msra.mxu0 %v4519_v27  ;;  %989 = vmatpush1.bf16.msra.mxu1 %v4563_v41 }
 0x169   :  { %949 = vmatprep.subr.bf16.mxu0 %v4525_v29  ;;  %990 = vmatprep.subr.bf16.mxu1 %v4565_v42 }
 0x16c   :  { %950 = vmatpush1.bf16.msra.mxu0 %v4530_v31  ;;  %991 = vmatpush1.bf16.msra.mxu1 %v4571_v43 }
 0x16d   :  { %951 = vmatprep.subr.bf16.mxu0 %v4538_v33  ;;  %992 = vmatprep.subr.bf16.mxu1 %v4574_v44 }
 0x170   :  { %952 = vmatpush1.bf16.msra.mxu0 %v4543_v35  ;;  %993 = vmatpush1.bf16.msra.mxu1 %v4580_v45 }
 0x171   :  { %953 = vmatprep.subr.bf16.mxu0 %v4549_v37  ;;  %994 = vmatprep.subr.bf16.mxu1 %v4583_v46 }
 0x174   :  { %954 = vmatpush1.bf16.msra.mxu0 %v4555_v39  ;;  %995 = vmatpush1.bf16.msra.mxu1 %v4589_v47 }
 0x175   :  { %1075 = vmatprep.subr.bf16.mxu0 %v4478_v4  ;;  %1116 = vmatprep.subr.bf16.mxu1 %v4506_v23 }
 0x217   :  { %v837_v56 = vpop.f32.mrf.mxu0  ;;  %v878_v14 = vpop.f32.mrf.mxu1 }
 0x218   :  { %v889_v49 = vrot.slane %v837_v56, 6  ;;  %v891_v15 = vrot.slane %v878_v14, 6 }
 0x219   :  { %v839_v48 = vpop.f32.mrf.mxu0  ;;  %v880_v63 = vpop.f32.mrf.mxu1 }
 0x21a   :  { %v897_v6 = vadd.f32 %v889_v49, %v4665_v52  ;;  %v899_v0 = vadd.f32 %v891_v15, %v4697_v3  ;;  %v890_v2 = vrot.slane %v839_v48, 6  ;;  %v892_v56 = vrot.slane %v880_v63, 6 }
 0x21b   :  { %v841_v59 = vpop.f32.mrf.mxu0  ;;  %v882_v60 = vpop.f32.mrf.mxu1 }
 0x21c   :  { %v3576_v13 = vmul.f32 -1.442695, %v897_v6  ;;  %v3578_v20 = vmul.f32 -1.442695, %v899_v0  ;;  %v898_v54 = vadd.f32 %v890_v2, %v4681_v9  ;;  %v900_v14 = vadd.f32 %v892_v56, %v4709_v16 }
 0x21d   :  { %v842_v61 = vpop.f32.mrf.mxu0  ;;  %v883_v50 = vpop.f32.mrf.mxu1 }
 0x21e   :  { %3976 = vpow2.f32 %v3576_v13  ;;  %v3577_v19 = vmul.f32 -1.442695, %v898_v54  ;;  %v3579_v8 = vmul.f32 -1.442695, %v900_v14 }
 0x21f   :  { %3978 = vpow2.f32 %v3578_v20 }
 0x220   :  { %3980 = vpow2.f32 %v3577_v19  ;;  %v928_v19 = vrot.slane %v4732_v51, 6 }
 0x22b   :  { %v3977_v62 = vpop.eup %3976 }
 0x22c   :  { %v3979_v49 = vpop.eup %3978  ;;  %v913_v60 = vadd.f32 1.0, %v3977_v62 }
 0x22d   :  { %v3981_v15 = vpop.eup %3980  ;;  %v915_v48 = vadd.f32 1.0, %v3979_v49 }
 0x22e   :  { %v914_v59 = vadd.f32 1.0, %v3981_v15 }
 0x22f   :  { %3982 = vrcp.f32 %v915_v48 }
 0x230   :  { %3984 = vpow2.f32 %v3579_v8 }
 0x231   :  { %3986 = vrcp.f32 %v914_v59 }
 0x232   :  { %3988 = vrcp.f32 %v913_v60 }
 0x23c   :  { %v3983_v6 = vpop.eup %3982 }
 0x23d   :  { %v3985_v50 = vpop.eup %3984  ;;  %v925_v0 = vmul.f32 2.0, %v3983_v6 }
 0x23e   :  { %v3987_v2 = vpop.eup %3986  ;;  %v916_v20 = vadd.f32 1.0, %v3985_v50 }
 0x23f   :  { %v3580_v63 = vadd.f32 -1.0, %v925_v0  ;;  %v3989_v13 = vpop.eup %3988  ;;  %v930_v61 = vmul.f32 %v3987_v2, %v928_v19 }
 0x240   :  { %3990 = vrcp.f32 %v916_v20 }
 0x241   :  { %v931_v54 = vmul.f32 %v3989_v13, %v3580_v63 }
 0x243   :  { %v4778_v56 = vadd.f32 %v931_v54, %v930_v61 }
 0x245   :  { %3992 = vtanh.f32 %v4778_v56 }
 0x24d   :  { %v3991_v62 = vpop.eup %3990 }
 0x252   :  { %v3993_v8 = vpop.eup %3992 }
 0x253   :  { %v4781_v14 = vmul.f32 %v3993_v8, %v3991_v62 }
 0x255   :  { %v935_v49 = vpack.c.bf16 %v4781_v14, %v4781_v14 }
 0x257   :  { %v937_v15 = vrot.slane %v935_v49, 1 }
 0x259   :  { %972 = vmatmul.mubr.bf16.vlgmr.msra.gmra.mxu0 %v937_v15  ;;  %1013 = vmatmul.mubr.bf16.vlgmr.msra.gmra.mxu1 %v937_v15 }
 0x25a   :  { %1076 = vmatpush1.bf16.msra.mxu0 %v4480_v5  ;;  %1117 = vmatpush1.bf16.msra.mxu1 %v4517_v26 }
 0x25b   :  { %1077 = vmatprep.subr.bf16.mxu0 %v4486_v10  ;;  %1118 = vmatprep.subr.bf16.mxu1 %v4522_v28 }
 0x25c   :  { %1107 = vmatprep.mubr.bf16.mxu0 %v5849_v53  ;;  %1148 = vmatprep.mubr.bf16.mxu1 %v5849_v53 }
 0x25e   :  { %1078 = vmatpush1.bf16.msra.mxu0 %v4489_v11  ;;  %1119 = vmatpush1.bf16.msra.mxu1 %v4528_v30 }
 0x25f   :  { %1079 = vmatprep.subr.bf16.mxu0 %v4495_v17  ;;  %1120 = vmatprep.subr.bf16.mxu1 %v4534_v32 }
 0x262   :  { %1080 = vmatpush1.bf16.msra.mxu0 %v4501_v21  ;;  %1121 = vmatpush1.bf16.msra.mxu1 %v4541_v34 }
 0x263   :  { %1081 = vmatprep.subr.bf16.mxu0 %v4504_v22  ;;  %1122 = vmatprep.subr.bf16.mxu1 %v4547_v36 }
 0x266   :  { %1082 = vmatpush1.bf16.msra.mxu0 %v4510_v24  ;;  %1123 = vmatpush1.bf16.msra.mxu1 %v4553_v38 }
 0x267   :  { %1083 = vmatprep.subr.bf16.mxu0 %v4514_v25  ;;  %1124 = vmatprep.subr.bf16.mxu1 %v4557_v40 }
 0x26a   :  { %1084 = vmatpush1.bf16.msra.mxu0 %v4519_v27  ;;  %1125 = vmatpush1.bf16.msra.mxu1 %v4563_v41 }
 0x26b   :  { %1085 = vmatprep.subr.bf16.mxu0 %v4525_v29  ;;  %1126 = vmatprep.subr.bf16.mxu1 %v4565_v42 }
 0x26e   :  { %1086 = vmatpush1.bf16.msra.mxu0 %v4530_v31  ;;  %1127 = vmatpush1.bf16.msra.mxu1 %v4571_v43 }
 0x26f   :  { %1087 = vmatprep.subr.bf16.mxu0 %v4538_v33  ;;  %1128 = vmatprep.subr.bf16.mxu1 %v4574_v44 }
 0x272   :  { %1088 = vmatpush1.bf16.msra.mxu0 %v4543_v35  ;;  %1129 = vmatpush1.bf16.msra.mxu1 %v4580_v45 }
 0x273   :  { %1089 = vmatprep.subr.bf16.mxu0 %v4549_v37  ;;  %1130 = vmatprep.subr.bf16.mxu1 %v4583_v46 }
 0x276   :  { %1090 = vmatpush1.bf16.msra.mxu0 %v4555_v39  ;;  %1131 = vmatpush1.bf16.msra.mxu1 %v4589_v47 }
 0x277   :  { %1227 = vmatprep.subr.bf16.mxu0 %v4478_v4  ;;  %1268 = vmatprep.subr.bf16.mxu1 %v4506_v23 }
 0x319   :  { %v973_v5 = vpop.f32.mrf.mxu0  ;;  %v1014_v10 = vpop.f32.mrf.mxu1 }
 0x31a   :  { %v1025_v11 = vrot.slane %v973_v5, 4  ;;  %v1027_v51 = vrot.slane %v1014_v10, 4 }
 0x31b   :  { %v975_v48 = vpop.f32.mrf.mxu0  ;;  %v1016_v59 = vpop.f32.mrf.mxu1 }
 0x31c   :  { %v1033_v60 = vadd.f32 %v1025_v11, %v4718_v7  ;;  %v1035_v6 = vadd.f32 %v1027_v51, %v4724_v1  ;;  %v1026_v50 = vrot.slane %v975_v48, 4  ;;  %v1028_v54 = vrot.slane %v1016_v59, 4 }
 0x31d   :  { %v977_v0 = vpop.f32.mrf.mxu0  ;;  %v1018_v2 = vpop.f32.mrf.mxu1  ;;  %v1064_v59 = vrot.slane %v4778_v56, 6  ;;  %v4831_v56 = vld [vmem:[#allocation3 + $0xe0] ss:$16 sps:$4 sm:$0xff]  }
 0x31e   :  { %v3581_v19 = vmul.f32 -1.442695, %v1033_v60  ;;  %v3583_v63 = vmul.f32 -1.442695, %v1035_v6  ;;  %v1034_v13 = vadd.f32 %v1026_v50, %v4713_v58  ;;  %v1036_v61 = vadd.f32 %v1028_v54, %v4729_v12 }
 0x31f   :  { %v978_v4 = vpop.f32.mrf.mxu0  ;;  %v1019_v20 = vpop.f32.mrf.mxu1 }
 0x320   :  { %3994 = vpow2.f32 %v3581_v19  ;;  %v3582_v23 = vmul.f32 -1.442695, %v1034_v13  ;;  %v3584_v8 = vmul.f32 -1.442695, %v1036_v61  ;;  %v4835_v20 = vld [vmem:[#allocation3 + $0xc4] ss:$16 sps:$4 sm:$0xff]  }
 0x321   :  { %3996 = vpow2.f32 %v3583_v63 }
 0x322   :  { %3998 = vpow2.f32 %v3582_v23  ;;  %v4841_v23 = vld [vmem:[#allocation3 + $0xc0] ss:$16 sps:$4 sm:$0xff]  }
 0x32d   :  { %v3995_v62 = vpop.eup %3994 }
 0x32e   :  { %v3997_v7 = vpop.eup %3996  ;;  %v1049_v5 = vadd.f32 1.0, %v3995_v62 }
 0x32f   :  { %v3999_v1 = vpop.eup %3998  ;;  %v1051_v49 = vadd.f32 1.0, %v3997_v7 }
 0x330   :  { %v1050_v15 = vadd.f32 1.0, %v3999_v1 }
 0x331   :  { %4000 = vrcp.f32 %v1051_v49 }
 0x332   :  { %4002 = vpow2.f32 %v3584_v8 }
 0x333   :  { %4004 = vrcp.f32 %v1050_v15 }
 0x334   :  { %4006 = vrcp.f32 %v1049_v5 }
 0x33e   :  { %v4001_v58 = vpop.eup %4000 }
 0x33f   :  { %v4003_v10 = vpop.eup %4002  ;;  %v1061_v11 = vmul.f32 2.0, %v4001_v58 }
 0x340   :  { %v4005_v51 = vpop.eup %4004  ;;  %v1052_v12 = vadd.f32 1.0, %v4003_v10 }
 0x341   :  { %v3585_v48 = vadd.f32 -1.0, %v1061_v11  ;;  %v4007_v60 = vpop.eup %4006  ;;  %v1066_v50 = vmul.f32 %v4005_v51, %v1064_v59 }
 0x342   :  { %4008 = vrcp.f32 %v1052_v12 }
 0x343   :  { %v1067_v6 = vmul.f32 %v4007_v60, %v3585_v48 }
 0x345   :  { %v4824_v0 = vadd.f32 %v1067_v6, %v1066_v50 }
 0x347   :  { %4010 = vtanh.f32 %v4824_v0  ;;  %v1200_v58 = vrot.slane %v4824_v0, 6  ;;  %v4888_v0 = vld [vmem:[#allocation3 + $0xe8] ss:$16 sps:$4 sm:$0xff]  }
 0x34f   :  { %v4009_v2 = vpop.eup %4008 }
 0x354   :  { %v4011_v19 = vpop.eup %4010 }
 0x355   :  { %v4827_v63 = vmul.f32 %v4011_v19, %v4009_v2  ;;  %v4892_v2 = vld [vmem:[#allocation3 + $0xcc] ss:$16 sps:$4 sm:$0xff]   ;;  %v4898_v19 = vld [vmem:[#allocation3 + $0xc8] ss:$16 sps:$4 sm:$0xff]  }
 0x357   :  { %v1071_v13 = vpack.c.bf16 %v4827_v63, %v4827_v63 }
 0x359   :  { %v1073_v4 = vrot.slane %v1071_v13, 2  ;;  %v4901_v13 = vld [vmem:[#allocation3 + $0xa4] ss:$16 sps:$4 sm:$0xff]  }
 0x35b   :  { %1108 = vmatmul.mubr.bf16.vlgmr.msra.gmra.mxu0 %v1073_v4  ;;  %1149 = vmatmul.mubr.bf16.vlgmr.msra.gmra.mxu1 %v1073_v4  ;;  %v4904_v4 = vld [vmem:[#allocation3 + $0xac] ss:$16 sps:$4 sm:$0xff]  }
 0x35c   :  { %1228 = vmatpush1.bf16.msra.mxu0 %v4831_v56  ;;  %1269 = vmatpush1.bf16.msra.mxu1 %v4517_v26 }
 0x35d   :  { %1229 = vmatprep.subr.bf16.mxu0 %v4835_v20  ;;  %1270 = vmatprep.subr.bf16.mxu1 %v4522_v28 }
 0x35e   :  { %1259 = vmatprep.mubr.bf16.mxu0 %v5849_v53  ;;  %1300 = vmatprep.mubr.bf16.mxu1 %v5849_v53 }
 0x360   :  { %1230 = vmatpush1.bf16.msra.mxu0 %v4841_v23  ;;  %1271 = vmatpush1.bf16.msra.mxu1 %v4528_v30 }
 0x361   :  { %1231 = vmatprep.subr.bf16.mxu0 %v4495_v17  ;;  %1272 = vmatprep.subr.bf16.mxu1 %v4534_v32  ;;  %v4869_v17 = vld [vmem:[#allocation3 + $0xe4] ss:$16 sps:$4 sm:$0xff]  }
 0x364   :  { %1232 = vmatpush1.bf16.msra.mxu0 %v4501_v21  ;;  %1273 = vmatpush1.bf16.msra.mxu1 %v4541_v34  ;;  %v4872_v21 = vld [vmem:[#allocation3 + $0xec] ss:$16 sps:$4 sm:$0xff]  }
 0x365   :  { %1233 = vmatprep.subr.bf16.mxu0 %v4504_v22  ;;  %1274 = vmatprep.subr.bf16.mxu1 %v4547_v36 }
 0x368   :  { %1234 = vmatpush1.bf16.msra.mxu0 %v4510_v24  ;;  %1275 = vmatpush1.bf16.msra.mxu1 %v4553_v38 }
 0x369   :  { %1235 = vmatprep.subr.bf16.mxu0 %v4514_v25  ;;  %1276 = vmatprep.subr.bf16.mxu1 %v4557_v40 }
 0x36c   :  { %1236 = vmatpush1.bf16.msra.mxu0 %v4519_v27  ;;  %1277 = vmatpush1.bf16.msra.mxu1 %v4563_v41 }
 0x36d   :  { %1237 = vmatprep.subr.bf16.mxu0 %v4525_v29  ;;  %1278 = vmatprep.subr.bf16.mxu1 %v4565_v42 }
 0x370   :  { %1238 = vmatpush1.bf16.msra.mxu0 %v4530_v31  ;;  %1279 = vmatpush1.bf16.msra.mxu1 %v4571_v43 }
 0x371   :  { %1239 = vmatprep.subr.bf16.mxu0 %v4538_v33  ;;  %1280 = vmatprep.subr.bf16.mxu1 %v4574_v44 }
 0x374   :  { %1240 = vmatpush1.bf16.msra.mxu0 %v4543_v35  ;;  %1281 = vmatpush1.bf16.msra.mxu1 %v4580_v45 }
 0x375   :  { %1241 = vmatprep.subr.bf16.mxu0 %v4549_v37  ;;  %1282 = vmatprep.subr.bf16.mxu1 %v4583_v46 }
 0x378   :  { %1242 = vmatpush1.bf16.msra.mxu0 %v4555_v39  ;;  %1283 = vmatpush1.bf16.msra.mxu1 %v4589_v47 }
 0x379   :  { %1360 = vmatprep.subr.bf16.mxu0 %v4869_v17  ;;  %1401 = vmatprep.subr.bf16.mxu1 %v4872_v21 }
 0x41b   :  { %v1109_v22 = vpop.f32.mrf.mxu0  ;;  %v1150_v24 = vpop.f32.mrf.mxu1 }
 0x41c   :  { %v1161_v25 = vrot.slane %v1109_v22, 2  ;;  %v1163_v26 = vrot.slane %v1150_v24, 2  ;;  %v4907_v22 = vld [vmem:[#allocation3 + $0xa0] ss:$16 sps:$4 sm:$0xff]   ;;  %v4910_v24 = vld [vmem:[#allocation3 + $0xa8] ss:$16 sps:$4 sm:$0xff]  }
 0x41d   :  { %v1111_v27 = vpop.f32.mrf.mxu0  ;;  %v1152_v28 = vpop.f32.mrf.mxu1 }
 0x41e   :  { %v1169_v29 = vadd.f32 %v1161_v25, %v4665_v52  ;;  %v1171_v30 = vadd.f32 %v1163_v26, %v4697_v3  ;;  %v1162_v31 = vrot.slane %v1111_v27, 2  ;;  %v1164_v40 = vrot.slane %v1152_v28, 2  ;;  %v4913_v25 = vld [vmem:[#allocation3 + $0x84] ss:$16 sps:$4 sm:$0xff]   ;;  %v4916_v26 = vld [vmem:[#allocation3 + $0x8c] ss:$16 sps:$4 sm:$0xff]  }
 0x41f   :  { %v1113_v32 = vpop.f32.mrf.mxu0  ;;  %v1154_v33 = vpop.f32.mrf.mxu1  ;;  %v4919_v27 = vld [vmem:[#allocation3 + $0x80] ss:$16 sps:$4 sm:$0xff]   ;;  %v4922_v28 = vld [vmem:[#allocation3 + $0x88] ss:$16 sps:$4 sm:$0xff]  }
 0x420   :  { %v3586_v34 = vmul.f32 -1.442695, %v1169_v29  ;;  %v3588_v35 = vmul.f32 -1.442695, %v1171_v30  ;;  %v1170_v36 = vadd.f32 %v1162_v31, %v4681_v9  ;;  %v1172_v41 = vadd.f32 %v1164_v40, %v4709_v16  ;;  %v4925_v29 = vld [vmem:[#allocation3 + $0x64] ss:$16 sps:$4 sm:$0xff]  }
 0x421   :  { %v1114_v37 = vpop.f32.mrf.mxu0  ;;  %v1155_v38 = vpop.f32.mrf.mxu1  ;;  %v4928_v30 = vld [vmem:[#allocation3 + $0x6c] ss:$16 sps:$4 sm:$0xff]   ;;  %v4931_v31 = vld [vmem:[#allocation3 + $0x60] ss:$16 sps:$4 sm:$0xff]   ;;  %v4934_v32 = vld [vmem:[#allocation3 + $0x68] ss:$16 sps:$4 sm:$0xff]  }
 0x422   :  { %4012 = vpow2.f32 %v3586_v34  ;;  %v3587_v39 = vmul.f32 -1.442695, %v1170_v36  ;;  %v3589_v61 = vmul.f32 -1.442695, %v1172_v41  ;;  %v4937_v33 = vld [vmem:[#allocation3 + $0x44] ss:$16 sps:$4 sm:$0xff]  }
 0x423   :  { %4014 = vpow2.f32 %v3588_v35  ;;  %v4941_v34 = vld [vmem:[#allocation3 + $0x40] ss:$16 sps:$4 sm:$0xff]   ;;  %v4945_v35 = vld [vmem:[#allocation3 + $0x24] ss:$16 sps:$4 sm:$0xff]  }
 0x424   :  { %4016 = vpow2.f32 %v3587_v39  ;;  %v4949_v36 = vld [vmem:[#allocation3 + $0x20] ss:$16 sps:$4 sm:$0xff]   ;;  %v4953_v37 = vld [vmem:[#allocation3 + $0x4] ss:$16 sps:$4 sm:$0xff]  }
 0x42f   :  { %v4013_v54 = vpop.eup %4012 }
 0x430   :  { %v4015_v52 = vpop.eup %4014  ;;  %v1185_v8 = vadd.f32 1.0, %v4013_v54 }
 0x431   :  { %v4017_v3 = vpop.eup %4016  ;;  %v1187_v62 = vadd.f32 1.0, %v4015_v52 }
 0x432   :  { %v1186_v7 = vadd.f32 1.0, %v4017_v3 }
 0x433   :  { %4018 = vrcp.f32 %v1187_v62 }
 0x434   :  { %4020 = vpow2.f32 %v3589_v61 }
 0x435   :  { %4022 = vrcp.f32 %v1186_v7  ;;  %v5850_v7 = vld [vmem:[#allocation18_spill] sm:$0xff] }
 0x436   :  { %4024 = vrcp.f32 %v1185_v8 }
 0x440   :  { %v4019_v9 = vpop.eup %4018 }
 0x441   :  { %v4021_v1 = vpop.eup %4020  ;;  %v1197_v49 = vmul.f32 2.0, %v4019_v9 }
 0x442   :  { %v4023_v15 = vpop.eup %4022  ;;  %v1188_v16 = vadd.f32 1.0, %v4021_v1 }
 0x443   :  { %v3590_v5 = vadd.f32 -1.0, %v1197_v49  ;;  %v4025_v10 = vpop.eup %4024  ;;  %v1202_v51 = vmul.f32 %v4023_v15, %v1200_v58 }
 0x444   :  { %4026 = vrcp.f32 %v1188_v16 }
 0x445   :  { %v1203_v11 = vmul.f32 %v4025_v10, %v3590_v5 }
 0x447   :  { %v4880_v48 = vadd.f32 %v1203_v11, %v1202_v51 }
 0x449   :  { %4028 = vtanh.f32 %v4880_v48 }
 0x451   :  { %v4027_v59 = vpop.eup %4026 }
 0x456   :  { %v4029_v60 = vpop.eup %4028 }
 0x457   :  { %v4883_v12 = vmul.f32 %v4029_v60, %v4027_v59 }
 0x459   :  { %v1223_v6 = vpack.c.bf16 %v4883_v12, %v4883_v12 }
 0x45b   :  { %v1225_v50 = vrot.slane %v1223_v6, 3  ;;  %v1340_v6 = vrot.slane %v4880_v48, 6  ;;  %v4996_v48 = vld [vmem:[#allocation3 + $0x4c] ss:$16 sps:$4 sm:$0xff]  }
 0x45d   :  { %1260 = vmatmul.mubr.bf16.vlgmr.msra.gmra.mxu0 %v1225_v50  ;;  %1301 = vmatmul.mubr.bf16.vlgmr.msra.gmra.mxu1 %v1225_v50 }
 0x45e   :  { %1361 = vmatpush1.bf16.msra.mxu0 %v4831_v56  ;;  %1402 = vmatpush1.bf16.msra.mxu1 %v4888_v0 }
 0x45f   :  { %1362 = vmatprep.subr.bf16.mxu0 %v4835_v20  ;;  %1403 = vmatprep.subr.bf16.mxu1 %v4892_v2 }
 0x460   :  { %1392 = vmatprep.mubr.bf16.mxu0 %v5849_v53  ;;  %1433 = vmatprep.mubr.bf16.mxu1 %v5849_v53 }
 0x462   :  { %1363 = vmatpush1.bf16.msra.mxu0 %v4841_v23  ;;  %1404 = vmatpush1.bf16.msra.mxu1 %v4898_v19 }
 0x463   :  { %1364 = vmatprep.subr.bf16.mxu0 %v4901_v13  ;;  %1405 = vmatprep.subr.bf16.mxu1 %v4904_v4 }
 0x466   :  { %1365 = vmatpush1.bf16.msra.mxu0 %v4907_v22  ;;  %1406 = vmatpush1.bf16.msra.mxu1 %v4910_v24 }
 0x467   :  { %1366 = vmatprep.subr.bf16.mxu0 %v4913_v25  ;;  %1407 = vmatprep.subr.bf16.mxu1 %v4916_v26 }
 0x46a   :  { %1367 = vmatpush1.bf16.msra.mxu0 %v4919_v27  ;;  %1408 = vmatpush1.bf16.msra.mxu1 %v4922_v28 }
 0x46b   :  { %1368 = vmatprep.subr.bf16.mxu0 %v4925_v29  ;;  %1409 = vmatprep.subr.bf16.mxu1 %v4928_v30 }
 0x46e   :  { %1369 = vmatpush1.bf16.msra.mxu0 %v4931_v31  ;;  %1410 = vmatpush1.bf16.msra.mxu1 %v4934_v32 }
 0x46f   :  { %1370 = vmatprep.subr.bf16.mxu0 %v4937_v33  ;;  %1411 = vmatprep.subr.bf16.mxu1 %v4565_v42  ;;  %v4957_v42 = vld [vmem:[#allocation3] ss:$16 sps:$4 sm:$0xff]  }
 0x472   :  { %1371 = vmatpush1.bf16.msra.mxu0 %v4941_v34  ;;  %1412 = vmatpush1.bf16.msra.mxu1 %v4571_v43 }
 0x473   :  { %1372 = vmatprep.subr.bf16.mxu0 %v4945_v35  ;;  %1413 = vmatprep.subr.bf16.mxu1 %v4574_v44 }
 0x476   :  { %1373 = vmatpush1.bf16.msra.mxu0 %v4949_v36  ;;  %1414 = vmatpush1.bf16.msra.mxu1 %v4580_v45 }
 0x477   :  { %1374 = vmatprep.subr.bf16.mxu0 %v4953_v37  ;;  %1415 = vmatprep.subr.bf16.mxu1 %v4583_v46 }
 0x47a   :  { %1375 = vmatpush1.bf16.msra.mxu0 %v4957_v42  ;;  %1416 = vmatpush1.bf16.msra.mxu1 %v4589_v47 }
 0x47b   :  { %1496 = vmatprep.subr.bf16.mxu0 %v4869_v17  ;;  %1537 = vmatprep.subr.bf16.mxu1 %v4872_v21 }
 0x51d   :  { %v1261_v43 = vpop.f32.mrf.mxu0  ;;  %v1302_v44 = vpop.f32.mrf.mxu1 }
 0x51e   :  { %v1309_v45 = vadd.f32 %v1261_v43, %v4656_v18  ;;  %v1311_v38 = vadd.f32 %v1302_v44, %v4689_v55 }
 0x51f   :  { %v1263_v39 = vpop.f32.mrf.mxu0  ;;  %v1304_v40 = vpop.f32.mrf.mxu1 }
 0x520   :  { %v3591_v41 = vmul.f32 -1.442695, %v1309_v45  ;;  %v3593_v46 = vmul.f32 -1.442695, %v1311_v38  ;;  %v1310_v54 = vadd.f32 %v1263_v39, %v4669_v57  ;;  %v1312_v8 = vadd.f32 %v1304_v40, %v5850_v7 }
 0x521   :  { %v1265_v52 = vpop.f32.mrf.mxu0  ;;  %v1306_v61 = vpop.f32.mrf.mxu1 }
 0x522   :  { %4030 = vpow2.f32 %v3591_v41  ;;  %v3592_v47 = vmul.f32 -1.442695, %v1310_v54  ;;  %v3594_v49 = vmul.f32 -1.442695, %v1312_v8  ;;  %v5000_v54 = vld [vmem:[#allocation3 + $0x48] ss:$16 sps:$4 sm:$0xff]  }
 0x523   :  { %4032 = vpow2.f32 %v3593_v46  ;;  %v1266_v3 = vpop.f32.mrf.mxu0  ;;  %v1307_v62 = vpop.f32.mrf.mxu1  ;;  %v5004_v52 = vld [vmem:[#allocation3 + $0x2c] ss:$16 sps:$4 sm:$0xff]   ;;  %v5008_v61 = vld [vmem:[#allocation3 + $0x28] ss:$16 sps:$4 sm:$0xff]  }
 0x524   :  { %4034 = vpow2.f32 %v3592_v47  ;;  %v5012_v47 = vld [vmem:[#allocation3 + $0xc] ss:$16 sps:$4 sm:$0xff]   ;;  %v5016_v3 = vld [vmem:[#allocation3 + $0x8] ss:$16 sps:$4 sm:$0xff]  }
 0x52f   :  { %v4031_v9 = vpop.eup %4030 }
 0x530   :  { %v4033_v1 = vpop.eup %4032  ;;  %v1325_v10 = vadd.f32 1.0, %v4031_v9 }
 0x531   :  { %v4035_v15 = vpop.eup %4034  ;;  %v1327_v5 = vadd.f32 1.0, %v4033_v1 }
 0x532   :  { %v1326_v58 = vadd.f32 1.0, %v4035_v15 }
 0x533   :  { %4036 = vrcp.f32 %v1327_v5  ;;  %v5851_v5 = vld [vmem:[#allocation13_spill] sm:$0xff] }
 0x534   :  { %4038 = vpow2.f32 %v3594_v49 }
 0x535   :  { %4040 = vrcp.f32 %v1326_v58 }
 0x536   :  { %4042 = vrcp.f32 %v1325_v10  ;;  %v5852_v10 = vld [vmem:[#allocation17_spill] sm:$0xff] }
 0x540   :  { %v4037_v16 = vpop.eup %4036 }
 0x541   :  { %v4039_v11 = vpop.eup %4038  ;;  %v1337_v51 = vmul.f32 2.0, %v4037_v16 }
 0x542   :  { %v4041_v59 = vpop.eup %4040  ;;  %v1328_v43 = vadd.f32 1.0, %v4039_v11 }
 0x543   :  { %v3595_v60 = vadd.f32 -1.0, %v1337_v51  ;;  %v4043_v50 = vpop.eup %4042  ;;  %v1342_v45 = vmul.f32 %v4041_v59, %v1340_v6 }
 0x544   :  { %4044 = vrcp.f32 %v1328_v43 }
 0x545   :  { %v1343_v44 = vmul.f32 %v4043_v50, %v3595_v60  ;;  %v5853_v50 = vld [vmem:[#allocation14_spill] sm:$0xff] }
 0x547   :  { %v4968_v38 = vadd.f32 %v1343_v44, %v1342_v45 }
 0x549   :  { %4046 = vtanh.f32 %v4968_v38 }
 0x551   :  { %v4045_v39 = vpop.eup %4044 }
 0x556   :  { %v4047_v40 = vpop.eup %4046 }
 0x557   :  { %v4971_v41 = vmul.f32 %v4047_v40, %v4045_v39  ;;  %v5854_v39 = vld [vmem:[#allocation19_spill] sm:$0xff] }
 0x559   :  { %v1359_v46 = vpack.c.bf16 %v4971_v41, %v4971_v41 }
 0x55b   :  { %1393 = vmatmul.mubr.bf16.vlgmr.msra.gmra.mxu0 %v1359_v46  ;;  %1434 = vmatmul.mubr.bf16.vlgmr.msra.gmra.mxu1 %v1359_v46 }
 0x55c   :  { %1497 = vmatpush1.bf16.msra.mxu0 %v4831_v56  ;;  %1538 = vmatpush1.bf16.msra.mxu1 %v4888_v0 }
 0x55d   :  { %1498 = vmatprep.subr.bf16.mxu0 %v4835_v20  ;;  %1539 = vmatprep.subr.bf16.mxu1 %v4892_v2 }
 0x55e   :  { %1528 = vmatprep.mubr.bf16.mxu0 %v5849_v53  ;;  %1569 = vmatprep.mubr.bf16.mxu1 %v5849_v53 }
 0x560   :  { %1499 = vmatpush1.bf16.msra.mxu0 %v4841_v23  ;;  %1540 = vmatpush1.bf16.msra.mxu1 %v4898_v19 }
 0x561   :  { %1500 = vmatprep.subr.bf16.mxu0 %v4901_v13  ;;  %1541 = vmatprep.subr.bf16.mxu1 %v4904_v4 }
 0x564   :  { %1501 = vmatpush1.bf16.msra.mxu0 %v4907_v22  ;;  %1542 = vmatpush1.bf16.msra.mxu1 %v4910_v24 }
 0x565   :  { %1502 = vmatprep.subr.bf16.mxu0 %v4913_v25  ;;  %1543 = vmatprep.subr.bf16.mxu1 %v4916_v26 }
 0x568   :  { %1503 = vmatpush1.bf16.msra.mxu0 %v4919_v27  ;;  %1544 = vmatpush1.bf16.msra.mxu1 %v4922_v28 }
 0x569   :  { %1504 = vmatprep.subr.bf16.mxu0 %v4925_v29  ;;  %1545 = vmatprep.subr.bf16.mxu1 %v4928_v30 }
 0x56c   :  { %1505 = vmatpush1.bf16.msra.mxu0 %v4931_v31  ;;  %1546 = vmatpush1.bf16.msra.mxu1 %v4934_v32 }
 0x56d   :  { %1506 = vmatprep.subr.bf16.mxu0 %v4937_v33  ;;  %1547 = vmatprep.subr.bf16.mxu1 %v4996_v48 }
 0x570   :  { %1507 = vmatpush1.bf16.msra.mxu0 %v4941_v34  ;;  %1548 = vmatpush1.bf16.msra.mxu1 %v5000_v54 }
 0x571   :  { %1508 = vmatprep.subr.bf16.mxu0 %v4945_v35  ;;  %1549 = vmatprep.subr.bf16.mxu1 %v5004_v52 }
 0x574   :  { %1509 = vmatpush1.bf16.msra.mxu0 %v4949_v36  ;;  %1550 = vmatpush1.bf16.msra.mxu1 %v5008_v61 }
 0x575   :  { %1510 = vmatprep.subr.bf16.mxu0 %v4953_v37  ;;  %1551 = vmatprep.subr.bf16.mxu1 %v5012_v47 }
 0x578   :  { %1511 = vmatpush1.bf16.msra.mxu0 %v4957_v42  ;;  %1552 = vmatpush1.bf16.msra.mxu1 %v5016_v3 }
 0x579   :  { %1632 = vmatprep.subr.bf16.mxu0 %v4869_v17  ;;  %1673 = vmatprep.subr.bf16.mxu1 %v4872_v21 }
 0x61b   :  { %v1394_v62 = vpop.f32.mrf.mxu0  ;;  %v1435_v8 = vpop.f32.mrf.mxu1 }
 0x61c   :  { %v1446_v9 = vrot.slane %v1394_v62, 6  ;;  %v1448_v1 = vrot.slane %v1435_v8, 6 }
 0x61d   :  { %v1396_v49 = vpop.f32.mrf.mxu0  ;;  %v1437_v15 = vpop.f32.mrf.mxu1 }
 0x61e   :  { %v1454_v58 = vadd.f32 %v1446_v9, %v5851_v5  ;;  %v1456_v16 = vadd.f32 %v1448_v1, %v5852_v10  ;;  %v1447_v11 = vrot.slane %v1396_v49, 6  ;;  %v1449_v45 = vrot.slane %v1437_v15, 6 }
 0x61f   :  { %v1398_v51 = vpop.f32.mrf.mxu0  ;;  %v1439_v59 = vpop.f32.mrf.mxu1  ;;  %v1485_v15 = vrot.slane %v4968_v38, 6 }
 0x620   :  { %v3596_v60 = vmul.f32 -1.442695, %v1454_v58  ;;  %v3598_v6 = vmul.f32 -1.442695, %v1456_v16  ;;  %v1455_v43 = vadd.f32 %v1447_v11, %v5853_v50  ;;  %v1457_v40 = vadd.f32 %v1449_v45, %v5854_v39 }
 0x621   :  { %v1399_v17 = vpop.f32.mrf.mxu0  ;;  %v1440_v44 = vpop.f32.mrf.mxu1 }
 0x622   :  { %4048 = vpow2.f32 %v3596_v60  ;;  %v3597_v21 = vmul.f32 -1.442695, %v1455_v43  ;;  %v3599_v8 = vmul.f32 -1.442695, %v1457_v40 }
 0x623   :  { %4050 = vpow2.f32 %v3598_v6 }
 0x624   :  { %4052 = vpow2.f32 %v3597_v21 }
 0x62f   :  { %v4049_v46 = vpop.eup %4048 }
 0x630   :  { %v4051_v62 = vpop.eup %4050  ;;  %v1470_v51 = vadd.f32 1.0, %v4049_v46  ;;  %v1785_v46 = vrot.slane %v4827_v63, 2 }
 0x631   :  { %v4053_v9 = vpop.eup %4052  ;;  %v1472_v1 = vadd.f32 1.0, %v4051_v62  ;;  %v1781_v62 = vrot.slane %v4883_v12, 6 }
 0x632   :  { %v1471_v49 = vadd.f32 1.0, %v4053_v9 }
 0x633   :  { %4054 = vrcp.f32 %v1472_v1  ;;  %v1783_v1 = vsel %vm4639_vm9, %v4971_v41, %v1781_v62  ;;  %v3862_v62 = vld [vmem:[#allocation5 + $0xe0] ss:$16 sps:$4 sm:$0xff]  }
 0x634   :  { %4056 = vpow2.f32 %v3599_v8 }
 0x635   :  { %4058 = vrcp.f32 %v1471_v49 }
 0x636   :  { %4060 = vrcp.f32 %v1470_v51 }
 0x640   :  { %v4055_v58 = vpop.eup %4054 }
 0x641   :  { %v4057_v16 = vpop.eup %4056  ;;  %v1482_v11 = vmul.f32 2.0, %v4055_v58 }
 0x642   :  { %v4059_v59 = vpop.eup %4058  ;;  %v1473_v43 = vadd.f32 1.0, %v4057_v16 }
 0x643   :  { %v3600_v60 = vadd.f32 -1.0, %v1482_v11  ;;  %v4061_v6 = vpop.eup %4060  ;;  %v1487_v44 = vmul.f32 %v4059_v59, %v1485_v15 }
 0x644   :  { %4062 = vrcp.f32 %v1473_v43 }
 0x645   :  { %v1488_v17 = vmul.f32 %v4061_v6, %v3600_v60  ;;  %v1789_v6 = vrot.slane %v4781_v14, 6 }
 0x647   :  { %v5026_v21 = vadd.f32 %v1488_v17, %v1487_v44 }
 0x649   :  { %4064 = vtanh.f32 %v5026_v21 }
 0x651   :  { %v4063_v45 = vpop.eup %4062 }
 0x656   :  { %v4065_v40 = vpop.eup %4064 }
 0x657   :  { %v5031_v8 = vmul.f32 %v4065_v40, %v4063_v45  ;;  %v3864_v40 = vld [vmem:[#allocation5 + $0xe4] ss:$16 sps:$4 sm:$0xff]  }
 0x659   :  { %v1492_v38 = vpack.c.bf16 %v5031_v8, %v5031_v8  ;;  %v1787_v49 = vsel %vm4639_vm9, %v5031_v8, %v1785_v46  ;;  %v3867_v46 = vld [vmem:[#allocation5 + $0xec] ss:$16 sps:$4 sm:$0xff]  }
 0x65a   :  { %v5042_v51 = vsel %vm395_vm0, %v1783_v1, %v1787_v49  ;;  %v3870_v1 = vld [vmem:[#allocation5 + $0xc4] ss:$16 sps:$4 sm:$0xff]   ;;  %v3873_v49 = vld [vmem:[#allocation5 + $0xcc] ss:$16 sps:$4 sm:$0xff]  }
 0x65b   :  { %v1494_v58 = vrot.slane %v1492_v38, 1  ;;  %v3865_v38 = vld [vmem:[#allocation5 + $0xe8] ss:$16 sps:$4 sm:$0xff]  }
 0x65d   :  { %1529 = vmatmul.mubr.bf16.vlgmr.msra.gmra.mxu0 %v1494_v58  ;;  %1570 = vmatmul.mubr.bf16.vlgmr.msra.gmra.mxu1 %v1494_v58  ;;  %v3868_v58 = vld [vmem:[#allocation5 + $0xc0] ss:$16 sps:$4 sm:$0xff]  }
 0x65e   :  { %1633 = vmatpush1.bf16.msra.mxu0 %v4831_v56  ;;  %1674 = vmatpush1.bf16.msra.mxu1 %v4888_v0 }
 0x65f   :  { %1634 = vmatprep.subr.bf16.mxu0 %v4835_v20  ;;  %1675 = vmatprep.subr.bf16.mxu1 %v4892_v2 }
 0x660   :  { %1664 = vmatprep.mubr.bf16.mxu0 %v5849_v53  ;;  %1705 = vmatprep.mubr.bf16.mxu1 %v5849_v53 }
 0x662   :  { %1635 = vmatpush1.bf16.msra.mxu0 %v4841_v23  ;;  %1676 = vmatpush1.bf16.msra.mxu1 %v4898_v19 }
 0x663   :  { %1636 = vmatprep.subr.bf16.mxu0 %v4901_v13  ;;  %1677 = vmatprep.subr.bf16.mxu1 %v4904_v4 }
 0x666   :  { %1637 = vmatpush1.bf16.msra.mxu0 %v4907_v22  ;;  %1678 = vmatpush1.bf16.msra.mxu1 %v4910_v24 }
 0x667   :  { %1638 = vmatprep.subr.bf16.mxu0 %v4913_v25  ;;  %1679 = vmatprep.subr.bf16.mxu1 %v4916_v26 }
 0x66a   :  { %1639 = vmatpush1.bf16.msra.mxu0 %v4919_v27  ;;  %1680 = vmatpush1.bf16.msra.mxu1 %v4922_v28 }
 0x66b   :  { %1640 = vmatprep.subr.bf16.mxu0 %v4925_v29  ;;  %1681 = vmatprep.subr.bf16.mxu1 %v4928_v30 }
 0x66e   :  { %1641 = vmatpush1.bf16.msra.mxu0 %v4931_v31  ;;  %1682 = vmatpush1.bf16.msra.mxu1 %v4934_v32 }
 0x66f   :  { %1642 = vmatprep.subr.bf16.mxu0 %v4937_v33  ;;  %1683 = vmatprep.subr.bf16.mxu1 %v4996_v48 }
 0x672   :  { %1643 = vmatpush1.bf16.msra.mxu0 %v4941_v34  ;;  %1684 = vmatpush1.bf16.msra.mxu1 %v5000_v54 }
 0x673   :  { %1644 = vmatprep.subr.bf16.mxu0 %v4945_v35  ;;  %1685 = vmatprep.subr.bf16.mxu1 %v5004_v52 }
 0x676   :  { %1645 = vmatpush1.bf16.msra.mxu0 %v4949_v36  ;;  %1686 = vmatpush1.bf16.msra.mxu1 %v5008_v61 }
 0x677   :  { %1646 = vmatprep.subr.bf16.mxu0 %v4953_v37  ;;  %1687 = vmatprep.subr.bf16.mxu1 %v5012_v47  ;;  %v1621_v47 = vrot.slane %v5026_v21, 6 }
 0x67a   :  { %1647 = vmatpush1.bf16.msra.mxu0 %v4957_v42  ;;  %1688 = vmatpush1.bf16.msra.mxu1 %v5016_v3 }
 0x67b   :  { %1986 = vmatprep.subr.bf16.mxu0 %v3864_v40  ;;  %2029 = vmatprep.subr.bf16.mxu1 %v3867_v46 }
 0x71d   :  { %v1530_v56 = vpop.f32.mrf.mxu0  ;;  %v1571_v20 = vpop.f32.mrf.mxu1 }
 0x71e   :  { %v1582_v23 = vrot.slane %v1530_v56, 4  ;;  %v1584_v0 = vrot.slane %v1571_v20, 4  ;;  %v3876_v56 = vld [vmem:[#allocation5 + $0xa4] ss:$16 sps:$4 sm:$0xff]   ;;  %v3879_v20 = vld [vmem:[#allocation5 + $0xac] ss:$16 sps:$4 sm:$0xff]  }
 0x71f   :  { %v1532_v2 = vpop.f32.mrf.mxu0  ;;  %v1573_v19 = vpop.f32.mrf.mxu1 }
 0x720   :  { %v1590_v13 = vadd.f32 %v1582_v23, %v4656_v18  ;;  %v1592_v4 = vadd.f32 %v1584_v0, %v4689_v55  ;;  %v1583_v22 = vrot.slane %v1532_v2, 4  ;;  %v1585_v32 = vrot.slane %v1573_v19, 4  ;;  %v3874_v23 = vld [vmem:[#allocation5 + $0xa0] ss:$16 sps:$4 sm:$0xff]   ;;  %v3877_v0 = vld [vmem:[#allocation5 + $0xa8] ss:$16 sps:$4 sm:$0xff]  }
 0x721   :  { %v1534_v24 = vpop.f32.mrf.mxu0  ;;  %v1575_v25 = vpop.f32.mrf.mxu1  ;;  %v3880_v2 = vld [vmem:[#allocation5 + $0x80] ss:$16 sps:$4 sm:$0xff]   ;;  %v3882_v19 = vld [vmem:[#allocation5 + $0x84] ss:$16 sps:$4 sm:$0xff]  }
 0x722   :  { %v3601_v26 = vmul.f32 -1.442695, %v1590_v13  ;;  %v3603_v27 = vmul.f32 -1.442695, %v1592_v4  ;;  %v1591_v28 = vadd.f32 %v1583_v22, %v4669_v57  ;;  %v1593_v33 = vadd.f32 %v1585_v32, %v5850_v7  ;;  %v3883_v13 = vld [vmem:[#allocation5 + $0x88] ss:$16 sps:$4 sm:$0xff]  }
 0x723   :  { %v1535_v29 = vpop.f32.mrf.mxu0  ;;  %v1576_v30 = vpop.f32.mrf.mxu1  ;;  %v3885_v4 = vld [vmem:[#allocation5 + $0x8c] ss:$16 sps:$4 sm:$0xff]   ;;  %v3888_v22 = vld [vmem:[#allocation5 + $0x64] ss:$16 sps:$4 sm:$0xff]   ;;  %v3886_v25 = vld [vmem:[#allocation5 + $0x60] ss:$16 sps:$4 sm:$0xff]  }
 0x724   :  { %4066 = vpow2.f32 %v3601_v26  ;;  %v3602_v31 = vmul.f32 -1.442695, %v1591_v28  ;;  %v3604_v35 = vmul.f32 -1.442695, %v1593_v33  ;;  %v3891_v24 = vld [vmem:[#allocation5 + $0x6c] ss:$16 sps:$4 sm:$0xff]  }
 0x725   :  { %4068 = vpow2.f32 %v3603_v27  ;;  %v3889_v26 = vld [vmem:[#allocation5 + $0x68] ss:$16 sps:$4 sm:$0xff]   ;;  %v3894_v27 = vld [vmem:[#allocation5 + $0x44] ss:$16 sps:$4 sm:$0xff]   ;;  %v3897_v28 = vld [vmem:[#allocation5 + $0x4c] ss:$16 sps:$4 sm:$0xff]  }
 0x726   :  { %4070 = vpow2.f32 %v3602_v31  ;;  %v3892_v29 = vld [vmem:[#allocation5 + $0x40] ss:$16 sps:$4 sm:$0xff]   ;;  %v3895_v30 = vld [vmem:[#allocation5 + $0x48] ss:$16 sps:$4 sm:$0xff]   ;;  %v3900_v31 = vld [vmem:[#allocation5 + $0x24] ss:$16 sps:$4 sm:$0xff]  }
 0x727   :  { %v3903_v32 = vld [vmem:[#allocation5 + $0x2c] ss:$16 sps:$4 sm:$0xff]   ;;  %v3898_v33 = vld [vmem:[#allocation5 + $0x20] ss:$16 sps:$4 sm:$0xff]  }
 0x731   :  { %v4067_v34 = vpop.eup %4066 }
 0x732   :  { %v4069_v18 = vpop.eup %4068  ;;  %v1606_v42 = vadd.f32 1.0, %v4067_v34  ;;  %v3901_v34 = vld [vmem:[#allocation5 + $0x28] ss:$16 sps:$4 sm:$0xff]  }
 0x733   :  { %v4071_v55 = vpop.eup %4070  ;;  %v1608_v36 = vadd.f32 1.0, %v4069_v18  ;;  %v3906_v18 = vld [vmem:[#allocation5 + $0x4] ss:$16 sps:$4 sm:$0xff]  }
 0x734   :  { %v1607_v37 = vadd.f32 1.0, %v4071_v55  ;;  %v3904_v55 = vld [vmem:[#allocation5] ss:$16 sps:$4 sm:$0xff]  }
 0x735   :  { %4072 = vrcp.f32 %v1608_v36  ;;  %v3907_v36 = vld [vmem:[#allocation5 + $0x8] ss:$16 sps:$4 sm:$0xff]  }
 0x736   :  { %4074 = vpow2.f32 %v3604_v35  ;;  %v3909_v35 = vld [vmem:[#allocation5 + $0xc] ss:$16 sps:$4 sm:$0xff]  }
 0x737   :  { %4076 = vrcp.f32 %v1607_v37  ;;  %v5098_v37 = vld [vmem:[#allocation7 + $0xe4] ss:$16 sps:$4 sm:$0xff]  }
 0x738   :  { %4078 = vrcp.f32 %v1606_v42  ;;  %v5100_v42 = vld [vmem:[#allocation7 + $0xec] ss:$16 sps:$4 sm:$0xff]  }
 0x742   :  { %v4073_v57 = vpop.eup %4072 }
 0x743   :  { %v4075_v48 = vpop.eup %4074  ;;  %v1618_v54 = vmul.f32 2.0, %v4073_v57 }
 0x744   :  { %v4077_v52 = vpop.eup %4076  ;;  %v1609_v7 = vadd.f32 1.0, %v4075_v48 }
 0x745   :  { %v3605_v61 = vadd.f32 -1.0, %v1618_v54  ;;  %v4079_v3 = vpop.eup %4078  ;;  %v1623_v11 = vmul.f32 %v4077_v52, %v1621_v47 }
 0x746   :  { %4080 = vrcp.f32 %v1609_v7 }
 0x747   :  { %v1624_v16 = vmul.f32 %v4079_v3, %v3605_v61 }
 0x749   :  { %v5081_v59 = vadd.f32 %v1624_v16, %v1623_v11 }
 0x74b   :  { %4082 = vtanh.f32 %v5081_v59 }
 0x753   :  { %v4081_v60 = vpop.eup %4080 }
 0x758   :  { %v4083_v15 = vpop.eup %4082 }
 0x759   :  { %v5085_v43 = vmul.f32 %v4083_v15, %v4081_v60 }
 0x75b   :  { %v1628_v17 = vpack.c.bf16 %v5085_v43, %v5085_v43  ;;  %v1791_v44 = vsel %vm4639_vm9, %v5085_v43, %v1789_v6 }
 0x75c   :  { %v5094_v21 = vsel %vm1797_vm8, %v5042_v51, %v1791_v44  ;;  %v3871_v51 = vld [vmem:[#allocation5 + $0xc8] ss:$16 sps:$4 sm:$0xff]  }
 0x75d   :  { %v1630_v45 = vrot.slane %v1628_v17, 2 }
 0x75f   :  { %1665 = vmatmul.mubr.bf16.vlgmr.msra.gmra.mxu0 %v1630_v45  ;;  %1706 = vmatmul.mubr.bf16.vlgmr.msra.gmra.mxu1 %v1630_v45 }
 0x760   :  { %2018 = vmatprep.mubr.bf16.mxu0 %v5849_v53  ;;  %2061 = vmatprep.mubr.bf16.mxu1 %v5849_v53 }
 0x761   :  { %1987 = vmatpush1.bf16.msra.mxu0 %v3862_v62  ;;  %2030 = vmatpush1.bf16.msra.mxu1 %v3865_v38 }
 0x762   :  { %1988 = vmatprep.subr.bf16.mxu0 %v3870_v1  ;;  %2031 = vmatprep.subr.bf16.mxu1 %v3873_v49 }
 0x765   :  { %1989 = vmatpush1.bf16.msra.mxu0 %v3868_v58  ;;  %2032 = vmatpush1.bf16.msra.mxu1 %v3871_v51 }
 0x766   :  { %1990 = vmatprep.subr.bf16.mxu0 %v3876_v56  ;;  %2033 = vmatprep.subr.bf16.mxu1 %v3879_v20 }
 0x769   :  { %1991 = vmatpush1.bf16.msra.mxu0 %v3874_v23  ;;  %2034 = vmatpush1.bf16.msra.mxu1 %v3877_v0 }
 0x76a   :  { %1992 = vmatprep.subr.bf16.mxu0 %v3882_v19  ;;  %2035 = vmatprep.subr.bf16.mxu1 %v3885_v4 }
 0x76d   :  { %1993 = vmatpush1.bf16.msra.mxu0 %v3880_v2  ;;  %2036 = vmatpush1.bf16.msra.mxu1 %v3883_v13  ;;  %v1757_v2 = vrot.slane %v5081_v59, 6  ;;  %v1777_v59 = vrot.slane %v4971_v41, 2 }
 0x76e   :  { %1994 = vmatprep.subr.bf16.mxu0 %v3888_v22  ;;  %2037 = vmatprep.subr.bf16.mxu1 %v3891_v24 }
 0x76f   :  { %v1779_v41 = vsel %vm4639_vm9, %v4883_v12, %v1777_v59  ;;  %v5142_v12 = vld [vmem:[#allocation7 + $0xc8] ss:$16 sps:$4 sm:$0xff]  }
 0x771   :  { %1995 = vmatpush1.bf16.msra.mxu0 %v3886_v25  ;;  %2038 = vmatpush1.bf16.msra.mxu1 %v3889_v26  ;;  %v1769_v26 = vrot.slane %v5085_v43, 2 }
 0x772   :  { %1996 = vmatprep.subr.bf16.mxu0 %v3894_v27  ;;  %2039 = vmatprep.subr.bf16.mxu1 %v3897_v28  ;;  %v5856_v28 = vld [vmem:[#allocation20_spill] sm:$0xff] }
 0x773   :  { %v1771_v43 = vsel %vm4639_vm9, %v4781_v14, %v1769_v26  ;;  %v5136_v14 = vld [vmem:[#allocation7 + $0xcc] ss:$16 sps:$4 sm:$0xff]  }
 0x775   :  { %1997 = vmatpush1.bf16.msra.mxu0 %v3892_v29  ;;  %2040 = vmatpush1.bf16.msra.mxu1 %v3895_v30  ;;  %v1793_v29 = vrot.slane %v5856_v28, 2  ;;  %v1773_v30 = vrot.slane %v5031_v8, 6 }
 0x776   :  { %1998 = vmatprep.subr.bf16.mxu0 %v3900_v31  ;;  %2041 = vmatprep.subr.bf16.mxu1 %v3903_v32 }
 0x777   :  { %v1775_v8 = vsel %vm4639_vm9, %v4827_v63, %v1773_v30  ;;  %v5140_v63 = vld [vmem:[#allocation7 + $0xc0] ss:$16 sps:$4 sm:$0xff]  }
 0x779   :  { %1999 = vmatpush1.bf16.msra.mxu0 %v3898_v33  ;;  %2042 = vmatpush1.bf16.msra.mxu1 %v3901_v34 }
 0x77a   :  { %2000 = vmatprep.subr.bf16.mxu0 %v3906_v18  ;;  %2043 = vmatprep.subr.bf16.mxu1 %v3909_v35 }
 0x77d   :  { %2001 = vmatpush1.bf16.msra.mxu0 %v3904_v55  ;;  %2044 = vmatpush1.bf16.msra.mxu1 %v3907_v36  ;;  %v5130_v55 = vld [vmem:[#allocation7 + $0xe0] ss:$16 sps:$4 sm:$0xff]   ;;  %v5132_v36 = vld [vmem:[#allocation7 + $0xe8] ss:$16 sps:$4 sm:$0xff]  }
 0x77e   :  { %2248 = vmatprep.subr.bf16.mxu0 %v5098_v37  ;;  %2289 = vmatprep.subr.bf16.mxu1 %v5100_v42 }
 0x81f   :  { %v1666_v57 = vpop.f32.mrf.mxu0  ;;  %v1707_v48 = vpop.f32.mrf.mxu1 }
 0x820   :  { %v1718_v54 = vrot.slane %v1666_v57, 2  ;;  %v1720_v52 = vrot.slane %v1707_v48, 2  ;;  %v5134_v48 = vld [vmem:[#allocation7 + $0xc4] ss:$16 sps:$4 sm:$0xff]  }
 0x821   :  { %v1668_v61 = vpop.f32.mrf.mxu0  ;;  %v1709_v47 = vpop.f32.mrf.mxu1 }
 0x822   :  { %v1726_v3 = vadd.f32 %v1718_v54, %v5851_v5  ;;  %v1728_v7 = vadd.f32 %v1720_v52, %v5852_v10  ;;  %v1719_v16 = vrot.slane %v1668_v61, 2  ;;  %v1721_v46 = vrot.slane %v1709_v47, 2  ;;  %v5146_v54 = vld [vmem:[#allocation7 + $0xa4] ss:$16 sps:$4 sm:$0xff]   ;;  %v5148_v52 = vld [vmem:[#allocation7 + $0xac] ss:$16 sps:$4 sm:$0xff]  }
 0x823   :  { %v1670_v11 = vpop.f32.mrf.mxu0  ;;  %v1711_v60 = vpop.f32.mrf.mxu1  ;;  %v5154_v61 = vld [vmem:[#allocation7 + $0xa0] ss:$16 sps:$4 sm:$0xff]   ;;  %v5156_v47 = vld [vmem:[#allocation7 + $0xa8] ss:$16 sps:$4 sm:$0xff]  }
 0x824   :  { %v3606_v15 = vmul.f32 -1.442695, %v1726_v3  ;;  %v3608_v6 = vmul.f32 -1.442695, %v1728_v7  ;;  %v1727_v17 = vadd.f32 %v1719_v16, %v5853_v50  ;;  %v1729_v62 = vadd.f32 %v1721_v46, %v5854_v39  ;;  %v5160_v3 = vld [vmem:[#allocation7 + $0x84] ss:$16 sps:$4 sm:$0xff]  }
 0x825   :  { %v1671_v44 = vpop.f32.mrf.mxu0  ;;  %v1712_v45 = vpop.f32.mrf.mxu1  ;;  %v5162_v7 = vld [vmem:[#allocation7 + $0x8c] ss:$16 sps:$4 sm:$0xff]   ;;  %v5166_v16 = vld [vmem:[#allocation7 + $0x80] ss:$16 sps:$4 sm:$0xff]   ;;  %v5168_v11 = vld [vmem:[#allocation7 + $0x88] ss:$16 sps:$4 sm:$0xff]  }
 0x826   :  { %4084 = vpow2.f32 %v3606_v15  ;;  %v3607_v40 = vmul.f32 -1.442695, %v1727_v17  ;;  %v3609_v1 = vmul.f32 -1.442695, %v1729_v62  ;;  %v5172_v60 = vld [vmem:[#allocation7 + $0x64] ss:$16 sps:$4 sm:$0xff]  }
 0x827   :  { %4086 = vpow2.f32 %v3608_v6  ;;  %v5174_v15 = vld [vmem:[#allocation7 + $0x6c] ss:$16 sps:$4 sm:$0xff]   ;;  %v5178_v6 = vld [vmem:[#allocation7 + $0x60] ss:$16 sps:$4 sm:$0xff]   ;;  %v5180_v17 = vld [vmem:[#allocation7 + $0x68] ss:$16 sps:$4 sm:$0xff]  }
 0x828   :  { %4088 = vpow2.f32 %v3607_v40  ;;  %v5184_v44 = vld [vmem:[#allocation7 + $0x44] ss:$16 sps:$4 sm:$0xff]   ;;  %v5186_v45 = vld [vmem:[#allocation7 + $0x4c] ss:$16 sps:$4 sm:$0xff]   ;;  %v5190_v40 = vld [vmem:[#allocation7 + $0x40] ss:$16 sps:$4 sm:$0xff]  }
 0x829   :  { %v5192_v46 = vld [vmem:[#allocation7 + $0x48] ss:$16 sps:$4 sm:$0xff]   ;;  %v5196_v62 = vld [vmem:[#allocation7 + $0x24] ss:$16 sps:$4 sm:$0xff]  }
 0x833   :  { %v4085_v38 = vpop.eup %4084 }
 0x834   :  { %v4087_v5 = vpop.eup %4086  ;;  %v1742_v51 = vadd.f32 1.0, %v4085_v38  ;;  %v5198_v38 = vld [vmem:[#allocation7 + $0x2c] ss:$16 sps:$4 sm:$0xff]  }
 0x835   :  { %v4089_v10 = vpop.eup %4088  ;;  %v1744_v49 = vadd.f32 1.0, %v4087_v5  ;;  %v5202_v5 = vld [vmem:[#allocation7 + $0x20] ss:$16 sps:$4 sm:$0xff]  }
 0x836   :  { %v1743_v58 = vadd.f32 1.0, %v4089_v10  ;;  %v5208_v10 = vld [vmem:[#allocation7 + $0x4] ss:$16 sps:$4 sm:$0xff]  }
 0x837   :  { %4090 = vrcp.f32 %v1744_v49  ;;  %v5210_v49 = vld [vmem:[#allocation7 + $0xc] ss:$16 sps:$4 sm:$0xff]  }
 0x838   :  { %4092 = vpow2.f32 %v3609_v1  ;;  %v5204_v1 = vld [vmem:[#allocation7 + $0x28] ss:$16 sps:$4 sm:$0xff]  }
 0x839   :  { %4094 = vrcp.f32 %v1743_v58  ;;  %v5214_v58 = vld [vmem:[#allocation7] ss:$16 sps:$4 sm:$0xff]  }
 0x83a   :  { %4096 = vrcp.f32 %v1742_v51  ;;  %v5216_v51 = vld [vmem:[#allocation7 + $0x8] ss:$16 sps:$4 sm:$0xff]  }
 0x844   :  { %v4091_v50 = vpop.eup %4090 }
 0x845   :  { %v4093_v56 = vpop.eup %4092  ;;  %v1754_v20 = vmul.f32 2.0, %v4091_v50  ;;  %v163_v50 = vld [vmem:[%s5789_s5] sm:$0xf] }
 0x846   :  { %v4095_v23 = vpop.eup %4094  ;;  %v1745_v39 = vadd.f32 1.0, %v4093_v56  ;;  %v5857_v56 = vld [vmem:[#allocation10_spill] sm:$0xff] }
 0x847   :  { %v3610_v0 = vadd.f32 -1.0, %v1754_v20  ;;  %v4097_v19 = vpop.eup %4096  ;;  %v1759_v4 = vmul.f32 %v4095_v23, %v1757_v2  ;;  %v5858_v20 = vsub.s32 0, %v5857_v56 }
 0x848   :  { %4098 = vrcp.f32 %v1745_v39 }
 0x849   :  { %v1760_v13 = vmul.f32 %v4097_v19, %v3610_v0  ;;  %v1809_v23 = vrot.slane %v163_v50, %v5858_v20  ;;  %v5859_v0 = vsub.s32 2, %v5857_v56 }
 0x84b   :  { %v1761_v22 = vadd.f32 %v1760_v13, %v1759_v4  ;;  %v1817_v2 = vrot.slane %v163_v50, %v5859_v0  ;;  %v5860_v13 = vsub.s32 1, %v5857_v56 }
 0x84d   :  { %4100 = vtanh.f32 %v1761_v22  ;;  %v1813_v4 = vrot.slane %v163_v50, %v5860_v13  ;;  %v5861_v22 = vsub.s32 3, %v5857_v56 }
 0x855   :  { %v4099_v24 = vpop.eup %4098 }
 0x85a   :  { %v4101_v25 = vpop.eup %4100 }
 0x85b   :  { %v1763_v27 = vmul.f32 %v4101_v25, %v4099_v24  ;;  %v1821_v24 = vrot.slane %v163_v50, %v5861_v22 }
 0x85d   :  { %v1765_v31 = vrot.slane %v1763_v27, 6  ;;  %v1795_v32 = vsel %vm4639_vm9, %v1763_v27, %v1793_v29 }
 0x85e   :  { %v1803_v33 = vsel %vm1799_vm10, %v5094_v21, %v1795_v32 }
 0x85f   :  { %v1767_v34 = vsel %vm4639_vm9, %v5856_v28, %v1765_v31 }
 0x860   :  { %v1796_v18 = vsel %vm395_vm0, %v1767_v34, %v1771_v43  ;;  %vm4382_vm0 = vmmov 0  }
 0x861   :  { %v1798_v21 = vsel %vm1797_vm8, %v1796_v18, %v1775_v8 }
 0x862   :  { %v1800_v35 = vsel %vm1799_vm10, %v1798_v21, %v1779_v41 }
 0x863   :  { %v1804_v57 = vpack.c.bf16 %v1803_v33, %v1800_v35 }
 0x865   :  { %2019 = vmatmul.mubr.bf16.vlgmr.msra.gmra.mxu0 %v1804_v57  ;;  %2062 = vmatmul.mubr.bf16.vlgmr.msra.gmra.mxu1 %v1804_v57 }
 0x866   :  { %2249 = vmatpush1.bf16.msra.mxu0 %v5130_v55  ;;  %2290 = vmatpush1.bf16.msra.mxu1 %v5132_v36 }
 0x867   :  { %2250 = vmatprep.subr.bf16.mxu0 %v5134_v48  ;;  %2291 = vmatprep.subr.bf16.mxu1 %v5136_v14 }
 0x868   :  { %2280 = vmatprep.mubr.bf16.mxu0 %v5849_v53  ;;  %2321 = vmatprep.mubr.bf16.mxu1 %v5849_v53 }
 0x86a   :  { %2251 = vmatpush1.bf16.msra.mxu0 %v5140_v63  ;;  %2292 = vmatpush1.bf16.msra.mxu1 %v5142_v12 }
 0x86b   :  { %2252 = vmatprep.subr.bf16.mxu0 %v5146_v54  ;;  %2293 = vmatprep.subr.bf16.mxu1 %v5148_v52 }
 0x86e   :  { %2253 = vmatpush1.bf16.msra.mxu0 %v5154_v61  ;;  %2294 = vmatpush1.bf16.msra.mxu1 %v5156_v47 }
 0x86f   :  { %2254 = vmatprep.subr.bf16.mxu0 %v5160_v3  ;;  %2295 = vmatprep.subr.bf16.mxu1 %v5162_v7 }
 0x872   :  { %2255 = vmatpush1.bf16.msra.mxu0 %v5166_v16  ;;  %2296 = vmatpush1.bf16.msra.mxu1 %v5168_v11 }
 0x873   :  { %2256 = vmatprep.subr.bf16.mxu0 %v5172_v60  ;;  %2297 = vmatprep.subr.bf16.mxu1 %v5174_v15 }
 0x876   :  { %2257 = vmatpush1.bf16.msra.mxu0 %v5178_v6  ;;  %2298 = vmatpush1.bf16.msra.mxu1 %v5180_v17 }
 0x877   :  { %2258 = vmatprep.subr.bf16.mxu0 %v5184_v44  ;;  %2299 = vmatprep.subr.bf16.mxu1 %v5186_v45 }
 0x87a   :  { %2259 = vmatpush1.bf16.msra.mxu0 %v5190_v40  ;;  %2300 = vmatpush1.bf16.msra.mxu1 %v5192_v46 }
 0x87b   :  { %2260 = vmatprep.subr.bf16.mxu0 %v5196_v62  ;;  %2301 = vmatprep.subr.bf16.mxu1 %v5198_v38 }
 0x87e   :  { %2261 = vmatpush1.bf16.msra.mxu0 %v5202_v5  ;;  %2302 = vmatpush1.bf16.msra.mxu1 %v5204_v1 }
 0x87f   :  { %2262 = vmatprep.subr.bf16.mxu0 %v5208_v10  ;;  %2303 = vmatprep.subr.bf16.mxu1 %v5210_v49 }
 0x882   :  { %2263 = vmatpush1.bf16.msra.mxu0 %v5214_v58  ;;  %2304 = vmatpush1.bf16.msra.mxu1 %v5216_v51 }
 0x883   :  { %2378 = vmatprep.subr.bf16.mxu0 %v5098_v37  ;;  %2419 = vmatprep.subr.bf16.mxu1 %v5100_v42 }
 0x885   :  { %2281 = vmatmul.mubr.bf16.vlgmr.msra.gmra.mxu0 %v5849_v53  ;;  %2322 = vmatmul.mubr.bf16.vlgmr.msra.gmra.mxu1 %v5849_v53 }
 0x886   :  { %2379 = vmatpush1.bf16.msra.mxu0 %v5130_v55  ;;  %2420 = vmatpush1.bf16.msra.mxu1 %v5132_v36 }
 0x887   :  { %2380 = vmatprep.subr.bf16.mxu0 %v5134_v48  ;;  %2421 = vmatprep.subr.bf16.mxu1 %v5136_v14 }
 0x888   :  { %2410 = vmatprep.mubr.bf16.mxu0 %v5849_v53  ;;  %2451 = vmatprep.mubr.bf16.mxu1 %v5849_v53 }
 0x88a   :  { %2381 = vmatpush1.bf16.msra.mxu0 %v5140_v63  ;;  %2422 = vmatpush1.bf16.msra.mxu1 %v5142_v12 }
 0x88b   :  { %2382 = vmatprep.subr.bf16.mxu0 %v5146_v54  ;;  %2423 = vmatprep.subr.bf16.mxu1 %v5148_v52 }
 0x88e   :  { %2383 = vmatpush1.bf16.msra.mxu0 %v5154_v61  ;;  %2424 = vmatpush1.bf16.msra.mxu1 %v5156_v47 }
 0x88f   :  { %2384 = vmatprep.subr.bf16.mxu0 %v5160_v3  ;;  %2425 = vmatprep.subr.bf16.mxu1 %v5162_v7 }
 0x892   :  { %2385 = vmatpush1.bf16.msra.mxu0 %v5166_v16  ;;  %2426 = vmatpush1.bf16.msra.mxu1 %v5168_v11 }
 0x893   :  { %2386 = vmatprep.subr.bf16.mxu0 %v5172_v60  ;;  %2427 = vmatprep.subr.bf16.mxu1 %v5174_v15 }
 0x896   :  { %2387 = vmatpush1.bf16.msra.mxu0 %v5178_v6  ;;  %2428 = vmatpush1.bf16.msra.mxu1 %v5180_v17 }
 0x897   :  { %2388 = vmatprep.subr.bf16.mxu0 %v5184_v44  ;;  %2429 = vmatprep.subr.bf16.mxu1 %v5186_v45 }
 0x89a   :  { %2389 = vmatpush1.bf16.msra.mxu0 %v5190_v40  ;;  %2430 = vmatpush1.bf16.msra.mxu1 %v5192_v46 }
 0x89b   :  { %2390 = vmatprep.subr.bf16.mxu0 %v5196_v62  ;;  %2431 = vmatprep.subr.bf16.mxu1 %v5198_v38 }
 0x89e   :  { %2391 = vmatpush1.bf16.msra.mxu0 %v5202_v5  ;;  %2432 = vmatpush1.bf16.msra.mxu1 %v5204_v1 }
 0x89f   :  { %2392 = vmatprep.subr.bf16.mxu0 %v5208_v10  ;;  %2433 = vmatprep.subr.bf16.mxu1 %v5210_v49 }
 0x8a2   :  { %2393 = vmatpush1.bf16.msra.mxu0 %v5214_v58  ;;  %2434 = vmatpush1.bf16.msra.mxu1 %v5216_v51 }
 0x8a3   :  { %2514 = vmatprep.subr.bf16.mxu0 %v5098_v37  ;;  %2555 = vmatprep.subr.bf16.mxu1 %v5100_v42 }
 0x925   :  { %v2020_v19 = vpop.f32.mrf.mxu0  ;;  %v2063_v39 = vpop.f32.mrf.mxu1 }
 0x926   :  { %v2021_v25 = vadd.f32 %v2020_v19, %v1809_v23  ;;  %v2064_v26 = vadd.f32 %v2063_v39, %v1817_v2 }
 0x927   :  { %v2022_v27 = vpop.f32.mrf.mxu0  ;;  %v2065_v28 = vpop.f32.mrf.mxu1 }
 0x928   :  { %v2023_v31 = vadd.f32 %v2022_v27, %v1813_v4  ;;  %v2066_v59 = vadd.f32 %v2065_v28, %v1821_v24  ;;  %v2786_v8 = vrot.slane %v2021_v25, 6  ;;  %v2788_v18 = vrot.slane %v2064_v26, 6 }
 0x929   :  { %v2024_v29 = vpop.f32.mrf.mxu0  ;;  %v2067_v30 = vpop.f32.mrf.mxu1 }
 0x92a   :  { %v2025_v32 = vadd.f32 %v2024_v29, %v1809_v23  ;;  %v2068_v33 = vadd.f32 %v2067_v30, %v1817_v2  ;;  %v2787_v0 = vrot.slane %v2023_v31, 6  ;;  %v2789_v19 = vrot.slane %v2066_v59, 6 }
 0x92b   :  { %v2026_v34 = vpop.f32.mrf.mxu0  ;;  %v2069_v43 = vpop.f32.mrf.mxu1  ;;  %v2922_v23 = vrot.slane %v2021_v25, 2  ;;  %v2924_v2 = vrot.slane %v2064_v26, 2  ;;  %v2923_v30 = vrot.slane %v2023_v31, 2 }
 0x92c   :  { %v2027_v41 = vadd.f32 %v2026_v34, %v1813_v4  ;;  %v2070_v21 = vadd.f32 %v2069_v43, %v1821_v24  ;;  %v2365_v35 = vrot.slane %v2025_v32, 2  ;;  %v2367_v57 = vrot.slane %v2068_v33, 2 }
 0x92d   :  { %v5273_v50 = vsel %vm4639_vm9, %v2025_v32, %v2786_v8  ;;  %v5277_v20 = vsel %vm4675_vm4, %v2068_v33, %v2788_v18  ;;  %v2925_v34 = vrot.slane %v2066_v59, 2  ;;  %v5305_v18 = vsel %vm4639_vm9, %v2025_v32, %v2922_v23 }
 0x92e   :  { %v5281_v39 = vsel %vm4639_vm9, %v2021_v25, %v2365_v35  ;;  %v5285_v13 = vsel %vm4675_vm4, %v2064_v26, %v2367_v57  ;;  %v2366_v4 = vrot.slane %v2027_v41, 2  ;;  %v2368_v22 = vrot.slane %v2070_v21, 2  ;;  %5866 = vst [vmem:[#allocation13_spill] sm:$0xff] %v5305_v18 }
 0x92f   :  { %v5289_v27 = vsel %vm4650_vm14, %v2027_v41, %v2787_v0  ;;  %v5293_v29 = vsel %vm4683_vm7, %v2070_v21, %v2789_v19  ;;  %v5309_v35 = vsel %vm4675_vm4, %v2068_v33, %v2924_v2  ;;  %v5313_v57 = vsel %vm4650_vm14, %v2027_v41, %v2923_v30 }
 0x930   :  { %5865 = vst [vmem:[#allocation18_spill] sm:$0xff] %v5293_v29  ;;  %v5297_v43 = vsel %vm4650_vm14, %v2023_v31, %v2366_v4  ;;  %v5301_v8 = vsel %vm4683_vm7, %v2066_v59, %v2368_v22  ;;  %5867 = vst [vmem:[#allocation17_spill] sm:$0xff] %v5309_v35  ;;  %v5317_v0 = vsel %vm4683_vm7, %v2070_v21, %v2925_v34  ;;  %v2076_v19 = vrot.slane %v2025_v32, 6 }
 0x931   :  { %5868 = vst [vmem:[#allocation14_spill] sm:$0xff] %v5313_v57  ;;  %5869 = vst [vmem:[#allocation19_spill] sm:$0xff] %v5317_v0  ;;  %v2078_v4 = vrot.slane %v2068_v33, 6  ;;  %v2077_v22 = vrot.slane %v2027_v41, 6 }
 0x932   :  { %v5321_v29 = vsel %vm4639_vm9, %v2021_v25, %v2076_v19 }
 0x933   :  { %v5325_v2 = vsel %vm4675_vm4, %v2064_v26, %v2078_v4  ;;  %v5331_v34 = vsel %vm4650_vm14, %v2023_v31, %v2077_v22 }
 0x945   :  { %v2282_v23 = vpop.f32.mrf.mxu0  ;;  %v2323_v35 = vpop.f32.mrf.mxu1 }
 0x946   :  { %v2330_v30 = vadd.f32 %v2282_v23, %v5321_v29  ;;  %v2332_v57 = vadd.f32 %v2323_v35, %v5325_v2  ;;  %v2079_v23 = vrot.slane %v2070_v21, 6 }
 0x947   :  { %v2284_v32 = vpop.f32.mrf.mxu0  ;;  %v2325_v33 = vpop.f32.mrf.mxu1 }
 0x948   :  { %v3675_v41 = vmul.f32 -1.442695, %v2330_v30  ;;  %v3677_v9 = vmul.f32 -1.442695, %v2332_v57  ;;  %v2331_v25 = vadd.f32 %v2284_v32, %v5331_v34  ;;  %v5336_v24 = vsel %vm4683_vm7, %v2066_v59, %v2079_v23 }
 0x949   :  { %v2286_v19 = vpop.f32.mrf.mxu0  ;;  %v2327_v0 = vpop.f32.mrf.mxu1  ;;  %v2333_v31 = vadd.f32 %v2325_v33, %v5336_v24 }
 0x94a   :  { %4102 = vpow2.f32 %v3675_v41  ;;  %v3676_v26 = vmul.f32 -1.442695, %v2331_v25 }
 0x94b   :  { %4104 = vpow2.f32 %v3677_v9  ;;  %v2287_v56 = vpop.f32.mrf.mxu0  ;;  %v2328_v4 = vpop.f32.mrf.mxu1  ;;  %v3678_v57 = vmul.f32 -1.442695, %v2333_v31 }
 0x94c   :  { %4106 = vpow2.f32 %v3676_v26 }
 0x957   :  { %v4103_v35 = vpop.eup %4102 }
 0x958   :  { %v4105_v22 = vpop.eup %4104  ;;  %v2346_v0 = vadd.f32 1.0, %v4103_v35 }
 0x959   :  { %v4107_v30 = vpop.eup %4106  ;;  %v2348_v32 = vadd.f32 1.0, %v4105_v22 }
 0x95a   :  { %v2347_v19 = vadd.f32 1.0, %v4107_v30 }
 0x95b   :  { %4108 = vrcp.f32 %v2348_v32 }
 0x95c   :  { %4110 = vpow2.f32 %v3678_v57 }
 0x95d   :  { %4112 = vrcp.f32 %v2347_v19 }
 0x95e   :  { %4114 = vrcp.f32 %v2346_v0 }
 0x968   :  { %v4109_v9 = vpop.eup %4108 }
 0x969   :  { %v4111_v41 = vpop.eup %4110  ;;  %v2358_v21 = vmul.f32 2.0, %v4109_v9 }
 0x96a   :  { %v4113_v25 = vpop.eup %4112  ;;  %v2349_v26 = vadd.f32 1.0, %v4111_v41 }
 0x96b   :  { %v3679_v28 = vadd.f32 -1.0, %v2358_v21  ;;  %v4115_v59 = vpop.eup %4114  ;;  %v2360_v33 = vmul.f32 0.0, %v4113_v25 }
 0x96c   :  { %4116 = vrcp.f32 %v2349_v26 }
 0x96d   :  { %v2361_v56 = vmul.f32 %v4115_v59, %v3679_v28 }
 0x96f   :  { %v5339_v4 = vadd.f32 %v2361_v56, %v2360_v33 }
 0x971   :  { %4118 = vtanh.f32 %v5339_v4 }
 0x979   :  { %v4117_v23 = vpop.eup %4116 }
 0x97e   :  { %v4119_v31 = vpop.eup %4118 }
 0x97f   :  { %v5342_v35 = vmul.f32 %v4119_v31, %v4117_v23 }
 0x981   :  { %5870 = vst [vmem:[#allocation20_spill] sm:$0xff] %v5342_v35  ;;  %v2377_v22 = vpack.c.bf16 %v5342_v35, %v5342_v35 }
 0x983   :  { %2411 = vmatmul.mubr.bf16.vlgmr.msra.gmra.mxu0 %v2377_v22  ;;  %2452 = vmatmul.mubr.bf16.vlgmr.msra.gmra.mxu1 %v2377_v22 }
 0x984   :  { %2515 = vmatpush1.bf16.msra.mxu0 %v5130_v55  ;;  %2556 = vmatpush1.bf16.msra.mxu1 %v5132_v36 }
 0x985   :  { %2516 = vmatprep.subr.bf16.mxu0 %v5134_v48  ;;  %2557 = vmatprep.subr.bf16.mxu1 %v5136_v14 }
 0x986   :  { %2546 = vmatprep.mubr.bf16.mxu0 %v5849_v53  ;;  %2587 = vmatprep.mubr.bf16.mxu1 %v5849_v53 }
 0x988   :  { %2517 = vmatpush1.bf16.msra.mxu0 %v5140_v63  ;;  %2558 = vmatpush1.bf16.msra.mxu1 %v5142_v12 }
 0x989   :  { %2518 = vmatprep.subr.bf16.mxu0 %v5146_v54  ;;  %2559 = vmatprep.subr.bf16.mxu1 %v5148_v52 }
 0x98c   :  { %2519 = vmatpush1.bf16.msra.mxu0 %v5154_v61  ;;  %2560 = vmatpush1.bf16.msra.mxu1 %v5156_v47 }
 0x98d   :  { %2520 = vmatprep.subr.bf16.mxu0 %v5160_v3  ;;  %2561 = vmatprep.subr.bf16.mxu1 %v5162_v7 }
 0x990   :  { %2521 = vmatpush1.bf16.msra.mxu0 %v5166_v16  ;;  %2562 = vmatpush1.bf16.msra.mxu1 %v5168_v11 }
 0x991   :  { %2522 = vmatprep.subr.bf16.mxu0 %v5172_v60  ;;  %2563 = vmatprep.subr.bf16.mxu1 %v5174_v15 }
 0x994   :  { %2523 = vmatpush1.bf16.msra.mxu0 %v5178_v6  ;;  %2564 = vmatpush1.bf16.msra.mxu1 %v5180_v17 }
 0x995   :  { %2524 = vmatprep.subr.bf16.mxu0 %v5184_v44  ;;  %2565 = vmatprep.subr.bf16.mxu1 %v5186_v45 }
 0x998   :  { %2525 = vmatpush1.bf16.msra.mxu0 %v5190_v40  ;;  %2566 = vmatpush1.bf16.msra.mxu1 %v5192_v46 }
 0x999   :  { %2526 = vmatprep.subr.bf16.mxu0 %v5196_v62  ;;  %2567 = vmatprep.subr.bf16.mxu1 %v5198_v38 }
 0x99c   :  { %2527 = vmatpush1.bf16.msra.mxu0 %v5202_v5  ;;  %2568 = vmatpush1.bf16.msra.mxu1 %v5204_v1 }
 0x99d   :  { %2528 = vmatprep.subr.bf16.mxu0 %v5208_v10  ;;  %2569 = vmatprep.subr.bf16.mxu1 %v5210_v49 }
 0x9a0   :  { %2529 = vmatpush1.bf16.msra.mxu0 %v5214_v58  ;;  %2570 = vmatpush1.bf16.msra.mxu1 %v5216_v51 }
 0x9a1   :  { %2650 = vmatprep.subr.bf16.mxu0 %v5098_v37  ;;  %2691 = vmatprep.subr.bf16.mxu1 %v5100_v42 }
 0xa43   :  { %v2412_v57 = vpop.f32.mrf.mxu0  ;;  %v2453_v30 = vpop.f32.mrf.mxu1 }
 0xa44   :  { %v2464_v32 = vrot.slane %v2412_v57, 6  ;;  %v2466_v19 = vrot.slane %v2453_v30, 6 }
 0xa45   :  { %v2414_v0 = vpop.f32.mrf.mxu0  ;;  %v2455_v9 = vpop.f32.mrf.mxu1 }
 0xa46   :  { %v2472_v41 = vadd.f32 %v2464_v32, %v5281_v39  ;;  %v2474_v21 = vadd.f32 %v2466_v19, %v5285_v13  ;;  %v2465_v25 = vrot.slane %v2414_v0, 6  ;;  %v2467_v57 = vrot.slane %v2455_v9, 6 }
 0xa47   :  { %v2416_v28 = vpop.f32.mrf.mxu0  ;;  %v2457_v59 = vpop.f32.mrf.mxu1 }
 0xa48   :  { %v3680_v26 = vmul.f32 -1.442695, %v2472_v41  ;;  %v3682_v56 = vmul.f32 -1.442695, %v2474_v21  ;;  %v2473_v33 = vadd.f32 %v2465_v25, %v5297_v43  ;;  %v2475_v30 = vadd.f32 %v2467_v57, %v5301_v8 }
 0xa49   :  { %v2417_v23 = vpop.f32.mrf.mxu0  ;;  %v2458_v31 = vpop.f32.mrf.mxu1 }
 0xa4a   :  { %4120 = vpow2.f32 %v3680_v26  ;;  %v3681_v22 = vmul.f32 -1.442695, %v2473_v33  ;;  %v3683_v18 = vmul.f32 -1.442695, %v2475_v30 }
 0xa4b   :  { %4122 = vpow2.f32 %v3682_v56  ;;  %v2503_v56 = vrot.slane %v5339_v4, 6 }
 0xa4c   :  { %4124 = vpow2.f32 %v3681_v22 }
 0xa57   :  { %v4121_v35 = vpop.eup %4120 }
 0xa58   :  { %v4123_v32 = vpop.eup %4122  ;;  %v2488_v59 = vadd.f32 1.0, %v4121_v35 }
 0xa59   :  { %v4125_v19 = vpop.eup %4124  ;;  %v2490_v0 = vadd.f32 1.0, %v4123_v32 }
 0xa5a   :  { %v2489_v28 = vadd.f32 1.0, %v4125_v19 }
 0xa5b   :  { %4126 = vrcp.f32 %v2490_v0 }
 0xa5c   :  { %4128 = vpow2.f32 %v3683_v18 }
 0xa5d   :  { %4130 = vrcp.f32 %v2489_v28 }
 0xa5e   :  { %4132 = vrcp.f32 %v2488_v59 }
 0xa68   :  { %v4127_v41 = vpop.eup %4126 }
 0xa69   :  { %v4129_v21 = vpop.eup %4128  ;;  %v2500_v25 = vmul.f32 2.0, %v4127_v41 }
 0xa6a   :  { %v4131_v26 = vpop.eup %4130  ;;  %v2491_v23 = vadd.f32 1.0, %v4129_v21 }
 0xa6b   :  { %v3684_v9 = vadd.f32 -1.0, %v2500_v25  ;;  %v4133_v33 = vpop.eup %4132  ;;  %v2505_v22 = vmul.f32 %v4131_v26, %v2503_v56 }
 0xa6c   :  { %4134 = vrcp.f32 %v2491_v23 }
 0xa6d   :  { %v2506_v31 = vmul.f32 %v4133_v33, %v3684_v9 }
 0xa6f   :  { %v5385_v57 = vadd.f32 %v2506_v31, %v2505_v22 }
 0xa71   :  { %4136 = vtanh.f32 %v5385_v57 }
 0xa79   :  { %v4135_v35 = vpop.eup %4134 }
 0xa7e   :  { %v4137_v18 = vpop.eup %4136 }
 0xa7f   :  { %v2509_v30 = vmul.f32 %v4137_v18, %v4135_v35 }
 0xa81   :  { %v2510_v32 = vpack.c.bf16 %v2509_v30, %v2509_v30 }
 0xa83   :  { %v2512_v19 = vrot.slane %v2510_v32, 1 }
 0xa85   :  { %2547 = vmatmul.mubr.bf16.vlgmr.msra.gmra.mxu0 %v2512_v19  ;;  %2588 = vmatmul.mubr.bf16.vlgmr.msra.gmra.mxu1 %v2512_v19 }
 0xa86   :  { %2651 = vmatpush1.bf16.msra.mxu0 %v5130_v55  ;;  %2692 = vmatpush1.bf16.msra.mxu1 %v5132_v36 }
 0xa87   :  { %2652 = vmatprep.subr.bf16.mxu0 %v5134_v48  ;;  %2693 = vmatprep.subr.bf16.mxu1 %v5136_v14 }
 0xa88   :  { %2682 = vmatprep.mubr.bf16.mxu0 %v5849_v53  ;;  %2723 = vmatprep.mubr.bf16.mxu1 %v5849_v53 }
 0xa8a   :  { %2653 = vmatpush1.bf16.msra.mxu0 %v5140_v63  ;;  %2694 = vmatpush1.bf16.msra.mxu1 %v5142_v12 }
 0xa8b   :  { %2654 = vmatprep.subr.bf16.mxu0 %v5146_v54  ;;  %2695 = vmatprep.subr.bf16.mxu1 %v5148_v52 }
 0xa8e   :  { %2655 = vmatpush1.bf16.msra.mxu0 %v5154_v61  ;;  %2696 = vmatpush1.bf16.msra.mxu1 %v5156_v47 }
 0xa8f   :  { %2656 = vmatprep.subr.bf16.mxu0 %v5160_v3  ;;  %2697 = vmatprep.subr.bf16.mxu1 %v5162_v7 }
 0xa92   :  { %2657 = vmatpush1.bf16.msra.mxu0 %v5166_v16  ;;  %2698 = vmatpush1.bf16.msra.mxu1 %v5168_v11 }
 0xa93   :  { %2658 = vmatprep.subr.bf16.mxu0 %v5172_v60  ;;  %2699 = vmatprep.subr.bf16.mxu1 %v5174_v15 }
 0xa96   :  { %2659 = vmatpush1.bf16.msra.mxu0 %v5178_v6  ;;  %2700 = vmatpush1.bf16.msra.mxu1 %v5180_v17 }
 0xa97   :  { %2660 = vmatprep.subr.bf16.mxu0 %v5184_v44  ;;  %2701 = vmatprep.subr.bf16.mxu1 %v5186_v45 }
 0xa9a   :  { %2661 = vmatpush1.bf16.msra.mxu0 %v5190_v40  ;;  %2702 = vmatpush1.bf16.msra.mxu1 %v5192_v46 }
 0xa9b   :  { %2662 = vmatprep.subr.bf16.mxu0 %v5196_v62  ;;  %2703 = vmatprep.subr.bf16.mxu1 %v5198_v38 }
 0xa9e   :  { %2663 = vmatpush1.bf16.msra.mxu0 %v5202_v5  ;;  %2704 = vmatpush1.bf16.msra.mxu1 %v5204_v1 }
 0xa9f   :  { %2664 = vmatprep.subr.bf16.mxu0 %v5208_v10  ;;  %2705 = vmatprep.subr.bf16.mxu1 %v5210_v49 }
 0xaa2   :  { %2665 = vmatpush1.bf16.msra.mxu0 %v5214_v58  ;;  %2706 = vmatpush1.bf16.msra.mxu1 %v5216_v51 }
 0xaa3   :  { %2802 = vmatprep.subr.bf16.mxu0 %v5098_v37  ;;  %2843 = vmatprep.subr.bf16.mxu1 %v5100_v42 }
 0xb45   :  { %v2548_v4 = vpop.f32.mrf.mxu0  ;;  %v2589_v0 = vpop.f32.mrf.mxu1 }
 0xb46   :  { %v2600_v28 = vrot.slane %v2548_v4, 4  ;;  %v2602_v59 = vrot.slane %v2589_v0, 4 }
 0xb47   :  { %v2550_v41 = vpop.f32.mrf.mxu0  ;;  %v2591_v21 = vpop.f32.mrf.mxu1 }
 0xb48   :  { %v2608_v25 = vadd.f32 %v2600_v28, %v5321_v29  ;;  %v2610_v26 = vadd.f32 %v2602_v59, %v5325_v2  ;;  %v2601_v56 = vrot.slane %v2550_v41, 4  ;;  %v2603_v32 = vrot.slane %v2591_v21, 4 }
 0xb49   :  { %v2552_v9 = vpop.f32.mrf.mxu0  ;;  %v2593_v33 = vpop.f32.mrf.mxu1  ;;  %v2639_v21 = vrot.slane %v5385_v57, 6 }
 0xb4a   :  { %v3685_v23 = vmul.f32 -1.442695, %v2608_v25  ;;  %v3687_v31 = vmul.f32 -1.442695, %v2610_v26  ;;  %v2609_v22 = vadd.f32 %v2601_v56, %v5331_v34  ;;  %v2611_v19 = vadd.f32 %v2603_v32, %v5336_v24 }
 0xb4b   :  { %v2553_v35 = vpop.f32.mrf.mxu0  ;;  %v2594_v18 = vpop.f32.mrf.mxu1 }
 0xb4c   :  { %4138 = vpow2.f32 %v3685_v23  ;;  %v3686_v30 = vmul.f32 -1.442695, %v2609_v22  ;;  %v3688_v0 = vmul.f32 -1.442695, %v2611_v19 }
 0xb4d   :  { %4140 = vpow2.f32 %v3687_v31 }
 0xb4e   :  { %4142 = vpow2.f32 %v3686_v30 }
 0xb59   :  { %v4139_v4 = vpop.eup %4138 }
 0xb5a   :  { %v4141_v29 = vpop.eup %4140  ;;  %v2624_v41 = vadd.f32 1.0, %v4139_v4 }
 0xb5b   :  { %v4143_v2 = vpop.eup %4142  ;;  %v2626_v28 = vadd.f32 1.0, %v4141_v29 }
 0xb5c   :  { %v2625_v59 = vadd.f32 1.0, %v4143_v2 }
 0xb5d   :  { %4144 = vrcp.f32 %v2626_v28 }
 0xb5e   :  { %4146 = vpow2.f32 %v3688_v0 }
 0xb5f   :  { %4148 = vrcp.f32 %v2625_v59 }
 0xb60   :  { %4150 = vrcp.f32 %v2624_v41 }
 0xb6a   :  { %v4145_v34 = vpop.eup %4144 }
 0xb6b   :  { %v4147_v25 = vpop.eup %4146  ;;  %v2636_v26 = vmul.f32 2.0, %v4145_v34 }
 0xb6c   :  { %v4149_v56 = vpop.eup %4148  ;;  %v2627_v24 = vadd.f32 1.0, %v4147_v25 }
 0xb6d   :  { %v3689_v9 = vadd.f32 -1.0, %v2636_v26  ;;  %v4151_v33 = vpop.eup %4150  ;;  %v2641_v31 = vmul.f32 %v4149_v56, %v2639_v21 }
 0xb6e   :  { %4152 = vrcp.f32 %v2627_v24 }
 0xb6f   :  { %v2642_v23 = vmul.f32 %v4151_v33, %v3689_v9 }
 0xb71   :  { %v5427_v22 = vadd.f32 %v2642_v23, %v2641_v31 }
 0xb73   :  { %4154 = vtanh.f32 %v5427_v22 }
 0xb7b   :  { %v4153_v35 = vpop.eup %4152 }
 0xb80   :  { %v4155_v18 = vpop.eup %4154 }
 0xb81   :  { %v2645_v30 = vmul.f32 %v4155_v18, %v4153_v35 }
 0xb83   :  { %v2646_v32 = vpack.c.bf16 %v2645_v30, %v2645_v30 }
 0xb85   :  { %v2648_v19 = vrot.slane %v2646_v32, 2 }
 0xb87   :  { %2683 = vmatmul.mubr.bf16.vlgmr.msra.gmra.mxu0 %v2648_v19  ;;  %2724 = vmatmul.mubr.bf16.vlgmr.msra.gmra.mxu1 %v2648_v19 }
 0xb88   :  { %2803 = vmatpush1.bf16.msra.mxu0 %v5130_v55  ;;  %2844 = vmatpush1.bf16.msra.mxu1 %v5132_v36 }
 0xb89   :  { %2804 = vmatprep.subr.bf16.mxu0 %v5134_v48  ;;  %2845 = vmatprep.subr.bf16.mxu1 %v5136_v14 }
 0xb8a   :  { %2834 = vmatprep.mubr.bf16.mxu0 %v5849_v53  ;;  %2875 = vmatprep.mubr.bf16.mxu1 %v5849_v53 }
 0xb8c   :  { %2805 = vmatpush1.bf16.msra.mxu0 %v5140_v63  ;;  %2846 = vmatpush1.bf16.msra.mxu1 %v5142_v12 }
 0xb8d   :  { %2806 = vmatprep.subr.bf16.mxu0 %v5146_v54  ;;  %2847 = vmatprep.subr.bf16.mxu1 %v5148_v52 }
 0xb90   :  { %2807 = vmatpush1.bf16.msra.mxu0 %v5154_v61  ;;  %2848 = vmatpush1.bf16.msra.mxu1 %v5156_v47 }
 0xb91   :  { %2808 = vmatprep.subr.bf16.mxu0 %v5160_v3  ;;  %2849 = vmatprep.subr.bf16.mxu1 %v5162_v7 }
 0xb94   :  { %2809 = vmatpush1.bf16.msra.mxu0 %v5166_v16  ;;  %2850 = vmatpush1.bf16.msra.mxu1 %v5168_v11 }
 0xb95   :  { %2810 = vmatprep.subr.bf16.mxu0 %v5172_v60  ;;  %2851 = vmatprep.subr.bf16.mxu1 %v5174_v15 }
 0xb98   :  { %2811 = vmatpush1.bf16.msra.mxu0 %v5178_v6  ;;  %2852 = vmatpush1.bf16.msra.mxu1 %v5180_v17 }
 0xb99   :  { %2812 = vmatprep.subr.bf16.mxu0 %v5184_v44  ;;  %2853 = vmatprep.subr.bf16.mxu1 %v5186_v45 }
 0xb9c   :  { %2813 = vmatpush1.bf16.msra.mxu0 %v5190_v40  ;;  %2854 = vmatpush1.bf16.msra.mxu1 %v5192_v46 }
 0xb9d   :  { %2814 = vmatprep.subr.bf16.mxu0 %v5196_v62  ;;  %2855 = vmatprep.subr.bf16.mxu1 %v5198_v38 }
 0xba0   :  { %2815 = vmatpush1.bf16.msra.mxu0 %v5202_v5  ;;  %2856 = vmatpush1.bf16.msra.mxu1 %v5204_v1 }
 0xba1   :  { %2816 = vmatprep.subr.bf16.mxu0 %v5208_v10  ;;  %2857 = vmatprep.subr.bf16.mxu1 %v5210_v49 }
 0xba4   :  { %2817 = vmatpush1.bf16.msra.mxu0 %v5214_v58  ;;  %2858 = vmatpush1.bf16.msra.mxu1 %v5216_v51 }
 0xba5   :  { %2935 = vmatprep.subr.bf16.mxu0 %v5098_v37  ;;  %2976 = vmatprep.subr.bf16.mxu1 %v5100_v42 }
 0xc47   :  { %v2684_v57 = vpop.f32.mrf.mxu0  ;;  %v2725_v4 = vpop.f32.mrf.mxu1 }
 0xc48   :  { %v2736_v29 = vrot.slane %v2684_v57, 2  ;;  %v2738_v0 = vrot.slane %v2725_v4, 2 }
 0xc49   :  { %v2686_v2 = vpop.f32.mrf.mxu0  ;;  %v2727_v28 = vpop.f32.mrf.mxu1 }
 0xc4a   :  { %v2744_v59 = vadd.f32 %v2736_v29, %v5281_v39  ;;  %v2746_v41 = vadd.f32 %v2738_v0, %v5285_v13  ;;  %v2737_v34 = vrot.slane %v2686_v2, 2  ;;  %v2739_v24 = vrot.slane %v2727_v28, 2 }
 0xc4b   :  { %v2688_v25 = vpop.f32.mrf.mxu0  ;;  %v2729_v26 = vpop.f32.mrf.mxu1  ;;  %v2775_v0 = vrot.slane %v5427_v22, 6 }
 0xc4c   :  { %v3690_v56 = vmul.f32 -1.442695, %v2744_v59  ;;  %v3692_v9 = vmul.f32 -1.442695, %v2746_v41  ;;  %v2745_v21 = vadd.f32 %v2737_v34, %v5297_v43  ;;  %v2747_v23 = vadd.f32 %v2739_v24, %v5301_v8 }
 0xc4d   :  { %v2689_v37 = vpop.f32.mrf.mxu0  ;;  %v2730_v33 = vpop.f32.mrf.mxu1 }
 0xc4e   :  { %4156 = vpow2.f32 %v3690_v56  ;;  %v3691_v42 = vmul.f32 -1.442695, %v2745_v21  ;;  %v3693_v35 = vmul.f32 -1.442695, %v2747_v23 }
 0xc4f   :  { %4158 = vpow2.f32 %v3692_v9 }
 0xc50   :  { %4160 = vpow2.f32 %v3691_v42 }
 0xc5b   :  { %v4157_v31 = vpop.eup %4156 }
 0xc5c   :  { %v4159_v39 = vpop.eup %4158  ;;  %v2760_v32 = vadd.f32 1.0, %v4157_v31 }
 0xc5d   :  { %v4161_v13 = vpop.eup %4160  ;;  %v2762_v18 = vadd.f32 1.0, %v4159_v39 }
 0xc5e   :  { %v2761_v30 = vadd.f32 1.0, %v4161_v13  ;;  %v5518_v13 = vld [vmem:[#allocation7 + $0xe0] ss:$16 sps:$4 sm:$0xff]  }
 0xc5f   :  { %4162 = vrcp.f32 %v2762_v18  ;;  %v5521_v18 = vld [vmem:[#allocation7 + $0xe8] ss:$16 sps:$4 sm:$0xff]  }
 0xc60   :  { %4164 = vpow2.f32 %v3693_v35 }
 0xc61   :  { %4166 = vrcp.f32 %v2761_v30  ;;  %v5524_v30 = vld [vmem:[#allocation7 + $0xc4] ss:$16 sps:$4 sm:$0xff]  }
 0xc62   :  { %4168 = vrcp.f32 %v2760_v32  ;;  %v5527_v32 = vld [vmem:[#allocation7 + $0xcc] ss:$16 sps:$4 sm:$0xff]  }
 0xc6c   :  { %v4163_v43 = vpop.eup %4162 }
 0xc6d   :  { %v4165_v19 = vpop.eup %4164  ;;  %v2772_v57 = vmul.f32 2.0, %v4163_v43  ;;  %v5532_v43 = vld [vmem:[#allocation7 + $0xc0] ss:$16 sps:$4 sm:$0xff]  }
 0xc6e   :  { %v4167_v4 = vpop.eup %4166  ;;  %v2763_v8 = vadd.f32 1.0, %v4165_v19  ;;  %v5535_v19 = vld [vmem:[#allocation7 + $0xc8] ss:$16 sps:$4 sm:$0xff]  }
 0xc6f   :  { %v3694_v29 = vadd.f32 -1.0, %v2772_v57  ;;  %v4169_v2 = vpop.eup %4168  ;;  %v2777_v59 = vmul.f32 %v4167_v4, %v2775_v0  ;;  %v5538_v57 = vld [vmem:[#allocation7 + $0xa4] ss:$16 sps:$4 sm:$0xff]   ;;  %v5541_v4 = vld [vmem:[#allocation7 + $0xac] ss:$16 sps:$4 sm:$0xff]  }
 0xc70   :  { %4170 = vrcp.f32 %v2763_v8  ;;  %v5547_v0 = vld [vmem:[#allocation7 + $0xa8] ss:$16 sps:$4 sm:$0xff]   ;;  %v5553_v8 = vld [vmem:[#allocation7 + $0x8c] ss:$16 sps:$4 sm:$0xff]  }
 0xc71   :  { %v2778_v28 = vmul.f32 %v4169_v2, %v3694_v29  ;;  %v5544_v29 = vld [vmem:[#allocation7 + $0xa0] ss:$16 sps:$4 sm:$0xff]   ;;  %v5550_v2 = vld [vmem:[#allocation7 + $0x84] ss:$16 sps:$4 sm:$0xff]  }
 0xc73   :  { %v5469_v41 = vadd.f32 %v2778_v28, %v2777_v59  ;;  %v5556_v28 = vld [vmem:[#allocation7 + $0x80] ss:$16 sps:$4 sm:$0xff]   ;;  %v5559_v59 = vld [vmem:[#allocation7 + $0x88] ss:$16 sps:$4 sm:$0xff]  }
 0xc75   :  { %4172 = vtanh.f32 %v5469_v41  ;;  %v2915_v22 = vrot.slane %v5469_v41, 6  ;;  %v5562_v41 = vld [vmem:[#allocation7 + $0x64] ss:$16 sps:$4 sm:$0xff]  }
 0xc7d   :  { %v4171_v34 = vpop.eup %4170 }
 0xc82   :  { %v4173_v25 = vpop.eup %4172 }
 0xc83   :  { %v2781_v26 = vmul.f32 %v4173_v25, %v4171_v34  ;;  %v5565_v34 = vld [vmem:[#allocation7 + $0x6c] ss:$16 sps:$4 sm:$0xff]   ;;  %v5568_v25 = vld [vmem:[#allocation7 + $0x60] ss:$16 sps:$4 sm:$0xff]  }
 0xc85   :  { %v2798_v56 = vpack.c.bf16 %v2781_v26, %v2781_v26  ;;  %v5571_v26 = vld [vmem:[#allocation7 + $0x68] ss:$16 sps:$4 sm:$0xff]  }
 0xc87   :  { %v2800_v9 = vrot.slane %v2798_v56, 3  ;;  %v5574_v56 = vld [vmem:[#allocation7 + $0x44] ss:$16 sps:$4 sm:$0xff]  }
 0xc89   :  { %2835 = vmatmul.mubr.bf16.vlgmr.msra.gmra.mxu0 %v2800_v9  ;;  %2876 = vmatmul.mubr.bf16.vlgmr.msra.gmra.mxu1 %v2800_v9  ;;  %v5577_v9 = vld [vmem:[#allocation7 + $0x4c] ss:$16 sps:$4 sm:$0xff]  }
 0xc8a   :  { %2936 = vmatpush1.bf16.msra.mxu0 %v5130_v55  ;;  %2977 = vmatpush1.bf16.msra.mxu1 %v5132_v36  ;;  %v5504_v55 = vld [vmem:[#allocation7 + $0xe4] ss:$16 sps:$4 sm:$0xff]   ;;  %v5507_v36 = vld [vmem:[#allocation7 + $0xec] ss:$16 sps:$4 sm:$0xff]  }
 0xc8b   :  { %2937 = vmatprep.subr.bf16.mxu0 %v5134_v48  ;;  %2978 = vmatprep.subr.bf16.mxu1 %v5136_v14 }
 0xc8c   :  { %2967 = vmatprep.mubr.bf16.mxu0 %v5849_v53  ;;  %3008 = vmatprep.mubr.bf16.mxu1 %v5849_v53 }
 0xc8e   :  { %2938 = vmatpush1.bf16.msra.mxu0 %v5140_v63  ;;  %2979 = vmatpush1.bf16.msra.mxu1 %v5142_v12 }
 0xc8f   :  { %2939 = vmatprep.subr.bf16.mxu0 %v5146_v54  ;;  %2980 = vmatprep.subr.bf16.mxu1 %v5148_v52 }
 0xc92   :  { %2940 = vmatpush1.bf16.msra.mxu0 %v5154_v61  ;;  %2981 = vmatpush1.bf16.msra.mxu1 %v5156_v47 }
 0xc93   :  { %2941 = vmatprep.subr.bf16.mxu0 %v5160_v3  ;;  %2982 = vmatprep.subr.bf16.mxu1 %v5162_v7 }
 0xc96   :  { %2942 = vmatpush1.bf16.msra.mxu0 %v5166_v16  ;;  %2983 = vmatpush1.bf16.msra.mxu1 %v5168_v11 }
 0xc97   :  { %2943 = vmatprep.subr.bf16.mxu0 %v5172_v60  ;;  %2984 = vmatprep.subr.bf16.mxu1 %v5174_v15 }
 0xc9a   :  { %2944 = vmatpush1.bf16.msra.mxu0 %v5178_v6  ;;  %2985 = vmatpush1.bf16.msra.mxu1 %v5180_v17  ;;  %v5871_v6 = vld [vmem:[#allocation18_spill] sm:$0xff] }
 0xc9b   :  { %2945 = vmatprep.subr.bf16.mxu0 %v5184_v44  ;;  %2986 = vmatprep.subr.bf16.mxu1 %v5186_v45 }
 0xc9e   :  { %2946 = vmatpush1.bf16.msra.mxu0 %v5190_v40  ;;  %2987 = vmatpush1.bf16.msra.mxu1 %v5192_v46 }
 0xc9f   :  { %2947 = vmatprep.subr.bf16.mxu0 %v5196_v62  ;;  %2988 = vmatprep.subr.bf16.mxu1 %v5198_v38 }
 0xca2   :  { %2948 = vmatpush1.bf16.msra.mxu0 %v5202_v5  ;;  %2989 = vmatpush1.bf16.msra.mxu1 %v5204_v1 }
 0xca3   :  { %2949 = vmatprep.subr.bf16.mxu0 %v5208_v10  ;;  %2990 = vmatprep.subr.bf16.mxu1 %v5210_v49 }
 0xca6   :  { %2950 = vmatpush1.bf16.msra.mxu0 %v5214_v58  ;;  %2991 = vmatpush1.bf16.msra.mxu1 %v5216_v51 }
 0xca7   :  { %3071 = vmatprep.subr.bf16.mxu0 %v5504_v55  ;;  %3112 = vmatprep.subr.bf16.mxu1 %v5507_v36 }
 0xd49   :  { %v2836_v48 = vpop.f32.mrf.mxu0  ;;  %v2877_v14 = vpop.f32.mrf.mxu1 }
 0xd4a   :  { %v2884_v63 = vadd.f32 %v2836_v48, %v5273_v50  ;;  %v2886_v12 = vadd.f32 %v2877_v14, %v5277_v20  ;;  %v5580_v48 = vld [vmem:[#allocation7 + $0x40] ss:$16 sps:$4 sm:$0xff]   ;;  %v5583_v14 = vld [vmem:[#allocation7 + $0x48] ss:$16 sps:$4 sm:$0xff]  }
 0xd4b   :  { %v2838_v54 = vpop.f32.mrf.mxu0  ;;  %v2879_v52 = vpop.f32.mrf.mxu1 }
 0xd4c   :  { %v3695_v61 = vmul.f32 -1.442695, %v2884_v63  ;;  %v3697_v47 = vmul.f32 -1.442695, %v2886_v12  ;;  %v2885_v3 = vadd.f32 %v2838_v54, %v5289_v27  ;;  %v2887_v17 = vadd.f32 %v2879_v52, %v5871_v6  ;;  %v5586_v63 = vld [vmem:[#allocation7 + $0x24] ss:$16 sps:$4 sm:$0xff]  }
 0xd4d   :  { %v2840_v7 = vpop.f32.mrf.mxu0  ;;  %v2881_v16 = vpop.f32.mrf.mxu1  ;;  %v5589_v12 = vld [vmem:[#allocation7 + $0x2c] ss:$16 sps:$4 sm:$0xff]   ;;  %v5592_v54 = vld [vmem:[#allocation7 + $0x20] ss:$16 sps:$4 sm:$0xff]   ;;  %v5595_v52 = vld [vmem:[#allocation7 + $0x28] ss:$16 sps:$4 sm:$0xff]  }
 0xd4e   :  { %4174 = vpow2.f32 %v3695_v61  ;;  %v3696_v11 = vmul.f32 -1.442695, %v2885_v3  ;;  %v3698_v40 = vmul.f32 -1.442695, %v2887_v17  ;;  %v5598_v61 = vld [vmem:[#allocation7 + $0x4] ss:$16 sps:$4 sm:$0xff]  }
 0xd4f   :  { %4176 = vpow2.f32 %v3697_v47  ;;  %v2841_v60 = vpop.f32.mrf.mxu0  ;;  %v2882_v15 = vpop.f32.mrf.mxu1  ;;  %v5601_v47 = vld [vmem:[#allocation7 + $0xc] ss:$16 sps:$4 sm:$0xff]   ;;  %v5604_v3 = vld [vmem:[#allocation7] ss:$16 sps:$4 sm:$0xff]   ;;  %v5607_v7 = vld [vmem:[#allocation7 + $0x8] ss:$16 sps:$4 sm:$0xff]  }
 0xd50   :  { %4178 = vpow2.f32 %v3696_v11 }
 0xd5b   :  { %v4175_v44 = vpop.eup %4174 }
 0xd5c   :  { %v4177_v45 = vpop.eup %4176  ;;  %v2900_v5 = vadd.f32 1.0, %v4175_v44 }
 0xd5d   :  { %v4179_v46 = vpop.eup %4178  ;;  %v2902_v62 = vadd.f32 1.0, %v4177_v45  ;;  %v5872_v45 = vld [vmem:[#allocation13_spill] sm:$0xff] }
 0xd5e   :  { %v2901_v38 = vadd.f32 1.0, %v4179_v46  ;;  %v5873_v46 = vld [vmem:[#allocation17_spill] sm:$0xff] }
 0xd5f   :  { %4180 = vrcp.f32 %v2902_v62 }
 0xd60   :  { %4182 = vpow2.f32 %v3698_v40 }
 0xd61   :  { %4184 = vrcp.f32 %v2901_v38 }
 0xd62   :  { %4186 = vrcp.f32 %v2900_v5 }
 0xd6c   :  { %v4181_v1 = vpop.eup %4180 }
 0xd6d   :  { %v4183_v10 = vpop.eup %4182  ;;  %v2912_v49 = vmul.f32 2.0, %v4181_v1 }
 0xd6e   :  { %v4185_v58 = vpop.eup %4184  ;;  %v2903_v37 = vadd.f32 1.0, %v4183_v10 }
 0xd6f   :  { %v3699_v51 = vadd.f32 -1.0, %v2912_v49  ;;  %v4187_v21 = vpop.eup %4186  ;;  %v2917_v42 = vmul.f32 %v4185_v58, %v2915_v22  ;;  %v5874_v58 = vld [vmem:[#allocation14_spill] sm:$0xff] }
 0xd70   :  { %4188 = vrcp.f32 %v2903_v37  ;;  %v5875_v37 = vld [vmem:[#allocation19_spill] sm:$0xff] }
 0xd71   :  { %v2918_v33 = vmul.f32 %v4187_v21, %v3699_v51 }
 0xd73   :  { %v5515_v24 = vadd.f32 %v2918_v33, %v2917_v42 }
 0xd75   :  { %4190 = vtanh.f32 %v5515_v24 }
 0xd7d   :  { %v4189_v23 = vpop.eup %4188 }
 0xd82   :  { %v4191_v31 = vpop.eup %4190 }
 0xd83   :  { %v2921_v39 = vmul.f32 %v4191_v31, %v4189_v23 }
 0xd85   :  { %v2934_v35 = vpack.c.bf16 %v2921_v39, %v2921_v39 }
 0xd87   :  { %2968 = vmatmul.mubr.bf16.vlgmr.msra.gmra.mxu0 %v2934_v35  ;;  %3009 = vmatmul.mubr.bf16.vlgmr.msra.gmra.mxu1 %v2934_v35 }
 0xd88   :  { %3072 = vmatpush1.bf16.msra.mxu0 %v5518_v13  ;;  %3113 = vmatpush1.bf16.msra.mxu1 %v5521_v18 }
 0xd89   :  { %3073 = vmatprep.subr.bf16.mxu0 %v5524_v30  ;;  %3114 = vmatprep.subr.bf16.mxu1 %v5527_v32 }
 0xd8a   :  { %3103 = vmatprep.mubr.bf16.mxu0 %v5849_v53  ;;  %3144 = vmatprep.mubr.bf16.mxu1 %v5849_v53 }
 0xd8c   :  { %3074 = vmatpush1.bf16.msra.mxu0 %v5532_v43  ;;  %3115 = vmatpush1.bf16.msra.mxu1 %v5535_v19 }
 0xd8d   :  { %3075 = vmatprep.subr.bf16.mxu0 %v5538_v57  ;;  %3116 = vmatprep.subr.bf16.mxu1 %v5541_v4 }
 0xd90   :  { %3076 = vmatpush1.bf16.msra.mxu0 %v5544_v29  ;;  %3117 = vmatpush1.bf16.msra.mxu1 %v5547_v0 }
 0xd91   :  { %3077 = vmatprep.subr.bf16.mxu0 %v5550_v2  ;;  %3118 = vmatprep.subr.bf16.mxu1 %v5553_v8 }
 0xd94   :  { %3078 = vmatpush1.bf16.msra.mxu0 %v5556_v28  ;;  %3119 = vmatpush1.bf16.msra.mxu1 %v5559_v59 }
 0xd95   :  { %3079 = vmatprep.subr.bf16.mxu0 %v5562_v41  ;;  %3120 = vmatprep.subr.bf16.mxu1 %v5565_v34 }
 0xd98   :  { %3080 = vmatpush1.bf16.msra.mxu0 %v5568_v25  ;;  %3121 = vmatpush1.bf16.msra.mxu1 %v5571_v26 }
 0xd99   :  { %3081 = vmatprep.subr.bf16.mxu0 %v5574_v56  ;;  %3122 = vmatprep.subr.bf16.mxu1 %v5577_v9 }
 0xd9c   :  { %3082 = vmatpush1.bf16.msra.mxu0 %v5580_v48  ;;  %3123 = vmatpush1.bf16.msra.mxu1 %v5583_v14 }
 0xd9d   :  { %3083 = vmatprep.subr.bf16.mxu0 %v5586_v63  ;;  %3124 = vmatprep.subr.bf16.mxu1 %v5589_v12 }
 0xda0   :  { %3084 = vmatpush1.bf16.msra.mxu0 %v5592_v54  ;;  %3125 = vmatpush1.bf16.msra.mxu1 %v5595_v52 }
 0xda1   :  { %3085 = vmatprep.subr.bf16.mxu0 %v5598_v61  ;;  %3126 = vmatprep.subr.bf16.mxu1 %v5601_v47 }
 0xda4   :  { %3086 = vmatpush1.bf16.msra.mxu0 %v5604_v3  ;;  %3127 = vmatpush1.bf16.msra.mxu1 %v5607_v7 }
 0xda5   :  { %3207 = vmatprep.subr.bf16.mxu0 %v5504_v55  ;;  %3248 = vmatprep.subr.bf16.mxu1 %v5507_v36 }
 0xe47   :  { %v2969_v16 = vpop.f32.mrf.mxu0  ;;  %v3010_v11 = vpop.f32.mrf.mxu1 }
 0xe48   :  { %v3021_v60 = vrot.slane %v2969_v16, 6  ;;  %v3023_v15 = vrot.slane %v3010_v11, 6 }
 0xe49   :  { %v2971_v17 = vpop.f32.mrf.mxu0  ;;  %v3012_v44 = vpop.f32.mrf.mxu1 }
 0xe4a   :  { %v3029_v40 = vadd.f32 %v3021_v60, %v5872_v45  ;;  %v3031_v62 = vadd.f32 %v3023_v15, %v5873_v46  ;;  %v3022_v38 = vrot.slane %v2971_v17, 6  ;;  %v3024_v21 = vrot.slane %v3012_v44, 6 }
 0xe4b   :  { %v2973_v5 = vpop.f32.mrf.mxu0  ;;  %v3014_v1 = vpop.f32.mrf.mxu1  ;;  %v3060_v44 = vrot.slane %v5515_v24, 6 }
 0xe4c   :  { %v3700_v10 = vmul.f32 -1.442695, %v3029_v40  ;;  %v3702_v49 = vmul.f32 -1.442695, %v3031_v62  ;;  %v3030_v51 = vadd.f32 %v3022_v38, %v5874_v58  ;;  %v3032_v33 = vadd.f32 %v3024_v21, %v5875_v37 }
 0xe4d   :  { %v2974_v55 = vpop.f32.mrf.mxu0  ;;  %v3015_v22 = vpop.f32.mrf.mxu1 }
 0xe4e   :  { %4192 = vpow2.f32 %v3700_v10  ;;  %v3701_v36 = vmul.f32 -1.442695, %v3030_v51  ;;  %v3703_v31 = vmul.f32 -1.442695, %v3032_v33 }
 0xe4f   :  { %4194 = vpow2.f32 %v3702_v49 }
 0xe50   :  { %4196 = vpow2.f32 %v3701_v36 }
 0xe5b   :  { %v4193_v42 = vpop.eup %4192 }
 0xe5c   :  { %v4195_v23 = vpop.eup %4194  ;;  %v3045_v11 = vadd.f32 1.0, %v4193_v42 }
 0xe5d   :  { %v4197_v39 = vpop.eup %4196  ;;  %v3047_v35 = vadd.f32 1.0, %v4195_v23 }
 0xe5e   :  { %v3046_v16 = vadd.f32 1.0, %v4197_v39 }
 0xe5f   :  { %4198 = vrcp.f32 %v3047_v35 }
 0xe60   :  { %4200 = vpow2.f32 %v3703_v31 }
 0xe61   :  { %4202 = vrcp.f32 %v3046_v16  ;;  %v4381_v16 = vmov 0.0  }
 0xe62   :  { %4204 = vrcp.f32 %v3045_v11  ;;  %v211_v11 = vld [vmem:[%s5791_s7 + $0x78] sm:$0xff] }
 0xe6c   :  { %v4199_v60 = vpop.eup %4198 }
 0xe6d   :  { %v4201_v15 = vpop.eup %4200  ;;  %v3057_v17 = vmul.f32 2.0, %v4199_v60  ;;  %v210_v60 = vld [vmem:[%s5791_s7 + $0x70] sm:$0xff] }
 0xe6e   :  { %v4203_v40 = vpop.eup %4202  ;;  %v3048_v5 = vadd.f32 1.0, %v4201_v15  ;;  %v209_v15 = vld [vmem:[%s5791_s7 + $0x68] sm:$0xff] }
 0xe6f   :  { %v3704_v62 = vadd.f32 -1.0, %v3057_v17  ;;  %v4205_v38 = vpop.eup %4204  ;;  %v3062_v10 = vmul.f32 %v4203_v40, %v3060_v44  ;;  %v208_v17 = vld [vmem:[%s5791_s7 + $0x60] sm:$0xff]  ;;  %v207_v40 = vld [vmem:[%s5791_s7 + $0x58] sm:$0xff]  ;;  %v205_v44 = vld [vmem:[%s5791_s7 + $0x48] sm:$0xff] }
 0xe70   :  { %4206 = vrcp.f32 %v3048_v5  ;;  %v203_v5 = vld [vmem:[%s5791_s7 + $0x38] sm:$0xff] }
 0xe71   :  { %v3063_v1 = vmul.f32 %v4205_v38, %v3704_v62  ;;  %v206_v62 = vld [vmem:[%s5791_s7 + $0x50] sm:$0xff]  ;;  %v204_v38 = vld [vmem:[%s5791_s7 + $0x40] sm:$0xff] }
 0xe73   :  { %v5617_v49 = vadd.f32 %v3063_v1, %v3062_v10  ;;  %v202_v1 = vld [vmem:[%s5791_s7 + $0x30] sm:$0xff]  ;;  %v201_v10 = vld [vmem:[%s5791_s7 + $0x28] sm:$0xff] }
 0xe75   :  { %4208 = vtanh.f32 %v5617_v49 }
 0xe7d   :  { %v4207_v51 = vpop.eup %4206 }
 0xe82   :  { %v4209_v55 = vpop.eup %4208 }
 0xe83   :  { %v3066_v22 = vmul.f32 %v4209_v55, %v4207_v51  ;;  %v199_v51 = vld [vmem:[%s5791_s7 + $0x18] sm:$0xff]  ;;  %v198_v55 = vld [vmem:[%s5791_s7 + $0x10] sm:$0xff] }
 0xe85   :  { %v3067_v36 = vpack.c.bf16 %v3066_v22, %v3066_v22  ;;  %v197_v22 = vld [vmem:[%s5791_s7 + $0x8] sm:$0xff] }
 0xe87   :  { %v3069_v21 = vrot.slane %v3067_v36, 1  ;;  %v196_v36 = vld [vmem:[%s5791_s7] sm:$0xff] }
 0xe89   :  { %3104 = vmatmul.mubr.bf16.vlgmr.msra.gmra.mxu0 %v3069_v21  ;;  %3145 = vmatmul.mubr.bf16.vlgmr.msra.gmra.mxu1 %v3069_v21  ;;  %v220_v21 = vld [vmem:[%s5793_s9 + $0x38] sm:$0xff] }
 0xe8a   :  { %3208 = vmatpush1.bf16.msra.mxu0 %v5518_v13  ;;  %3249 = vmatpush1.bf16.msra.mxu1 %v5521_v18 }
 0xe8b   :  { %3209 = vmatprep.subr.bf16.mxu0 %v5524_v30  ;;  %3250 = vmatprep.subr.bf16.mxu1 %v5527_v32 }
 0xe8c   :  { %3239 = vmatprep.mubr.bf16.mxu0 %v5849_v53  ;;  %3280 = vmatprep.mubr.bf16.mxu1 %v5849_v53 }
 0xe8e   :  { %3210 = vmatpush1.bf16.msra.mxu0 %v5532_v43  ;;  %3251 = vmatpush1.bf16.msra.mxu1 %v5535_v19 }
 0xe8f   :  { %3211 = vmatprep.subr.bf16.mxu0 %v5538_v57  ;;  %3252 = vmatprep.subr.bf16.mxu1 %v5541_v4 }
 0xe92   :  { %3212 = vmatpush1.bf16.msra.mxu0 %v5544_v29  ;;  %3253 = vmatpush1.bf16.msra.mxu1 %v5547_v0 }
 0xe93   :  { %3213 = vmatprep.subr.bf16.mxu0 %v5550_v2  ;;  %3254 = vmatprep.subr.bf16.mxu1 %v5553_v8 }
 0xe96   :  { %3214 = vmatpush1.bf16.msra.mxu0 %v5556_v28  ;;  %3255 = vmatpush1.bf16.msra.mxu1 %v5559_v59 }
 0xe97   :  { %3215 = vmatprep.subr.bf16.mxu0 %v5562_v41  ;;  %3256 = vmatprep.subr.bf16.mxu1 %v5565_v34 }
 0xe9a   :  { %3216 = vmatpush1.bf16.msra.mxu0 %v5568_v25  ;;  %3257 = vmatpush1.bf16.msra.mxu1 %v5571_v26 }
 0xe9b   :  { %3217 = vmatprep.subr.bf16.mxu0 %v5574_v56  ;;  %3258 = vmatprep.subr.bf16.mxu1 %v5577_v9 }
 0xe9e   :  { %3218 = vmatpush1.bf16.msra.mxu0 %v5580_v48  ;;  %3259 = vmatpush1.bf16.msra.mxu1 %v5583_v14 }
 0xe9f   :  { %3219 = vmatprep.subr.bf16.mxu0 %v5586_v63  ;;  %3260 = vmatprep.subr.bf16.mxu1 %v5589_v12 }
 0xea2   :  { %3220 = vmatpush1.bf16.msra.mxu0 %v5592_v54  ;;  %3261 = vmatpush1.bf16.msra.mxu1 %v5595_v52 }
 0xea3   :  { %3221 = vmatprep.subr.bf16.mxu0 %v5598_v61  ;;  %3262 = vmatprep.subr.bf16.mxu1 %v5601_v47  ;;  %v3196_v61 = vrot.slane %v5617_v49, 6  ;;  %v200_v49 = vld [vmem:[%s5791_s7 + $0x20] sm:$0xff] }
 0xea6   :  { %3222 = vmatpush1.bf16.msra.mxu0 %v5604_v3  ;;  %3263 = vmatpush1.bf16.msra.mxu1 %v5607_v7 }
 0xea7   :  { %3746 = vmatprep.subr.mxu0 %v4381_v16  ;;  %3781 = vmatprep.subr.mxu1 %v4381_v16 }
 0xf49   :  { %v3105_v53 = vpop.f32.mrf.mxu0  ;;  %v3146_v24 = vpop.f32.mrf.mxu1 }
 0xf4a   :  { %v3157_v13 = vrot.slane %v3105_v53, 4  ;;  %v3159_v18 = vrot.slane %v3146_v24, 4  ;;  %v219_v53 = vld [vmem:[%s5793_s9 + $0x30] sm:$0xff]  ;;  %v218_v24 = vld [vmem:[%s5793_s9 + $0x28] sm:$0xff] }
 0xf4b   :  { %v3107_v30 = vpop.f32.mrf.mxu0  ;;  %v3148_v32 = vpop.f32.mrf.mxu1 }
 0xf4c   :  { %v3165_v43 = vadd.f32 %v3157_v13, %v5273_v50  ;;  %v3167_v19 = vadd.f32 %v3159_v18, %v5277_v20  ;;  %v3158_v57 = vrot.slane %v3107_v30, 4  ;;  %v3160_v34 = vrot.slane %v3148_v32, 4  ;;  %v217_v13 = vld [vmem:[%s5793_s9 + $0x20] sm:$0xff] }
 0xf4d   :  { %v3109_v4 = vpop.f32.mrf.mxu0  ;;  %v3150_v29 = vpop.f32.mrf.mxu1 }
 0xf4e   :  { %v3705_v0 = vmul.f32 -1.442695, %v3165_v43  ;;  %v3707_v2 = vmul.f32 -1.442695, %v3167_v19  ;;  %v3166_v8 = vadd.f32 %v3158_v57, %v5289_v27  ;;  %v3168_v25 = vadd.f32 %v3160_v34, %v5871_v6 }
 0xf4f   :  { %v3110_v28 = vpop.f32.mrf.mxu0  ;;  %v3151_v59 = vpop.f32.mrf.mxu1 }
 0xf50   :  { %4210 = vpow2.f32 %v3705_v0  ;;  %v3706_v41 = vmul.f32 -1.442695, %v3166_v8  ;;  %v3708_v56 = vmul.f32 -1.442695, %v3168_v25 }
 0xf51   :  { %4212 = vpow2.f32 %v3707_v2 }
 0xf52   :  { %4214 = vpow2.f32 %v3706_v41 }
 0xf5d   :  { %v4211_v26 = vpop.eup %4210 }
 0xf5e   :  { %v4213_v50 = vpop.eup %4212  ;;  %v3181_v14 = vadd.f32 1.0, %v4211_v26 }
 0xf5f   :  { %v4215_v20 = vpop.eup %4214  ;;  %v3183_v9 = vadd.f32 1.0, %v4213_v50 }
 0xf60   :  { %v3182_v48 = vadd.f32 1.0, %v4215_v20 }
 0xf61   :  { %4216 = vrcp.f32 %v3183_v9 }
 0xf62   :  { %4218 = vpow2.f32 %v3708_v56 }
 0xf63   :  { %4220 = vrcp.f32 %v3182_v48 }
 0xf64   :  { %4222 = vrcp.f32 %v3181_v14 }
 0xf6e   :  { %v4217_v27 = vpop.eup %4216 }
 0xf6f   :  { %v4219_v63 = vpop.eup %4218  ;;  %v3193_v12 = vmul.f32 2.0, %v4217_v27 }
 0xf70   :  { %v4221_v54 = vpop.eup %4220  ;;  %v3184_v6 = vadd.f32 1.0, %v4219_v63 }
 0xf71   :  { %v3709_v52 = vadd.f32 -1.0, %v3193_v12  ;;  %v4223_v47 = vpop.eup %4222  ;;  %v3198_v7 = vmul.f32 %v4221_v54, %v3196_v61 }
 0xf72   :  { %4224 = vrcp.f32 %v3184_v6 }
 0xf73   :  { %v3199_v3 = vmul.f32 %v4223_v47, %v3709_v52 }
 0xf75   :  { %v5657_v33 = vadd.f32 %v3199_v3, %v3198_v7 }
 0xf77   :  { %4226 = vtanh.f32 %v5657_v33  ;;  %v3332_v61 = vrot.slane %v5657_v33, 6  ;;  %v216_v33 = vld [vmem:[%s5793_s9 + $0x18] sm:$0xff] }
 0xf7f   :  { %v4225_v42 = vpop.eup %4224 }
 0xf84   :  { %v4227_v23 = vpop.eup %4226 }
 0xf85   :  { %v3202_v31 = vmul.f32 %v4227_v23, %v4225_v42 }
 0xf87   :  { %v3203_v39 = vpack.c.bf16 %v3202_v31, %v3202_v31  ;;  %v5876_v31 = vld [vmem:[#allocation20_spill] sm:$0xff] }
 0xf89   :  { %v3205_v35 = vrot.slane %v3203_v39, 2  ;;  %v3340_v39 = vrot.slane %v5876_v31, 2 }
 0xf8b   :  { %3240 = vmatmul.mubr.bf16.vlgmr.msra.gmra.mxu0 %v3205_v35  ;;  %3281 = vmatmul.mubr.bf16.vlgmr.msra.gmra.mxu1 %v3205_v35 }
 0xf8c   :  { %3747 = vmatpush3.msra.mxu0 %v211_v11  ;;  %3778 = vmatprep.mubr.msk.f32.mxu0 %vm4382_vm0, %v4381_v16 }
 0xf8d   :  { %3748 = vmatprep.subr.mxu0 %v4381_v16  ;;  %3797 = vmatprep.mubr.msk.f32.mxu1 %vm4382_vm0, %v4381_v16 }
 0xf8e   :  { %3749 = vmatpush3.msra.mxu0 %v210_v60  ;;  %3782 = vmatpush3.msra.mxu1 %v220_v21 }
 0xf8f   :  { %3750 = vmatprep.subr.mxu0 %v4381_v16  ;;  %3783 = vmatprep.subr.mxu1 %v4381_v16 }
 0xf90   :  { %3751 = vmatpush3.msra.mxu0 %v209_v15  ;;  %3784 = vmatpush3.msra.mxu1 %v219_v53 }
 0xf91   :  { %3752 = vmatprep.subr.mxu0 %v4381_v16  ;;  %3785 = vmatprep.subr.mxu1 %v4381_v16 }
 0xf92   :  { %3753 = vmatpush3.msra.mxu0 %v208_v17  ;;  %3786 = vmatpush3.msra.mxu1 %v218_v24  ;;  %v215_v17 = vld [vmem:[%s5793_s9 + $0x10] sm:$0xff]  ;;  %v3718_v24 = vld [vmem:[%s5795_s11] ss:$0 sm:$0xff] }
 0xf93   :  { %3754 = vmatprep.subr.mxu0 %v4381_v16  ;;  %3787 = vmatprep.subr.mxu1 %v4381_v16 }
 0xf94   :  { %3755 = vmatpush3.msra.mxu0 %v207_v40  ;;  %3788 = vmatpush3.msra.mxu1 %v217_v13  ;;  %v214_v40 = vld [vmem:[%s5793_s9 + $0x8] sm:$0xff] }
 0xf95   :  { %3756 = vmatprep.subr.mxu0 %v4381_v16  ;;  %3789 = vmatprep.subr.mxu1 %v4381_v16 }
 0xf96   :  { %3757 = vmatpush3.msra.mxu0 %v206_v62  ;;  %3790 = vmatpush3.msra.mxu1 %v216_v33  ;;  %v213_v62 = vld [vmem:[%s5793_s9] sm:$0xff] }
 0xf97   :  { %3758 = vmatprep.subr.mxu0 %v4381_v16  ;;  %3791 = vmatprep.subr.mxu1 %v4381_v16 }
 0xf98   :  { %3759 = vmatpush3.msra.mxu0 %v205_v44  ;;  %3792 = vmatpush3.msra.mxu1 %v215_v17  ;;  %v3715_v44 = vld [vmem:[%s5792_s8] ss:$0 sm:$0xff] }
 0xf99   :  { %3760 = vmatprep.subr.mxu0 %v4381_v16  ;;  %3793 = vmatprep.subr.mxu1 %v4381_v16 }
 0xf9a   :  { %3761 = vmatpush3.msra.mxu0 %v204_v38  ;;  %3794 = vmatpush3.msra.mxu1 %v214_v40  ;;  %v224_v38 = vld [vmem:[%s5797_s13] sm:$0x3] }
 0xf9b   :  { %3762 = vmatprep.subr.mxu0 %v4381_v16  ;;  %3795 = vmatprep.subr.mxu1 %v4381_v16 }
 0xf9c   :  { %3763 = vmatpush3.msra.mxu0 %v203_v5  ;;  %3796 = vmatpush3.msra.mxu1 %v213_v62 }
 0xf9d   :  { %3764 = vmatprep.subr.mxu0 %v4381_v16 }
 0xf9e   :  { %3765 = vmatpush3.msra.mxu0 %v202_v1 }
 0xf9f   :  { %3766 = vmatprep.subr.mxu0 %v4381_v16 }
 0xfa0   :  { %3767 = vmatpush3.msra.mxu0 %v201_v10 }
 0xfa1   :  { %3768 = vmatprep.subr.mxu0 %v4381_v16 }
 0xfa2   :  { %3769 = vmatpush3.msra.mxu0 %v200_v49 }
 0xfa3   :  { %3770 = vmatprep.subr.mxu0 %v4381_v16 }
 0xfa4   :  { %3771 = vmatpush3.msra.mxu0 %v199_v51 }
 0xfa5   :  { %3772 = vmatprep.subr.mxu0 %v4381_v16 }
 0xfa6   :  { %3773 = vmatpush3.msra.mxu0 %v198_v55  ;;  %v225_v55 = vld [vmem:[%s5798_s14] sm:$0x3] }
 0xfa7   :  { %3774 = vmatprep.subr.mxu0 %v4381_v16 }
 0xfa8   :  { %3775 = vmatpush3.msra.mxu0 %v197_v22 }
 0xfa9   :  { %3776 = vmatprep.subr.mxu0 %v4381_v16  ;;  %v3716_v16 = vld [vmem:[%s5794_s10] ss:$0 sm:$0xff] }
 0xfaa   :  { %3777 = vmatpush3.msra.mxu0 %v196_v36 }
0x104b   :  { %v3241_v18 = vpop.f32.mrf.mxu0  ;;  %v3282_v30 = vpop.f32.mrf.mxu1 }
0x104c   :  { %v3293_v32 = vrot.slane %v3241_v18, 2  ;;  %v3295_v43 = vrot.slane %v3282_v30, 2 }
0x104d   :  { %v3243_v19 = vpop.f32.mrf.mxu0  ;;  %v3284_v57 = vpop.f32.mrf.mxu1 }
0x104e   :  { %v3301_v4 = vadd.f32 %v3293_v32, %v5872_v45  ;;  %v3303_v29 = vadd.f32 %v3295_v43, %v5873_v46  ;;  %v3294_v0 = vrot.slane %v3243_v19, 2  ;;  %v3296_v50 = vrot.slane %v3284_v57, 2  ;;  %v3719_v32 = vld [vmem:[#allocation2] ss:$0 sm:$0xff] }
0x104f   :  { %v3245_v2 = vpop.f32.mrf.mxu0  ;;  %v3286_v8 = vpop.f32.mrf.mxu1 }
0x1050   :  { %v3710_v28 = vmul.f32 -1.442695, %v3301_v4  ;;  %v3712_v59 = vmul.f32 -1.442695, %v3303_v29  ;;  %v3302_v41 = vadd.f32 %v3294_v0, %v5874_v58  ;;  %v3304_v56 = vadd.f32 %v3296_v50, %v5875_v37 }
0x1051   :  { %v3246_v34 = vpop.f32.mrf.mxu0  ;;  %v3287_v25 = vpop.f32.mrf.mxu1 }
0x1052   :  { %4228 = vpow2.f32 %v3710_v28  ;;  %v3711_v26 = vmul.f32 -1.442695, %v3302_v41  ;;  %v3713_v9 = vmul.f32 -1.442695, %v3304_v56 }
0x1053   :  { %4230 = vpow2.f32 %v3712_v59 }
0x1054   :  { %4232 = vpow2.f32 %v3711_v26 }
0x105f   :  { %v4229_v20 = vpop.eup %4228 }
0x1060   :  { %v4231_v45 = vpop.eup %4230  ;;  %v3317_v27 = vadd.f32 1.0, %v4229_v20 }
0x1061   :  { %v4233_v46 = vpop.eup %4232  ;;  %v3319_v48 = vadd.f32 1.0, %v4231_v45 }
0x1062   :  { %v3318_v14 = vadd.f32 1.0, %v4233_v46 }
0x1063   :  { %4234 = vrcp.f32 %v3319_v48 }
0x1064   :  { %4236 = vpow2.f32 %v3713_v9 }
0x1065   :  { %4238 = vrcp.f32 %v3318_v14 }
0x1066   :  { %4240 = vrcp.f32 %v3317_v27 }
0x1070   :  { %v4235_v58 = vpop.eup %4234 }
0x1071   :  { %v4237_v63 = vpop.eup %4236  ;;  %v3329_v12 = vmul.f32 2.0, %v4235_v58 }
0x1072   :  { %v4239_v54 = vpop.eup %4238  ;;  %v3320_v37 = vadd.f32 1.0, %v4237_v63 }
0x1073   :  { %v3714_v52 = vadd.f32 -1.0, %v3329_v12  ;;  %v4241_v47 = vpop.eup %4240  ;;  %v3334_v3 = vmul.f32 %v4239_v54, %v3332_v61 }
0x1074   :  { %4242 = vrcp.f32 %v3320_v37 }
0x1075   :  { %v3335_v6 = vmul.f32 %v4241_v47, %v3714_v52 }
0x1077   :  { %v3336_v7 = vadd.f32 %v3335_v6, %v3334_v3 }
0x1079   :  { %4244 = vtanh.f32 %v3336_v7 }
0x1081   :  { %v4243_v42 = vpop.eup %4242 }
0x1086   :  { %v4245_v23 = vpop.eup %4244 }
0x1087   :  { %v3338_v35 = vmul.f32 %v4245_v23, %v4243_v42 }
0x1089   :  { %v3342_v60 = vsel %vm4639_vm9, %v3338_v35, %v3340_v39  ;;  %vm3430_vm9 = vcmask 523264  }
0x108a   :  { %v3350_v15 = vrot.slane %v3342_v60, 6 }
0x108c   :  { %3779 = vmatmul.mubr.f32.vlgmr.msra.gmra.mxu0 %v3350_v15 }
0x114c   :  { %v3418_v5 = vpop.f32.mrf.mxu0 }
0x114d   :  { %v3419_v1 = vadd.f32 %v3715_v44, %v3418_v5 }
0x114e   :  { %v3780_v10 = vpop.f32.mrf.mxu0 }
0x114f   :  { %v3422_v49 = vmul.f32 %v3419_v1, %v224_v38 }
0x1151   :  { %v3423_v51 = vmax.f32 %v3422_v49, 0.0 }
0x1153   :  { %3798 = vmatmul.mubr.msk.f32.vlgmr.msra.gmra.mxu1 %vm3430_vm9, %v3423_v51 }
0x1213   :  { %v3500_v22 = vpop.f32.mrf.mxu1 }
0x1214   :  { %v3501_v36 = vadd.f32 %v3716_v16, %v3500_v22 }
0x1215   :  { %v3799_v21 = vpop.f32.mrf.mxu1 }
0x1216   :  { %v3504_v53 = vmul.f32 %v3501_v36, %v225_v55 }
0x1218   :  { %v3505_v13 = vmax.f32 %v3504_v53, 0.0 }
0x121a   :  { %v3512_v18 = vmul.f32 %v3718_v24, %v3505_v13 }
0x121c   :  { %v3514_v30 = vsel %vm3513_vm11, %v3512_v18, 0.0 }
0x121d   :  { %3515 = vadd.xlane.f32.xlu0 %v3514_v30 }
0x12a6   :  { %v3516_v43 = vpop.xlane.xlu0 %3515 }
0x12a7   :  { %v3523_v19 = vadd.f32 %v3719_v32, %v3516_v43 }
0x12a9   :  { %3525 = vst.msk [vmem:[%s5799_s15] sm:$0x3] %vm3524_vm12, %v3523_v19 }
0x12aa   :  { %3530 = vsyncpa [#allocation4], 1 }
0x12ab   :  { %3531 = vsyncpa [#allocation6], 1 }

</bundles_post_ra>
